<compile_context>
chip_gen: v7x
topology: tpu7x:2x2x1
jax: 0.10.0
libtpu: 0.0.40
codegen_flags: <defaults>
</compile_context>

<pallas_src>
import functools
import math

import jax
import jax.numpy as jnp
from jax.experimental import pallas as pl
from jax.experimental.pallas import tpu as pltpu


COMPUTE_DTYPE = jnp.bfloat16          # MXU operand / inter-layer activation dtype

_VMEM_LIMIT_CACHE = None


def _vmem_limit():
    """Generation-aware scoped-VMEM cap (v5e/v6e: 64 MB, v7x: 48 MB, safe fallback)."""
    global _VMEM_LIMIT_CACHE
    if _VMEM_LIMIT_CACHE is None:
        try:
            cap = int(pltpu.get_tpu_info().vmem_capacity_bytes)
        except Exception:                                    # pragma: no cover
            cap = 64 * 1024 * 1024
        _VMEM_LIMIT_CACHE = int(min(64 * 1024 * 1024, (cap * 3) // 4))
    return _VMEM_LIMIT_CACHE


def _round_up(x, m):
    return ((x + m - 1) // m) * m


def _pad2(x, mp, np_):
    m, n = x.shape
    if m == mp and n == np_:
        return x
    return jnp.pad(x, ((0, mp - m), (0, np_ - n)))


_ACT = {
    "none": lambda x: x,
    "relu": lambda x: jnp.maximum(x, 0.0),
    "sigmoid": jax.nn.sigmoid,
}


def _tile_m(m):
    if m >= 512:
        return 256
    if m >= 16:
        # >=2 row blocks so a leading "parallel" axis can shard across v7x's 2 TCs
        return _round_up((m + 1) // 2, 8)
    return _round_up(m, 8)


def _tiles_mnk(m, n, k):
    tm = _tile_m(m)
    tn = 512 if n >= 512 else _round_up(n, 128)     # lane-dense (unmasked) stores
    tk = _round_up(k, 8) if k <= 2048 else 1024     # big K tiles -> fewer acc passes
    return tm, tn, tk


# -----------------------------------------------------------------------------
# Tiled linear (bias + activation fused), optional fused elementwise-add on input
# -----------------------------------------------------------------------------

def _mm_kernel(x_ref, w_ref, b_ref, o_ref, acc_ref, *, act, nk):
    @pl.when(pl.program_id(2) == 0)
    def _():
        acc_ref[...] = jnp.zeros_like(acc_ref)

    acc_ref[...] += jnp.dot(x_ref[...], w_ref[...],
                            preferred_element_type=jnp.float32)

    @pl.when(pl.program_id(2) == nk - 1)
    def _():
        y = acc_ref[...] + b_ref[...].astype(jnp.float32)
        o_ref[...] = _ACT[act](y).astype(o_ref.dtype)


def _mm_add_kernel(x_ref, a_ref, w_ref, b_ref, o_ref, acc_ref, *, act, nk):
    @pl.when(pl.program_id(2) == 0)
    def _():
        acc_ref[...] = jnp.zeros_like(acc_ref)

    acc_ref[...] += jnp.dot(x_ref[...] + a_ref[...], w_ref[...],
                            preferred_element_type=jnp.float32)

    @pl.when(pl.program_id(2) == nk - 1)
    def _():
        y = acc_ref[...] + b_ref[...].astype(jnp.float32)
        o_ref[...] = _ACT[act](y).astype(o_ref.dtype)


def linear(x, w, b, act="none", add=None, out_dtype=None):
    """out = act((x [+ add]) @ w + b), tiled MXU matmul with fused epilogue."""
    k_in, n_out = w.shape
    lead = x.shape[:-1]
    x2 = x.reshape(-1, k_in)
    m = x2.shape[0]
    out_dtype = out_dtype or COMPUTE_DTYPE

    tm, tn, tk = _tiles_mnk(m, n_out, k_in)
    mp, np_, kp = _round_up(m, tm), _round_up(n_out, tn), _round_up(k_in, tk)
    nk = kp // tk

    xp = _pad2(x2.astype(COMPUTE_DTYPE), mp, kp)
    wp = _pad2(w.astype(COMPUTE_DTYPE), kp, np_)
    bp = _pad2(b.reshape(1, n_out).astype(jnp.float32), 1, np_)

    operands = [xp]
    in_specs = [pl.BlockSpec((tm, tk), lambda i, j, k: (i, k))]
    if add is not None:
        ap = _pad2(add.reshape(-1, k_in).astype(COMPUTE_DTYPE), mp, kp)
        operands.append(ap)
        in_specs.append(pl.BlockSpec((tm, tk), lambda i, j, k: (i, k)))
        kernel = functools.partial(_mm_add_kernel, act=act, nk=nk)
    else:
        kernel = functools.partial(_mm_kernel, act=act, nk=nk)
    operands += [wp, bp]
    in_specs += [pl.BlockSpec((tk, tn), lambda i, j, k: (k, j)),
                 pl.BlockSpec((1, tn), lambda i, j, k: (0, j))]

    out = pl.pallas_call(
        kernel,
        out_shape=jax.ShapeDtypeStruct((mp, np_), out_dtype),
        grid=(mp // tm, np_ // tn, nk),
        in_specs=in_specs,
        out_specs=pl.BlockSpec((tm, tn), lambda i, j, k: (i, j)),
        scratch_shapes=[pltpu.VMEM((tm, tn), jnp.float32)],
        compiler_params=pltpu.CompilerParams(
            dimension_semantics=("parallel", "parallel", "arbitrary"),
            vmem_limit_bytes=_vmem_limit()),
    )(*operands)

    out = out[:m, :n_out]
    return out.reshape(lead + (n_out,))


# -----------------------------------------------------------------------------
# Tiled linear with fused (bias + residual + LayerNorm [+ second LayerNorm])
# epilogue.  N is lane-padded to >=128; LN uses sum/sumsq with a constant 1/D so
# padded (zero) columns do not perturb the statistics.
# -----------------------------------------------------------------------------

def _ln_rows(y, g, b, eps, inv_n):
    s1 = jnp.sum(y, axis=-1, keepdims=True)
    s2 = jnp.sum(y * y, axis=-1, keepdims=True)
    mean = s1 * inv_n
    var = s2 * inv_n - mean * mean
    return (y - mean) * jax.lax.rsqrt(var + eps) * g + b


def _mm_res_ln_kernel(x_ref, w_ref, b_ref, r_ref, g1_ref, b1_ref, o_ref, acc_ref,
                      *, nk, eps, inv_n):
    @pl.when(pl.program_id(1) == 0)
    def _():
        acc_ref[...] = jnp.zeros_like(acc_ref)

    acc_ref[...] += jnp.dot(x_ref[...], w_ref[...],
                            preferred_element_type=jnp.float32)

    @pl.when(pl.program_id(1) == nk - 1)
    def _():
        y = (acc_ref[...] + b_ref[...].astype(jnp.float32)
             + r_ref[...].astype(jnp.float32))
        y = _ln_rows(y, g1_ref[...].astype(jnp.float32),
                     b1_ref[...].astype(jnp.float32), eps, inv_n)
        o_ref[...] = y.astype(o_ref.dtype)


def _mm_res_ln2_kernel(x_ref, w_ref, b_ref, r_ref, g1_ref, b1_ref, g2_ref, b2_ref,
                       o1_ref, o2_ref, acc_ref, *, nk, eps, inv_n):
    @pl.when(pl.program_id(1) == 0)
    def _():
        acc_ref[...] = jnp.zeros_like(acc_ref)

    acc_ref[...] += jnp.dot(x_ref[...], w_ref[...],
                            preferred_element_type=jnp.float32)

    @pl.when(pl.program_id(1) == nk - 1)
    def _():
        y = (acc_ref[...] + b_ref[...].astype(jnp.float32)
             + r_ref[...].astype(jnp.float32))
        y1 = _ln_rows(y, g1_ref[...].astype(jnp.float32),
                      b1_ref[...].astype(jnp.float32), eps, inv_n)
        o1_ref[...] = y1.astype(o1_ref.dtype)
        # decoder's "return_intermediate" norm, computed for free in this epilogue
        y2 = _ln_rows(y1, g2_ref[...].astype(jnp.float32),
                      b2_ref[...].astype(jnp.float32), eps, inv_n)
        o2_ref[...] = y2.astype(o2_ref.dtype)


def linear_add_layernorm(x, w, b, res, ln, ln2=None, eps=1e-5, out_dtype=None):
    """LN(res + x @ w + b); if ln2 is given also return LN2(LN(...)) (2nd output)."""
    k_in, n_out = w.shape
    lead = x.shape[:-1]
    x2 = x.reshape(-1, k_in)
    r2 = res.reshape(-1, n_out)
    m = x2.shape[0]
    out_dtype = out_dtype or COMPUTE_DTYPE

    tm = _tile_m(m)
    tk = _round_up(k_in, 8) if k_in <= 2048 else 1024
    nn = _round_up(n_out, 128)                     # lane-dense output tile
    mp, kp = _round_up(m, tm), _round_up(k_in, tk)
    nk = kp // tk
    inv_n = 1.0 / float(n_out)

    xp = _pad2(x2.astype(COMPUTE_DTYPE), mp, kp)
    wp = _pad2(w.astype(COMPUTE_DTYPE), kp, nn)
    rp = _pad2(r2.astype(COMPUTE_DTYPE), mp, nn)
    bp = _pad2(b.reshape(1, n_out).astype(jnp.float32), 1, nn)
    g1 = _pad2(ln["g"].reshape(1, n_out).astype(jnp.float32), 1, nn)
    b1 = _pad2(ln["b"].reshape(1, n_out).astype(jnp.float32), 1, nn)

    operands = [xp, wp, bp, rp, g1, b1]
    in_specs = [
        pl.BlockSpec((tm, tk), lambda i, k: (i, k)),
        pl.BlockSpec((tk, nn), lambda i, k: (k, 0)),
        pl.BlockSpec((1, nn), lambda i, k: (0, 0)),
        pl.BlockSpec((tm, nn), lambda i, k: (i, 0)),
        pl.BlockSpec((1, nn), lambda i, k: (0, 0)),
        pl.BlockSpec((1, nn), lambda i, k: (0, 0)),
    ]

    if ln2 is None:
        kernel = functools.partial(_mm_res_ln_kernel, nk=nk, eps=eps, inv_n=inv_n)
        out_shape = jax.ShapeDtypeStruct((mp, nn), out_dtype)
        out_specs = pl.BlockSpec((tm, nn), lambda i, k: (i, 0))
    else:
        g2 = _pad2(ln2["g"].reshape(1, n_out).astype(jnp.float32), 1, nn)
        b2 = _pad2(ln2["b"].reshape(1, n_out).astype(jnp.float32), 1, nn)
        operands += [g2, b2]
        in_specs += [pl.BlockSpec((1, nn), lambda i, k: (0, 0)),
                     pl.BlockSpec((1, nn), lambda i, k: (0, 0))]
        kernel = functools.partial(_mm_res_ln2_kernel, nk=nk, eps=eps, inv_n=inv_n)
        out_shape = (jax.ShapeDtypeStruct((mp, nn), out_dtype),
                     jax.ShapeDtypeStruct((mp, nn), out_dtype))
        out_specs = (pl.BlockSpec((tm, nn), lambda i, k: (i, 0)),
                     pl.BlockSpec((tm, nn), lambda i, k: (i, 0)))

    out = pl.pallas_call(
        kernel,
        out_shape=out_shape,
        grid=(mp // tm, nk),
        in_specs=in_specs,
        out_specs=out_specs,
        scratch_shapes=[pltpu.VMEM((tm, nn), jnp.float32)],
        compiler_params=pltpu.CompilerParams(
            dimension_semantics=("parallel", "arbitrary"),
            vmem_limit_bytes=_vmem_limit()),
    )(*operands)

    if ln2 is None:
        return out[:m, :n_out].reshape(lead + (n_out,))
    o1, o2 = out
    return (o1[:m, :n_out].reshape(lead + (n_out,)),
            o2[:m, :n_out].reshape(lead + (n_out,)))


# -----------------------------------------------------------------------------
# Multi-head attention core: all heads of one batch element per grid step,
# token-major (L, D) layout.  Head slices are taken on the refs; per-head outputs
# are concatenated in-register and written with a single full-width store.
# 1/sqrt(dh) is folded into the Q projection weights, so no in-kernel scaling.
# -----------------------------------------------------------------------------

def _attn_kernel(q_ref, k_ref, v_ref, o_ref, *, nheads):
    d = q_ref.shape[-1]
    dh = d // nheads
    head_outs = []
    for h in range(nheads):
        lo = h * dh
        qh = q_ref[0, :, lo:lo + dh]                                  # (tq, dh)
        kh = k_ref[0, :, lo:lo + dh]                                  # (Lk, dh)
        vh = v_ref[0, :, lo:lo + dh]                                  # (Lk, dh)
        # contract the shared last (dh) axis -> no in-kernel K transpose
        s = jax.lax.dot_general(qh, kh, (((1,), (1,)), ((), ())),
                                preferred_element_type=jnp.float32)   # (tq, Lk)
        s = s - jnp.max(s, axis=-1, keepdims=True)
        p = jnp.exp(s)
        p = p * pl.reciprocal(jnp.sum(p, axis=-1, keepdims=True), approx=True)
        head_outs.append(jnp.dot(p.astype(COMPUTE_DTYPE), vh,
                                 preferred_element_type=jnp.float32))  # (tq, dh)
    # one lane-dense (tq, D) store instead of nheads masked sub-width stores
    o_ref[0] = jnp.concatenate(head_outs, axis=-1).astype(o_ref.dtype)
    # TODO(synk): flash-style Lk tiling (online softmax) for very long sequences.


def attention(q, k, v, nheads, out_dtype=None):
    """Scaled dot-product attention; q/k/v are (B, L, D) token-major.
    The 1/sqrt(dh) scale must already be folded into q (done at init)."""
    b, lq, d = q.shape
    lk = k.shape[1]
    out_dtype = out_dtype or COMPUTE_DTYPE

    tq = min(64, _round_up(lq, 8))      # bound (tq, Lk) f32 score pressure
    lqp = _round_up(lq, tq)
    qp = q.astype(COMPUTE_DTYPE)
    if lqp != lq:
        qp = jnp.pad(qp, ((0, 0), (0, lqp - lq), (0, 0)))
    kp = k.astype(COMPUTE_DTYPE)
    vp = v.astype(COMPUTE_DTYPE)

    out = pl.pallas_call(
        functools.partial(_attn_kernel, nheads=nheads),
        out_shape=jax.ShapeDtypeStruct((b, lqp, d), out_dtype),
        grid=(b, lqp // tq),
        in_specs=[
            pl.BlockSpec((1, tq, d), lambda bi, qi: (bi, qi, 0)),
            pl.BlockSpec((1, lk, d), lambda bi, qi: (bi, 0, 0)),
            pl.BlockSpec((1, lk, d), lambda bi, qi: (bi, 0, 0)),
        ],
        out_specs=pl.BlockSpec((1, tq, d), lambda bi, qi: (bi, qi, 0)),
        compiler_params=pltpu.CompilerParams(
            dimension_semantics=("parallel", "parallel"),
            vmem_limit_bytes=_vmem_limit()),
    )(qp, kp, vp)

    if lqp != lq:
        out = out[:, :lq, :]
    return out


# -----------------------------------------------------------------------------
# Glue (plain JAX): positional embedding, layer wiring, parameter init
# -----------------------------------------------------------------------------

def sine_position_embedding(hp, wp, hidden_dim, temperature=10000.0):
    """DETR PositionEmbeddingSine (normalized), returns (hp*wp, hidden_dim)."""
    num_pos_feats = hidden_dim // 2
    eps = 1e-6
    scale = 2.0 * math.pi
    y_embed = jnp.broadcast_to(
        jnp.arange(1, hp + 1, dtype=jnp.float32)[:, None], (hp, wp))
    x_embed = jnp.broadcast_to(
        jnp.arange(1, wp + 1, dtype=jnp.float32)[None, :], (hp, wp))
    y_embed = y_embed / (y_embed[-1:, :] + eps) * scale
    x_embed = x_embed / (x_embed[:, -1:] + eps) * scale

    dim_t = jnp.arange(num_pos_feats, dtype=jnp.float32)
    dim_t = temperature ** (2.0 * jnp.floor(dim_t / 2.0) / num_pos_feats)

    pos_x = x_embed[:, :, None] / dim_t
    pos_y = y_embed[:, :, None] / dim_t
    pos_x = jnp.stack(
        [jnp.sin(pos_x[:, :, 0::2]), jnp.cos(pos_x[:, :, 1::2])],
        axis=3).reshape(hp, wp, num_pos_feats)
    pos_y = jnp.stack(
        [jnp.sin(pos_y[:, :, 0::2]), jnp.cos(pos_y[:, :, 1::2])],
        axis=3).reshape(hp, wp, num_pos_feats)
    pos = jnp.concatenate([pos_y, pos_x], axis=-1)      # (hp, wp, hidden)
    return pos.reshape(hp * wp, hidden_dim)


def encoder_layer(src, pos, p, nheads):
    d = src.shape[-1]
    sa = p["self_attn"]
    # fused Q/K projection on (src + pos) -- the add runs inside the kernel;
    # the 1/sqrt(dh) scale is already folded into the Q columns of the weight.
    qk = linear(src, sa["qk"]["w"], sa["qk"]["b"], add=pos)
    q, k = qk[..., :d], qk[..., d:]
    v = linear(src, sa["v"]["w"], sa["v"]["b"])
    a = attention(q, k, v, nheads)
    # out-projection + residual + LayerNorm fused in one kernel
    src = linear_add_layernorm(a, sa["o"]["w"], sa["o"]["b"], src, p["norm1"])
    h = linear(src, p["lin1"]["w"], p["lin1"]["b"], act="relu")
    src = linear_add_layernorm(h, p["lin2"]["w"], p["lin2"]["b"], src, p["norm2"])
    return src


def decoder_layer(tgt, memory, pos, query_pos, p, nheads, dec_norm):
    d = tgt.shape[-1]
    sa = p["self_attn"]
    qk = linear(tgt, sa["qk"]["w"], sa["qk"]["b"], add=query_pos)
    q, k = qk[..., :d], qk[..., d:]
    v = linear(tgt, sa["v"]["w"], sa["v"]["b"])
    a = attention(q, k, v, nheads)
    tgt = linear_add_layernorm(a, sa["o"]["w"], sa["o"]["b"], tgt, p["norm1"])

    ca = p["cross_attn"]
    q = linear(tgt, ca["q"]["w"], ca["q"]["b"], add=query_pos)
    k = linear(memory, ca["k"]["w"], ca["k"]["b"], add=pos)
    v = linear(memory, ca["v"]["w"], ca["v"]["b"])
    a = attention(q, k, v, nheads)
    tgt = linear_add_layernorm(a, ca["o"]["w"], ca["o"]["b"], tgt, p["norm2"])

    h = linear(tgt, p["lin1"]["w"], p["lin1"]["b"], act="relu")
    # second LN output = dec_norm(tgt), the decoder's return_intermediate value
    tgt, inter = linear_add_layernorm(h, p["lin2"]["w"], p["lin2"]["b"], tgt,
                                      p["norm3"], ln2=dec_norm)
    return tgt, inter


class _KeyGen:
    def __init__(self, key):
        self._key = key

    def __call__(self):
        self._key, sub = jax.random.split(self._key)
        return sub


def _init_linear(kg, din, dout, std=0.02, col_scale=None):
    w = jax.random.normal(kg(), (din, dout), jnp.float32) * std
    b = jnp.zeros((dout,), jnp.float32)
    if col_scale is not None:           # fold constant per-column scale (e.g. 1/sqrt(dh))
        w = w * col_scale
        b = b * col_scale
    return {"w": w.astype(COMPUTE_DTYPE), "b": b}


def _init_ln(d):
    return {"g": jnp.ones((d,), jnp.float32), "b": jnp.zeros((d,), jnp.float32)}


def _init_self_attn(kg, d, nheads):
    # Q and K projections concatenated into one (D, 2D) weight; 1/sqrt(dh) folded
    # into the Q columns (mathematically identical to scaling Q after projection).
    scale = 1.0 / math.sqrt(d // nheads)
    qk_scale = jnp.concatenate([jnp.full((d,), scale, jnp.float32),
                                jnp.ones((d,), jnp.float32)])
    return {"qk": _init_linear(kg, d, 2 * d, col_scale=qk_scale),
            "v": _init_linear(kg, d, d),
            "o": _init_linear(kg, d, d)}


def _init_cross_attn(kg, d, nheads):
    scale = 1.0 / math.sqrt(d // nheads)
    return {"q": _init_linear(kg, d, d,
                              col_scale=jnp.full((d,), scale, jnp.float32)),
            "k": _init_linear(kg, d, d),
            "v": _init_linear(kg, d, d),
            "o": _init_linear(kg, d, d)}


def init_detr_params(key, cfg):
    kg = _KeyGen(key)
    c, patch, d, ffn = cfg["in_chans"], cfg["patch"], cfg["hidden"], cfg["ffn"]
    bdim, nheads = cfg["backbone_dim"], cfg["nheads"]
    ncls = cfg["num_classes"] + 1
    params = {
        "stem": _init_linear(kg, c * patch * patch, bdim),   # backbone conv stem
        "input_proj": _init_linear(kg, bdim, d),             # 1x1 conv
        "query_embed": jax.random.normal(
            kg(), (cfg["num_queries"], d), jnp.float32) * 0.02,
        "enc": [], "dec": [],
        "dec_norm": _init_ln(d),
        # class_embed and bbox-MLP layer0 merged into one matmul over hs
        "head0": _init_linear(kg, d, ncls + d),
        "bbox1": _init_linear(kg, d, d),
        "bbox2": _init_linear(kg, d, 4),
    }
    for _ in range(cfg["enc_layers"]):
        params["enc"].append({
            "self_attn": _init_self_attn(kg, d, nheads),
            "lin1": _init_linear(kg, d, ffn),
            "lin2": _init_linear(kg, ffn, d),
            "norm1": _init_ln(d), "norm2": _init_ln(d),
        })
    for _ in range(cfg["dec_layers"]):
        params["dec"].append({
            "self_attn": _init_self_attn(kg, d, nheads),
            "cross_attn": _init_cross_attn(kg, d, nheads),
            "lin1": _init_linear(kg, d, ffn),
            "lin2": _init_linear(kg, ffn, d),
            "norm1": _init_ln(d), "norm2": _init_ln(d), "norm3": _init_ln(d),
        })
    return params


def detr_forward(params, x, cfg):
    """x: NCHW float32 image batch -> DETR-style output dict."""
    b, c, h, w = x.shape
    patch = cfg["patch"]
    hp, wp = h // patch, w // patch
    d = cfg["hidden"]
    nheads = cfg["nheads"]
    ncls = cfg["num_classes"] + 1
    l_tok = hp * wp

    # --- backbone conv stem (patchify conv, stride = kernel = patch) ---
    patches = (x.reshape(b, c, hp, patch, wp, patch)
                 .transpose(0, 2, 4, 1, 3, 5)
                 .reshape(b * l_tok, c * patch * patch))
    feat = linear(patches, params["stem"]["w"], params["stem"]["b"], act="relu")
    # --- input_proj (1x1 conv == per-token linear) ---
    src = linear(feat, params["input_proj"]["w"], params["input_proj"]["b"])
    src = src.reshape(b, l_tok, d)

    # --- sine positional embedding ---
    pos = sine_position_embedding(hp, wp, d).astype(COMPUTE_DTYPE)
    pos = jnp.broadcast_to(pos[None], (b, l_tok, d))

    # --- transformer encoder ---
    memory = src
    for lp in params["enc"]:
        memory = encoder_layer(memory, pos, lp, nheads)

    # --- transformer decoder (return_intermediate) ---
    nq = cfg["num_queries"]
    query_pos = jnp.broadcast_to(
        params["query_embed"].astype(COMPUTE_DTYPE)[None], (b, nq, d))
    tgt = jnp.zeros((b, nq, d), COMPUTE_DTYPE)
    intermediates = []
    for lp in params["dec"]:
        tgt, inter = decoder_layer(tgt, memory, pos, query_pos, lp, nheads,
                                   params["dec_norm"])
        intermediates.append(inter)
    hs = jnp.stack(intermediates, axis=0)            # (dec_layers, B, Q, D)

    # --- prediction heads (class head + bbox-MLP layer0 share one matmul) ---
    out0 = linear(hs, params["head0"]["w"], params["head0"]["b"],
                  out_dtype=jnp.float32)
    logits = out0[..., :ncls]
    hmid = jnp.maximum(out0[..., ncls:], 0.0).astype(COMPUTE_DTYPE)
    hmid = linear(hmid, params["bbox1"]["w"], params["bbox1"]["b"], act="relu")
    boxes = linear(hmid, params["bbox2"]["w"], params["bbox2"]["b"],
                   act="sigmoid", out_dtype=jnp.float32)

    out = {
        "pred_logits": logits[-1],                   # (B, Q, num_classes+1)
        "pred_boxes": boxes[-1],                     # (B, Q, 4)
        "aux_outputs": [
            {"pred_logits": logits[i], "pred_boxes": boxes[i]}
            for i in range(len(params["dec"]) - 1)
        ],
    }
    return out


# -----------------------------------------------------------------------------
# Main
# -----------------------------------------------------------------------------

if __name__ == "__main__":
    cfg = dict(
        in_chans=3,
        patch=8,
        backbone_dim=64,
        hidden=32,
        ffn=64,
        nheads=4,
        enc_layers=2,
        dec_layers=2,
        num_queries=8,
        num_classes=7,
    )

    key = jax.random.PRNGKey(0)
    pkey, xkey = jax.random.split(key)
    params = init_detr_params(pkey, cfg)

    # layout: input is PyTorch-style NCHW
    x = jax.random.normal(xkey, (2, cfg["in_chans"], 32, 32), jnp.float32)

    fwd = jax.jit(lambda prm, inp: detr_forward(prm, inp, cfg))
    out = fwd(params, x)
    out = jax.block_until_ready(out)

    assert out["pred_logits"].shape == (2, cfg["num_queries"],
                                        cfg["num_classes"] + 1)
    assert out["pred_boxes"].shape == (2, cfg["num_queries"], 4)
    assert len(out["aux_outputs"]) == cfg["dec_layers"] - 1
    assert bool(jnp.all(jnp.isfinite(out["pred_logits"])))
    assert bool(jnp.all(jnp.isfinite(out["pred_boxes"])))

    print("KERNEL_OK")
</pallas_src>

<mosaic_0001>
module attributes {stable_mosaic.version = 11 : i64} {
  func.func @_mm_kernel(%arg0: i32, %arg1: i32, %arg2: i32, %arg3: memref<16x192xbf16, #tpu.memory_space<vmem>>, %arg4: memref<192x128xbf16, #tpu.memory_space<vmem>>, %arg5: memref<1x128xf32, #tpu.memory_space<vmem>>, %arg6: memref<16x128xbf16, #tpu.memory_space<vmem>>, %arg7: memref<16x128xf32, #tpu.memory_space<vmem>>) attributes {dimension_semantics = [#tpu.dimension_semantics<parallel>, #tpu.dimension_semantics<parallel>, #tpu.dimension_semantics<arbitrary>], iteration_bounds = array<i64: 2, 1, 1>, scalar_prefetch = 0 : i64, scratch_operands = 1 : i64, tpu.core_type = #tpu.core_type<tc>, window_params = [{transform_indices = @transform_0, window_bounds = array<i64: 16, 192>}, {transform_indices = @transform_1, window_bounds = array<i64: 192, 128>}, {transform_indices = @transform_2, window_bounds = array<i64: 1, 128>}, {transform_indices = @transform_3, window_bounds = array<i64: 16, 128>}]} {
    %c0_i32 = arith.constant 0 : i32
    %0 = arith.cmpi eq, %arg2, %c0_i32 : i32
    %1 = arith.extui %0 : i1 to i32
    %c0_i32_0 = arith.constant 0 : i32
    %2 = arith.cmpi ne, %1, %c0_i32_0 : i32
    scf.if %2 {
      %cst_10 = arith.constant 0.000000e+00 : f32
      %12 = vector.broadcast %cst_10 : f32 to vector<16x128xf32>
      %c0_11 = arith.constant 0 : index
      %c0_12 = arith.constant 0 : index
      %13 = vector.load %arg7[%c0_11, %c0_12] : memref<16x128xf32, #tpu.memory_space<vmem>>, vector<16x128xf32>
      tpu.vector_store %arg7[%c0_11, %c0_12], %12 {strides = array<i32>} : memref<16x128xf32, #tpu.memory_space<vmem>>, vector<16x128xf32>,
    } else {
    }
    %c0 = arith.constant 0 : index
    %c0_1 = arith.constant 0 : index
    %3 = vector.load %arg7[%c0, %c0_1] : memref<16x128xf32, #tpu.memory_space<vmem>>, vector<16x128xf32>
    %c0_2 = arith.constant 0 : index
    %c0_3 = arith.constant 0 : index
    %4 = vector.load %arg3[%c0_2, %c0_3] : memref<16x192xbf16, #tpu.memory_space<vmem>>, vector<16x192xbf16>
    %c0_4 = arith.constant 0 : index
    %c0_5 = arith.constant 0 : index
    %5 = vector.load %arg4[%c0_4, %c0_5] : memref<192x128xbf16, #tpu.memory_space<vmem>>, vector<192x128xbf16>
    %cst = arith.constant dense<0.000000e+00> : vector<16x128xf32>
    %6 = tpu.matmul %4, %5, %cst {dimension_numbers = #tpu.dot_dimension_numbers<[1], [0], [0], [1], [0, 0, 1, 1], [], []>} : vector<16x192xbf16>, vector<192x128xbf16>, vector<16x128xf32> -> vector<16x128xf32>
    %7 = arith.addf %3, %6 : vector<16x128xf32>
    %c0_6 = arith.constant 0 : index
    %c0_7 = arith.constant 0 : index
    %8 = vector.load %arg7[%c0_6, %c0_7] : memref<16x128xf32, #tpu.memory_space<vmem>>, vector<16x128xf32>
    tpu.vector_store %arg7[%c0_6, %c0_7], %7 {strides = array<i32>} : memref<16x128xf32, #tpu.memory_space<vmem>>, vector<16x128xf32>,
    %c0_i32_8 = arith.constant 0 : i32
    %9 = arith.cmpi eq, %arg2, %c0_i32_8 : i32
    %10 = arith.extui %9 : i1 to i32
    %c0_i32_9 = arith.constant 0 : i32
    %11 = arith.cmpi ne, %10, %c0_i32_9 : i32
    scf.if %11 {
      %c0_10 = arith.constant 0 : index
      %c0_11 = arith.constant 0 : index
      %12 = vector.load %arg7[%c0_10, %c0_11] : memref<16x128xf32, #tpu.memory_space<vmem>>, vector<16x128xf32>
      %c0_12 = arith.constant 0 : index
      %c0_13 = arith.constant 0 : index
      %13 = vector.load %arg5[%c0_12, %c0_13] : memref<1x128xf32, #tpu.memory_space<vmem>>, vector<1x128xf32>
      %14 = vector.broadcast %13 : vector<1x128xf32> to vector<16x128xf32>
      %15 = arith.addf %12, %14 : vector<16x128xf32>
      %cst_14 = arith.constant 0.000000e+00 : f32
      %16 = vector.broadcast %cst_14 : f32 to vector<16x128xf32>
      %17 = arith.maximumf %15, %16 : vector<16x128xf32>
      %18 = arith.truncf %17 : vector<16x128xf32> to vector<16x128xbf16>
      %c0_15 = arith.constant 0 : index
      %c0_16 = arith.constant 0 : index
      %19 = vector.load %arg6[%c0_15, %c0_16] : memref<16x128xbf16, #tpu.memory_space<vmem>>, vector<16x128xbf16>
      tpu.vector_store %arg6[%c0_15, %c0_16], %18 {strides = array<i32>} : memref<16x128xbf16, #tpu.memory_space<vmem>>, vector<16x128xbf16>,
    } else {
    }
    return
  }
  func.func @transform_0(%arg0: i32, %arg1: i32, %arg2: i32) -> (i32, i32) {
    %c0_i32 = arith.constant 0 : i32
    return %arg0, %arg2 : i32, i32
  }
  func.func @transform_1(%arg0: i32, %arg1: i32, %arg2: i32) -> (i32, i32) {
    %c0_i32 = arith.constant 0 : i32
    return %arg2, %arg1 : i32, i32
  }
  func.func @transform_2(%arg0: i32, %arg1: i32, %arg2: i32) -> (i32, i32) {
    %c0_i32 = arith.constant 0 : i32
    %c0_i32_0 = arith.constant 0 : i32
    return %c0_i32, %arg1 : i32, i32
  }
  func.func @transform_3(%arg0: i32, %arg1: i32, %arg2: i32) -> (i32, i32) {
    %c0_i32 = arith.constant 0 : i32
    return %arg0, %arg1 : i32, i32
  }
}

module attributes {stable_mosaic.version = 11 : i64} {
  func.func @_mm_kernel(%arg0: i32, %arg1: i32, %arg2: i32, %arg3: memref<16x64xbf16, #tpu.memory_space<vmem>>, %arg4: memref<64x128xbf16, #tpu.memory_space<vmem>>, %arg5: memref<1x128xf32, #tpu.memory_space<vmem>>, %arg6: memref<16x128xbf16, #tpu.memory_space<vmem>>, %arg7: memref<16x128xf32, #tpu.memory_space<vmem>>) attributes {dimension_semantics = [#tpu.dimension_semantics<parallel>, #tpu.dimension_semantics<parallel>, #tpu.dimension_semantics<arbitrary>], iteration_bounds = array<i64: 2, 1, 1>, scalar_prefetch = 0 : i64, scratch_operands = 1 : i64, tpu.core_type = #tpu.core_type<tc>, window_params = [{transform_indices = @transform_0, window_bounds = array<i64: 16, 64>}, {transform_indices = @transform_1, window_bounds = array<i64: 64, 128>}, {transform_indices = @transform_2, window_bounds = array<i64: 1, 128>}, {transform_indices = @transform_3, window_bounds = array<i64: 16, 128>}]} {
    %c0_i32 = arith.constant 0 : i32
    %0 = arith.cmpi eq, %arg2, %c0_i32 : i32
    %1 = arith.extui %0 : i1 to i32
    %c0_i32_0 = arith.constant 0 : i32
    %2 = arith.cmpi ne, %1, %c0_i32_0 : i32
    scf.if %2 {
      %cst_10 = arith.constant 0.000000e+00 : f32
      %12 = vector.broadcast %cst_10 : f32 to vector<16x128xf32>
      %c0_11 = arith.constant 0 : index
      %c0_12 = arith.constant 0 : index
      %13 = vector.load %arg7[%c0_11, %c0_12] : memref<16x128xf32, #tpu.memory_space<vmem>>, vector<16x128xf32>
      tpu.vector_store %arg7[%c0_11, %c0_12], %12 {strides = array<i32>} : memref<16x128xf32, #tpu.memory_space<vmem>>, vector<16x128xf32>,
    } else {
    }
    %c0 = arith.constant 0 : index
    %c0_1 = arith.constant 0 : index
    %3 = vector.load %arg7[%c0, %c0_1] : memref<16x128xf32, #tpu.memory_space<vmem>>, vector<16x128xf32>
    %c0_2 = arith.constant 0 : index
    %c0_3 = arith.constant 0 : index
    %4 = vector.load %arg3[%c0_2, %c0_3] : memref<16x64xbf16, #tpu.memory_space<vmem>>, vector<16x64xbf16>
    %c0_4 = arith.constant 0 : index
    %c0_5 = arith.constant 0 : index
    %5 = vector.load %arg4[%c0_4, %c0_5] : memref<64x128xbf16, #tpu.memory_space<vmem>>, vector<64x128xbf16>
    %cst = arith.constant dense<0.000000e+00> : vector<16x128xf32>
    %6 = tpu.matmul %4, %5, %cst {dimension_numbers = #tpu.dot_dimension_numbers<[1], [0], [0], [1], [0, 0, 1, 1], [], []>} : vector<16x64xbf16>, vector<64x128xbf16>, vector<16x128xf32> -> vector<16x128xf32>
    %7 = arith.addf %3, %6 : vector<16x128xf32>
    %c0_6 = arith.constant 0 : index
    %c0_7 = arith.constant 0 : index
    %8 = vector.load %arg7[%c0_6, %c0_7] : memref<16x128xf32, #tpu.memory_space<vmem>>, vector<16x128xf32>
    tpu.vector_store %arg7[%c0_6, %c0_7], %7 {strides = array<i32>} : memref<16x128xf32, #tpu.memory_space<vmem>>, vector<16x128xf32>,
    %c0_i32_8 = arith.constant 0 : i32
    %9 = arith.cmpi eq, %arg2, %c0_i32_8 : i32
    %10 = arith.extui %9 : i1 to i32
    %c0_i32_9 = arith.constant 0 : i32
    %11 = arith.cmpi ne, %10, %c0_i32_9 : i32
    scf.if %11 {
      %c0_10 = arith.constant 0 : index
      %c0_11 = arith.constant 0 : index
      %12 = vector.load %arg7[%c0_10, %c0_11] : memref<16x128xf32, #tpu.memory_space<vmem>>, vector<16x128xf32>
      %c0_12 = arith.constant 0 : index
      %c0_13 = arith.constant 0 : index
      %13 = vector.load %arg5[%c0_12, %c0_13] : memref<1x128xf32, #tpu.memory_space<vmem>>, vector<1x128xf32>
      %14 = vector.broadcast %13 : vector<1x128xf32> to vector<16x128xf32>
      %15 = arith.addf %12, %14 : vector<16x128xf32>
      %16 = arith.truncf %15 : vector<16x128xf32> to vector<16x128xbf16>
      %c0_14 = arith.constant 0 : index
      %c0_15 = arith.constant 0 : index
      %17 = vector.load %arg6[%c0_14, %c0_15] : memref<16x128xbf16, #tpu.memory_space<vmem>>, vector<16x128xbf16>
      tpu.vector_store %arg6[%c0_14, %c0_15], %16 {strides = array<i32>} : memref<16x128xbf16, #tpu.memory_space<vmem>>, vector<16x128xbf16>,
    } else {
    }
    return
  }
  func.func @transform_0(%arg0: i32, %arg1: i32, %arg2: i32) -> (i32, i32) {
    %c0_i32 = arith.constant 0 : i32
    return %arg0, %arg2 : i32, i32
  }
  func.func @transform_1(%arg0: i32, %arg1: i32, %arg2: i32) -> (i32, i32) {
    %c0_i32 = arith.constant 0 : i32
    return %arg2, %arg1 : i32, i32
  }
  func.func @transform_2(%arg0: i32, %arg1: i32, %arg2: i32) -> (i32, i32) {
    %c0_i32 = arith.constant 0 : i32
    %c0_i32_0 = arith.constant 0 : i32
    return %c0_i32, %arg1 : i32, i32
  }
  func.func @transform_3(%arg0: i32, %arg1: i32, %arg2: i32) -> (i32, i32) {
    %c0_i32 = arith.constant 0 : i32
    return %arg0, %arg1 : i32, i32
  }
}

module attributes {stable_mosaic.version = 11 : i64} {
  func.func @_mm_add_kernel(%arg0: i32, %arg1: i32, %arg2: i32, %arg3: memref<16x32xbf16, #tpu.memory_space<vmem>>, %arg4: memref<16x32xbf16, #tpu.memory_space<vmem>>, %arg5: memref<32x128xbf16, #tpu.memory_space<vmem>>, %arg6: memref<1x128xf32, #tpu.memory_space<vmem>>, %arg7: memref<16x128xbf16, #tpu.memory_space<vmem>>, %arg8: memref<16x128xf32, #tpu.memory_space<vmem>>) attributes {dimension_semantics = [#tpu.dimension_semantics<parallel>, #tpu.dimension_semantics<parallel>, #tpu.dimension_semantics<arbitrary>], iteration_bounds = array<i64: 2, 1, 1>, scalar_prefetch = 0 : i64, scratch_operands = 1 : i64, tpu.core_type = #tpu.core_type<tc>, window_params = [{transform_indices = @transform_0, window_bounds = array<i64: 16, 32>}, {transform_indices = @transform_1, window_bounds = array<i64: 16, 32>}, {transform_indices = @transform_2, window_bounds = array<i64: 32, 128>}, {transform_indices = @transform_3, window_bounds = array<i64: 1, 128>}, {transform_indices = @transform_4, window_bounds = array<i64: 16, 128>}]} {
    %c0_i32 = arith.constant 0 : i32
    %0 = arith.cmpi eq, %arg2, %c0_i32 : i32
    %1 = arith.extui %0 : i1 to i32
    %c0_i32_0 = arith.constant 0 : i32
    %2 = arith.cmpi ne, %1, %c0_i32_0 : i32
    scf.if %2 {
      %cst_12 = arith.constant 0.000000e+00 : f32
      %14 = vector.broadcast %cst_12 : f32 to vector<16x128xf32>
      %c0_13 = arith.constant 0 : index
      %c0_14 = arith.constant 0 : index
      %15 = vector.load %arg8[%c0_13, %c0_14] : memref<16x128xf32, #tpu.memory_space<vmem>>, vector<16x128xf32>
      tpu.vector_store %arg8[%c0_13, %c0_14], %14 {strides = array<i32>} : memref<16x128xf32, #tpu.memory_space<vmem>>, vector<16x128xf32>,
    } else {
    }
    %c0 = arith.constant 0 : index
    %c0_1 = arith.constant 0 : index
    %3 = vector.load %arg8[%c0, %c0_1] : memref<16x128xf32, #tpu.memory_space<vmem>>, vector<16x128xf32>
    %c0_2 = arith.constant 0 : index
    %c0_3 = arith.constant 0 : index
    %4 = vector.load %arg3[%c0_2, %c0_3] : memref<16x32xbf16, #tpu.memory_space<vmem>>, vector<16x32xbf16>
    %c0_4 = arith.constant 0 : index
    %c0_5 = arith.constant 0 : index
    %5 = vector.load %arg4[%c0_4, %c0_5] : memref<16x32xbf16, #tpu.memory_space<vmem>>, vector<16x32xbf16>
    %6 = arith.addf %4, %5 : vector<16x32xbf16>
    %c0_6 = arith.constant 0 : index
    %c0_7 = arith.constant 0 : index
    %7 = vector.load %arg5[%c0_6, %c0_7] : memref<32x128xbf16, #tpu.memory_space<vmem>>, vector<32x128xbf16>
    %cst = arith.constant dense<0.000000e+00> : vector<16x128xf32>
    %8 = tpu.matmul %6, %7, %cst {dimension_numbers = #tpu.dot_dimension_numbers<[1], [0], [0], [1], [0, 0, 1, 1], [], []>} : vector<16x32xbf16>, vector<32x128xbf16>, vector<16x128xf32> -> vector<16x128xf32>
    %9 = arith.addf %3, %8 : vector<16x128xf32>
    %c0_8 = arith.constant 0 : index
    %c0_9 = arith.constant 0 : index
    %10 = vector.load %arg8[%c0_8, %c0_9] : memref<16x128xf32, #tpu.memory_space<vmem>>, vector<16x128xf32>
    tpu.vector_store %arg8[%c0_8, %c0_9], %9 {strides = array<i32>} : memref<16x128xf32, #tpu.memory_space<vmem>>, vector<16x128xf32>,
    %c0_i32_10 = arith.constant 0 : i32
    %11 = arith.cmpi eq, %arg2, %c0_i32_10 : i32
    %12 = arith.extui %11 : i1 to i32
    %c0_i32_11 = arith.constant 0 : i32
    %13 = arith.cmpi ne, %12, %c0_i32_11 : i32
    scf.if %13 {
      %c0_12 = arith.constant 0 : index
      %c0_13 = arith.constant 0 : index
      %14 = vector.load %arg8[%c0_12, %c0_13] : memref<16x128xf32, #tpu.memory_space<vmem>>, vector<16x128xf32>
      %c0_14 = arith.constant 0 : index
      %c0_15 = arith.constant 0 : index
      %15 = vector.load %arg6[%c0_14, %c0_15] : memref<1x128xf32, #tpu.memory_space<vmem>>, vector<1x128xf32>
      %16 = vector.broadcast %15 : vector<1x128xf32> to vector<16x128xf32>
      %17 = arith.addf %14, %16 : vector<16x128xf32>
      %18 = arith.truncf %17 : vector<16x128xf32> to vector<16x128xbf16>
      %c0_16 = arith.constant 0 : index
      %c0_17 = arith.constant 0 : index
      %19 = vector.load %arg7[%c0_16, %c0_17] : memref<16x128xbf16, #tpu.memory_space<vmem>>, vector<16x128xbf16>
      tpu.vector_store %arg7[%c0_16, %c0_17], %18 {strides = array<i32>} : memref<16x128xbf16, #tpu.memory_space<vmem>>, vector<16x128xbf16>,
    } else {
    }
    return
  }
  func.func @transform_0(%arg0: i32, %arg1: i32, %arg2: i32) -> (i32, i32) {
    %c0_i32 = arith.constant 0 : i32
    return %arg0, %arg2 : i32, i32
  }
  func.func @transform_1(%arg0: i32, %arg1: i32, %arg2: i32) -> (i32, i32) {
    %c0_i32 = arith.constant 0 : i32
    return %arg0, %arg2 : i32, i32
  }
  func.func @transform_2(%arg0: i32, %arg1: i32, %arg2: i32) -> (i32, i32) {
    %c0_i32 = arith.constant 0 : i32
    return %arg2, %arg1 : i32, i32
  }
  func.func @transform_3(%arg0: i32, %arg1: i32, %arg2: i32) -> (i32, i32) {
    %c0_i32 = arith.constant 0 : i32
    %c0_i32_0 = arith.constant 0 : i32
    return %c0_i32, %arg1 : i32, i32
  }
  func.func @transform_4(%arg0: i32, %arg1: i32, %arg2: i32) -> (i32, i32) {
    %c0_i32 = arith.constant 0 : i32
    return %arg0, %arg1 : i32, i32
  }
}

module attributes {stable_mosaic.version = 11 : i64} {
  func.func @_mm_kernel(%arg0: i32, %arg1: i32, %arg2: i32, %arg3: memref<16x32xbf16, #tpu.memory_space<vmem>>, %arg4: memref<32x128xbf16, #tpu.memory_space<vmem>>, %arg5: memref<1x128xf32, #tpu.memory_space<vmem>>, %arg6: memref<16x128xbf16, #tpu.memory_space<vmem>>, %arg7: memref<16x128xf32, #tpu.memory_space<vmem>>) attributes {dimension_semantics = [#tpu.dimension_semantics<parallel>, #tpu.dimension_semantics<parallel>, #tpu.dimension_semantics<arbitrary>], iteration_bounds = array<i64: 2, 1, 1>, scalar_prefetch = 0 : i64, scratch_operands = 1 : i64, tpu.core_type = #tpu.core_type<tc>, window_params = [{transform_indices = @transform_0, window_bounds = array<i64: 16, 32>}, {transform_indices = @transform_1, window_bounds = array<i64: 32, 128>}, {transform_indices = @transform_2, window_bounds = array<i64: 1, 128>}, {transform_indices = @transform_3, window_bounds = array<i64: 16, 128>}]} {
    %c0_i32 = arith.constant 0 : i32
    %0 = arith.cmpi eq, %arg2, %c0_i32 : i32
    %1 = arith.extui %0 : i1 to i32
    %c0_i32_0 = arith.constant 0 : i32
    %2 = arith.cmpi ne, %1, %c0_i32_0 : i32
    scf.if %2 {
      %cst_10 = arith.constant 0.000000e+00 : f32
      %12 = vector.broadcast %cst_10 : f32 to vector<16x128xf32>
      %c0_11 = arith.constant 0 : index
      %c0_12 = arith.constant 0 : index
      %13 = vector.load %arg7[%c0_11, %c0_12] : memref<16x128xf32, #tpu.memory_space<vmem>>, vector<16x128xf32>
      tpu.vector_store %arg7[%c0_11, %c0_12], %12 {strides = array<i32>} : memref<16x128xf32, #tpu.memory_space<vmem>>, vector<16x128xf32>,
    } else {
    }
    %c0 = arith.constant 0 : index
    %c0_1 = arith.constant 0 : index
    %3 = vector.load %arg7[%c0, %c0_1] : memref<16x128xf32, #tpu.memory_space<vmem>>, vector<16x128xf32>
    %c0_2 = arith.constant 0 : index
    %c0_3 = arith.constant 0 : index
    %4 = vector.load %arg3[%c0_2, %c0_3] : memref<16x32xbf16, #tpu.memory_space<vmem>>, vector<16x32xbf16>
    %c0_4 = arith.constant 0 : index
    %c0_5 = arith.constant 0 : index
    %5 = vector.load %arg4[%c0_4, %c0_5] : memref<32x128xbf16, #tpu.memory_space<vmem>>, vector<32x128xbf16>
    %cst = arith.constant dense<0.000000e+00> : vector<16x128xf32>
    %6 = tpu.matmul %4, %5, %cst {dimension_numbers = #tpu.dot_dimension_numbers<[1], [0], [0], [1], [0, 0, 1, 1], [], []>} : vector<16x32xbf16>, vector<32x128xbf16>, vector<16x128xf32> -> vector<16x128xf32>
    %7 = arith.addf %3, %6 : vector<16x128xf32>
    %c0_6 = arith.constant 0 : index
    %c0_7 = arith.constant 0 : index
    %8 = vector.load %arg7[%c0_6, %c0_7] : memref<16x128xf32, #tpu.memory_space<vmem>>, vector<16x128xf32>
    tpu.vector_store %arg7[%c0_6, %c0_7], %7 {strides = array<i32>} : memref<16x128xf32, #tpu.memory_space<vmem>>, vector<16x128xf32>,
    %c0_i32_8 = arith.constant 0 : i32
    %9 = arith.cmpi eq, %arg2, %c0_i32_8 : i32
    %10 = arith.extui %9 : i1 to i32
    %c0_i32_9 = arith.constant 0 : i32
    %11 = arith.cmpi ne, %10, %c0_i32_9 : i32
    scf.if %11 {
      %c0_10 = arith.constant 0 : index
      %c0_11 = arith.constant 0 : index
      %12 = vector.load %arg7[%c0_10, %c0_11] : memref<16x128xf32, #tpu.memory_space<vmem>>, vector<16x128xf32>
      %c0_12 = arith.constant 0 : index
      %c0_13 = arith.constant 0 : index
      %13 = vector.load %arg5[%c0_12, %c0_13] : memref<1x128xf32, #tpu.memory_space<vmem>>, vector<1x128xf32>
      %14 = vector.broadcast %13 : vector<1x128xf32> to vector<16x128xf32>
      %15 = arith.addf %12, %14 : vector<16x128xf32>
      %16 = arith.truncf %15 : vector<16x128xf32> to vector<16x128xbf16>
      %c0_14 = arith.constant 0 : index
      %c0_15 = arith.constant 0 : index
      %17 = vector.load %arg6[%c0_14, %c0_15] : memref<16x128xbf16, #tpu.memory_space<vmem>>, vector<16x128xbf16>
      tpu.vector_store %arg6[%c0_14, %c0_15], %16 {strides = array<i32>} : memref<16x128xbf16, #tpu.memory_space<vmem>>, vector<16x128xbf16>,
    } else {
    }
    return
  }
  func.func @transform_0(%arg0: i32, %arg1: i32, %arg2: i32) -> (i32, i32) {
    %c0_i32 = arith.constant 0 : i32
    return %arg0, %arg2 : i32, i32
  }
  func.func @transform_1(%arg0: i32, %arg1: i32, %arg2: i32) -> (i32, i32) {
    %c0_i32 = arith.constant 0 : i32
    return %arg2, %arg1 : i32, i32
  }
  func.func @transform_2(%arg0: i32, %arg1: i32, %arg2: i32) -> (i32, i32) {
    %c0_i32 = arith.constant 0 : i32
    %c0_i32_0 = arith.constant 0 : i32
    return %c0_i32, %arg1 : i32, i32
  }
  func.func @transform_3(%arg0: i32, %arg1: i32, %arg2: i32) -> (i32, i32) {
    %c0_i32 = arith.constant 0 : i32
    return %arg0, %arg1 : i32, i32
  }
}

module attributes {stable_mosaic.version = 11 : i64} {
  func.func @_mm_res_ln_kernel(%arg0: i32, %arg1: i32, %arg2: memref<16x32xbf16, #tpu.memory_space<vmem>>, %arg3: memref<32x128xbf16, #tpu.memory_space<vmem>>, %arg4: memref<1x128xf32, #tpu.memory_space<vmem>>, %arg5: memref<16x128xbf16, #tpu.memory_space<vmem>>, %arg6: memref<1x128xf32, #tpu.memory_space<vmem>>, %arg7: memref<1x128xf32, #tpu.memory_space<vmem>>, %arg8: memref<16x128xbf16, #tpu.memory_space<vmem>>, %arg9: memref<16x128xf32, #tpu.memory_space<vmem>>) attributes {dimension_semantics = [#tpu.dimension_semantics<parallel>, #tpu.dimension_semantics<arbitrary>], iteration_bounds = array<i64: 2, 1>, scalar_prefetch = 0 : i64, scratch_operands = 1 : i64, tpu.core_type = #tpu.core_type<tc>, window_params = [{transform_indices = @transform_0, window_bounds = array<i64: 16, 32>}, {transform_indices = @transform_1, window_bounds = array<i64: 32, 128>}, {pipeline_mode = #tpu.pipeline_mode<synchronous>, transform_indices = @transform_2, window_bounds = array<i64: 1, 128>}, {transform_indices = @transform_3, window_bounds = array<i64: 16, 128>}, {pipeline_mode = #tpu.pipeline_mode<synchronous>, transform_indices = @transform_4, window_bounds = array<i64: 1, 128>}, {pipeline_mode = #tpu.pipeline_mode<synchronous>, transform_indices = @transform_5, window_bounds = array<i64: 1, 128>}, {transform_indices = @transform_6, window_bounds = array<i64: 16, 128>}]} {
    %c0_i32 = arith.constant 0 : i32
    %0 = arith.cmpi eq, %arg1, %c0_i32 : i32
    %1 = arith.extui %0 : i1 to i32
    %c0_i32_0 = arith.constant 0 : i32
    %2 = arith.cmpi ne, %1, %c0_i32_0 : i32
    scf.if %2 {
      %cst_10 = arith.constant 0.000000e+00 : f32
      %12 = vector.broadcast %cst_10 : f32 to vector<16x128xf32>
      %c0_11 = arith.constant 0 : index
      %c0_12 = arith.constant 0 : index
      %13 = vector.load %arg9[%c0_11, %c0_12] : memref<16x128xf32, #tpu.memory_space<vmem>>, vector<16x128xf32>
      tpu.vector_store %arg9[%c0_11, %c0_12], %12 {strides = array<i32>} : memref<16x128xf32, #tpu.memory_space<vmem>>, vector<16x128xf32>,
    } else {
    }
    %c0 = arith.constant 0 : index
    %c0_1 = arith.constant 0 : index
    %3 = vector.load %arg9[%c0, %c0_1] : memref<16x128xf32, #tpu.memory_space<vmem>>, vector<16x128xf32>
    %c0_2 = arith.constant 0 : index
    %c0_3 = arith.constant 0 : index
    %4 = vector.load %arg2[%c0_2, %c0_3] : memref<16x32xbf16, #tpu.memory_space<vmem>>, vector<16x32xbf16>
    %c0_4 = arith.constant 0 : index
    %c0_5 = arith.constant 0 : index
    %5 = vector.load %arg3[%c0_4, %c0_5] : memref<32x128xbf16, #tpu.memory_space<vmem>>, vector<32x128xbf16>
    %cst = arith.constant dense<0.000000e+00> : vector<16x128xf32>
    %6 = tpu.matmul %4, %5, %cst {dimension_numbers = #tpu.dot_dimension_numbers<[1], [0], [0], [1], [0, 0, 1, 1], [], []>} : vector<16x32xbf16>, vector<32x128xbf16>, vector<16x128xf32> -> vector<16x128xf32>
    %7 = arith.addf %3, %6 : vector<16x128xf32>
    %c0_6 = arith.constant 0 : index
    %c0_7 = arith.constant 0 : index
    %8 = vector.load %arg9[%c0_6, %c0_7] : memref<16x128xf32, #tpu.memory_space<vmem>>, vector<16x128xf32>
    tpu.vector_store %arg9[%c0_6, %c0_7], %7 {strides = array<i32>} : memref<16x128xf32, #tpu.memory_space<vmem>>, vector<16x128xf32>,
    %c0_i32_8 = arith.constant 0 : i32
    %9 = arith.cmpi eq, %arg1, %c0_i32_8 : i32
    %10 = arith.extui %9 : i1 to i32
    %c0_i32_9 = arith.constant 0 : i32
    %11 = arith.cmpi ne, %10, %c0_i32_9 : i32
    scf.if %11 {
      %c0_10 = arith.constant 0 : index
      %c0_11 = arith.constant 0 : index
      %12 = vector.load %arg9[%c0_10, %c0_11] : memref<16x128xf32, #tpu.memory_space<vmem>>, vector<16x128xf32>
      %c0_12 = arith.constant 0 : index
      %c0_13 = arith.constant 0 : index
      %13 = vector.load %arg4[%c0_12, %c0_13] : memref<1x128xf32, #tpu.memory_space<vmem>>, vector<1x128xf32>
      %14 = vector.broadcast %13 : vector<1x128xf32> to vector<16x128xf32>
      %15 = arith.addf %12, %14 : vector<16x128xf32>
      %c0_14 = arith.constant 0 : index
      %c0_15 = arith.constant 0 : index
      %16 = vector.load %arg5[%c0_14, %c0_15] : memref<16x128xbf16, #tpu.memory_space<vmem>>, vector<16x128xbf16>
      %17 = arith.extf %16 : vector<16x128xbf16> to vector<16x128xf32>
      %18 = arith.addf %15, %17 : vector<16x128xf32>
      %c0_16 = arith.constant 0 : index
      %c0_17 = arith.constant 0 : index
      %19 = vector.load %arg6[%c0_16, %c0_17] : memref<1x128xf32, #tpu.memory_space<vmem>>, vector<1x128xf32>
      %c0_18 = arith.constant 0 : index
      %c0_19 = arith.constant 0 : index
      %20 = vector.load %arg7[%c0_18, %c0_19] : memref<1x128xf32, #tpu.memory_space<vmem>>, vector<1x128xf32>
      %cst_20 = arith.constant dense<0.000000e+00> : vector<16xf32>
      %21 = vector.multi_reduction <add>, %18, %cst_20 [1] : vector<16x128xf32> to vector<16xf32>
      %22 = vector.shape_cast %21 : vector<16xf32> to vector<16x1xf32>
      %23 = arith.mulf %18, %18 : vector<16x128xf32>
      %cst_21 = arith.constant dense<0.000000e+00> : vector<16xf32>
      %24 = vector.multi_reduction <add>, %23, %cst_21 [1] : vector<16x128xf32> to vector<16xf32>
      %25 = vector.shape_cast %24 : vector<16xf32> to vector<16x1xf32>
      %cst_22 = arith.constant 3.125000e-02 : f32
      %26 = vector.broadcast %cst_22 : f32 to vector<16x1xf32>
      %27 = arith.mulf %22, %26 : vector<16x1xf32>
      %cst_23 = arith.constant 3.125000e-02 : f32
      %28 = vector.broadcast %cst_23 : f32 to vector<16x1xf32>
      %29 = arith.mulf %25, %28 : vector<16x1xf32>
      %30 = arith.mulf %27, %27 : vector<16x1xf32>
      %31 = arith.subf %29, %30 : vector<16x1xf32>
      %32 = vector.broadcast %27 : vector<16x1xf32> to vector<16x128xf32>
      %33 = arith.subf %18, %32 : vector<16x128xf32>
      %cst_24 = arith.constant 9.99999974E-6 : f32
      %34 = vector.broadcast %cst_24 : f32 to vector<16x1xf32>
      %35 = arith.addf %31, %34 : vector<16x1xf32>
      %36 = math.rsqrt %35 : vector<16x1xf32>
      %37 = vector.broadcast %36 : vector<16x1xf32> to vector<16x128xf32>
      %38 = arith.mulf %33, %37 : vector<16x128xf32>
      %39 = vector.broadcast %19 : vector<1x128xf32> to vector<16x128xf32>
      %40 = arith.mulf %38, %39 : vector<16x128xf32>
      %41 = vector.broadcast %20 : vector<1x128xf32> to vector<16x128xf32>
      %42 = arith.addf %40, %41 : vector<16x128xf32>
      %43 = arith.truncf %42 : vector<16x128xf32> to vector<16x128xbf16>
      %c0_25 = arith.constant 0 : index
      %c0_26 = arith.constant 0 : index
      %44 = vector.load %arg8[%c0_25, %c0_26] : memref<16x128xbf16, #tpu.memory_space<vmem>>, vector<16x128xbf16>
      tpu.vector_store %arg8[%c0_25, %c0_26], %43 {strides = array<i32>} : memref<16x128xbf16, #tpu.memory_space<vmem>>, vector<16x128xbf16>,
    } else {
    }
    return
  }
  func.func @transform_0(%arg0: i32, %arg1: i32) -> (i32, i32) {
    %c0_i32 = arith.constant 0 : i32
    return %arg0, %arg1 : i32, i32
  }
  func.func @transform_1(%arg0: i32, %arg1: i32) -> (i32, i32) {
    %c0_i32 = arith.constant 0 : i32
    %c0_i32_0 = arith.constant 0 : i32
    return %arg1, %c0_i32 : i32, i32
  }
  func.func @transform_2(%arg0: i32, %arg1: i32) -> (i32, i32) {
    %c0_i32 = arith.constant 0 : i32
    %c0_i32_0 = arith.constant 0 : i32
    %c0_i32_1 = arith.constant 0 : i32
    return %c0_i32, %c0_i32_0 : i32, i32
  }
  func.func @transform_3(%arg0: i32, %arg1: i32) -> (i32, i32) {
    %c0_i32 = arith.constant 0 : i32
    %c0_i32_0 = arith.constant 0 : i32
    return %arg0, %c0_i32 : i32, i32
  }
  func.func @transform_4(%arg0: i32, %arg1: i32) -> (i32, i32) {
    %c0_i32 = arith.constant 0 : i32
    %c0_i32_0 = arith.constant 0 : i32
    %c0_i32_1 = arith.constant 0 : i32
    return %c0_i32, %c0_i32_0 : i32, i32
  }
  func.func @transform_5(%arg0: i32, %arg1: i32) -> (i32, i32) {
    %c0_i32 = arith.constant 0 : i32
    %c0_i32_0 = arith.constant 0 : i32
    %c0_i32_1 = arith.constant 0 : i32
    return %c0_i32, %c0_i32_0 : i32, i32
  }
  func.func @transform_6(%arg0: i32, %arg1: i32) -> (i32, i32) {
    %c0_i32 = arith.constant 0 : i32
    %c0_i32_0 = arith.constant 0 : i32
    return %arg0, %c0_i32 : i32, i32
  }
}

module attributes {stable_mosaic.version = 11 : i64} {
  func.func @_mm_res_ln_kernel(%arg0: i32, %arg1: i32, %arg2: memref<16x64xbf16, #tpu.memory_space<vmem>>, %arg3: memref<64x128xbf16, #tpu.memory_space<vmem>>, %arg4: memref<1x128xf32, #tpu.memory_space<vmem>>, %arg5: memref<16x128xbf16, #tpu.memory_space<vmem>>, %arg6: memref<1x128xf32, #tpu.memory_space<vmem>>, %arg7: memref<1x128xf32, #tpu.memory_space<vmem>>, %arg8: memref<16x128xbf16, #tpu.memory_space<vmem>>, %arg9: memref<16x128xf32, #tpu.memory_space<vmem>>) attributes {dimension_semantics = [#tpu.dimension_semantics<parallel>, #tpu.dimension_semantics<arbitrary>], iteration_bounds = array<i64: 2, 1>, scalar_prefetch = 0 : i64, scratch_operands = 1 : i64, tpu.core_type = #tpu.core_type<tc>, window_params = [{transform_indices = @transform_0, window_bounds = array<i64: 16, 64>}, {transform_indices = @transform_1, window_bounds = array<i64: 64, 128>}, {pipeline_mode = #tpu.pipeline_mode<synchronous>, transform_indices = @transform_2, window_bounds = array<i64: 1, 128>}, {transform_indices = @transform_3, window_bounds = array<i64: 16, 128>}, {pipeline_mode = #tpu.pipeline_mode<synchronous>, transform_indices = @transform_4, window_bounds = array<i64: 1, 128>}, {pipeline_mode = #tpu.pipeline_mode<synchronous>, transform_indices = @transform_5, window_bounds = array<i64: 1, 128>}, {transform_indices = @transform_6, window_bounds = array<i64: 16, 128>}]} {
    %c0_i32 = arith.constant 0 : i32
    %0 = arith.cmpi eq, %arg1, %c0_i32 : i32
    %1 = arith.extui %0 : i1 to i32
    %c0_i32_0 = arith.constant 0 : i32
    %2 = arith.cmpi ne, %1, %c0_i32_0 : i32
    scf.if %2 {
      %cst_10 = arith.constant 0.000000e+00 : f32
      %12 = vector.broadcast %cst_10 : f32 to vector<16x128xf32>
      %c0_11 = arith.constant 0 : index
      %c0_12 = arith.constant 0 : index
      %13 = vector.load %arg9[%c0_11, %c0_12] : memref<16x128xf32, #tpu.memory_space<vmem>>, vector<16x128xf32>
      tpu.vector_store %arg9[%c0_11, %c0_12], %12 {strides = array<i32>} : memref<16x128xf32, #tpu.memory_space<vmem>>, vector<16x128xf32>,
    } else {
    }
    %c0 = arith.constant 0 : index
    %c0_1 = arith.constant 0 : index
    %3 = vector.load %arg9[%c0, %c0_1] : memref<16x128xf32, #tpu.memory_space<vmem>>, vector<16x128xf32>
    %c0_2 = arith.constant 0 : index
    %c0_3 = arith.constant 0 : index
    %4 = vector.load %arg2[%c0_2, %c0_3] : memref<16x64xbf16, #tpu.memory_space<vmem>>, vector<16x64xbf16>
    %c0_4 = arith.constant 0 : index
    %c0_5 = arith.constant 0 : index
    %5 = vector.load %arg3[%c0_4, %c0_5] : memref<64x128xbf16, #tpu.memory_space<vmem>>, vector<64x128xbf16>
    %cst = arith.constant dense<0.000000e+00> : vector<16x128xf32>
    %6 = tpu.matmul %4, %5, %cst {dimension_numbers = #tpu.dot_dimension_numbers<[1], [0], [0], [1], [0, 0, 1, 1], [], []>} : vector<16x64xbf16>, vector<64x128xbf16>, vector<16x128xf32> -> vector<16x128xf32>
    %7 = arith.addf %3, %6 : vector<16x128xf32>
    %c0_6 = arith.constant 0 : index
    %c0_7 = arith.constant 0 : index
    %8 = vector.load %arg9[%c0_6, %c0_7] : memref<16x128xf32, #tpu.memory_space<vmem>>, vector<16x128xf32>
    tpu.vector_store %arg9[%c0_6, %c0_7], %7 {strides = array<i32>} : memref<16x128xf32, #tpu.memory_space<vmem>>, vector<16x128xf32>,
    %c0_i32_8 = arith.constant 0 : i32
    %9 = arith.cmpi eq, %arg1, %c0_i32_8 : i32
    %10 = arith.extui %9 : i1 to i32
    %c0_i32_9 = arith.constant 0 : i32
    %11 = arith.cmpi ne, %10, %c0_i32_9 : i32
    scf.if %11 {
      %c0_10 = arith.constant 0 : index
      %c0_11 = arith.constant 0 : index
      %12 = vector.load %arg9[%c0_10, %c0_11] : memref<16x128xf32, #tpu.memory_space<vmem>>, vector<16x128xf32>
      %c0_12 = arith.constant 0 : index
      %c0_13 = arith.constant 0 : index
      %13 = vector.load %arg4[%c0_12, %c0_13] : memref<1x128xf32, #tpu.memory_space<vmem>>, vector<1x128xf32>
      %14 = vector.broadcast %13 : vector<1x128xf32> to vector<16x128xf32>
      %15 = arith.addf %12, %14 : vector<16x128xf32>
      %c0_14 = arith.constant 0 : index
      %c0_15 = arith.constant 0 : index
      %16 = vector.load %arg5[%c0_14, %c0_15] : memref<16x128xbf16, #tpu.memory_space<vmem>>, vector<16x128xbf16>
      %17 = arith.extf %16 : vector<16x128xbf16> to vector<16x128xf32>
      %18 = arith.addf %15, %17 : vector<16x128xf32>
      %c0_16 = arith.constant 0 : index
      %c0_17 = arith.constant 0 : index
      %19 = vector.load %arg6[%c0_16, %c0_17] : memref<1x128xf32, #tpu.memory_space<vmem>>, vector<1x128xf32>
      %c0_18 = arith.constant 0 : index
      %c0_19 = arith.constant 0 : index
      %20 = vector.load %arg7[%c0_18, %c0_19] : memref<1x128xf32, #tpu.memory_space<vmem>>, vector<1x128xf32>
      %cst_20 = arith.constant dense<0.000000e+00> : vector<16xf32>
      %21 = vector.multi_reduction <add>, %18, %cst_20 [1] : vector<16x128xf32> to vector<16xf32>
      %22 = vector.shape_cast %21 : vector<16xf32> to vector<16x1xf32>
      %23 = arith.mulf %18, %18 : vector<16x128xf32>
      %cst_21 = arith.constant dense<0.000000e+00> : vector<16xf32>
      %24 = vector.multi_reduction <add>, %23, %cst_21 [1] : vector<16x128xf32> to vector<16xf32>
      %25 = vector.shape_cast %24 : vector<16xf32> to vector<16x1xf32>
      %cst_22 = arith.constant 3.125000e-02 : f32
      %26 = vector.broadcast %cst_22 : f32 to vector<16x1xf32>
      %27 = arith.mulf %22, %26 : vector<16x1xf32>
      %cst_23 = arith.constant 3.125000e-02 : f32
      %28 = vector.broadcast %cst_23 : f32 to vector<16x1xf32>
      %29 = arith.mulf %25, %28 : vector<16x1xf32>
      %30 = arith.mulf %27, %27 : vector<16x1xf32>
      %31 = arith.subf %29, %30 : vector<16x1xf32>
      %32 = vector.broadcast %27 : vector<16x1xf32> to vector<16x128xf32>
      %33 = arith.subf %18, %32 : vector<16x128xf32>
      %cst_24 = arith.constant 9.99999974E-6 : f32
      %34 = vector.broadcast %cst_24 : f32 to vector<16x1xf32>
      %35 = arith.addf %31, %34 : vector<16x1xf32>
      %36 = math.rsqrt %35 : vector<16x1xf32>
      %37 = vector.broadcast %36 : vector<16x1xf32> to vector<16x128xf32>
      %38 = arith.mulf %33, %37 : vector<16x128xf32>
      %39 = vector.broadcast %19 : vector<1x128xf32> to vector<16x128xf32>
      %40 = arith.mulf %38, %39 : vector<16x128xf32>
      %41 = vector.broadcast %20 : vector<1x128xf32> to vector<16x128xf32>
      %42 = arith.addf %40, %41 : vector<16x128xf32>
      %43 = arith.truncf %42 : vector<16x128xf32> to vector<16x128xbf16>
      %c0_25 = arith.constant 0 : index
      %c0_26 = arith.constant 0 : index
      %44 = vector.load %arg8[%c0_25, %c0_26] : memref<16x128xbf16, #tpu.memory_space<vmem>>, vector<16x128xbf16>
      tpu.vector_store %arg8[%c0_25, %c0_26], %43 {strides = array<i32>} : memref<16x128xbf16, #tpu.memory_space<vmem>>, vector<16x128xbf16>,
    } else {
    }
    return
  }
  func.func @transform_0(%arg0: i32, %arg1: i32) -> (i32, i32) {
    %c0_i32 = arith.constant 0 : i32
    return %arg0, %arg1 : i32, i32
  }
  func.func @transform_1(%arg0: i32, %arg1: i32) -> (i32, i32) {
    %c0_i32 = arith.constant 0 : i32
    %c0_i32_0 = arith.constant 0 : i32
    return %arg1, %c0_i32 : i32, i32
  }
  func.func @transform_2(%arg0: i32, %arg1: i32) -> (i32, i32) {
    %c0_i32 = arith.constant 0 : i32
    %c0_i32_0 = arith.constant 0 : i32
    %c0_i32_1 = arith.constant 0 : i32
    return %c0_i32, %c0_i32_0 : i32, i32
  }
  func.func @transform_3(%arg0: i32, %arg1: i32) -> (i32, i32) {
    %c0_i32 = arith.constant 0 : i32
    %c0_i32_0 = arith.constant 0 : i32
    return %arg0, %c0_i32 : i32, i32
  }
  func.func @transform_4(%arg0: i32, %arg1: i32) -> (i32, i32) {
    %c0_i32 = arith.constant 0 : i32
    %c0_i32_0 = arith.constant 0 : i32
    %c0_i32_1 = arith.constant 0 : i32
    return %c0_i32, %c0_i32_0 : i32, i32
  }
  func.func @transform_5(%arg0: i32, %arg1: i32) -> (i32, i32) {
    %c0_i32 = arith.constant 0 : i32
    %c0_i32_0 = arith.constant 0 : i32
    %c0_i32_1 = arith.constant 0 : i32
    return %c0_i32, %c0_i32_0 : i32, i32
  }
  func.func @transform_6(%arg0: i32, %arg1: i32) -> (i32, i32) {
    %c0_i32 = arith.constant 0 : i32
    %c0_i32_0 = arith.constant 0 : i32
    return %arg0, %c0_i32 : i32, i32
  }
}

module attributes {stable_mosaic.version = 11 : i64} {
  func.func @_mm_kernel(%arg0: i32, %arg1: i32, %arg2: i32, %arg3: memref<16x32xbf16, #tpu.memory_space<vmem>>, %arg4: memref<32x128xbf16, #tpu.memory_space<vmem>>, %arg5: memref<1x128xf32, #tpu.memory_space<vmem>>, %arg6: memref<16x128xbf16, #tpu.memory_space<vmem>>, %arg7: memref<16x128xf32, #tpu.memory_space<vmem>>) attributes {dimension_semantics = [#tpu.dimension_semantics<parallel>, #tpu.dimension_semantics<parallel>, #tpu.dimension_semantics<arbitrary>], iteration_bounds = array<i64: 2, 1, 1>, scalar_prefetch = 0 : i64, scratch_operands = 1 : i64, tpu.core_type = #tpu.core_type<tc>, window_params = [{transform_indices = @transform_0, window_bounds = array<i64: 16, 32>}, {transform_indices = @transform_1, window_bounds = array<i64: 32, 128>}, {transform_indices = @transform_2, window_bounds = array<i64: 1, 128>}, {transform_indices = @transform_3, window_bounds = array<i64: 16, 128>}]} {
    %c0_i32 = arith.constant 0 : i32
    %0 = arith.cmpi eq, %arg2, %c0_i32 : i32
    %1 = arith.extui %0 : i1 to i32
    %c0_i32_0 = arith.constant 0 : i32
    %2 = arith.cmpi ne, %1, %c0_i32_0 : i32
    scf.if %2 {
      %cst_10 = arith.constant 0.000000e+00 : f32
      %12 = vector.broadcast %cst_10 : f32 to vector<16x128xf32>
      %c0_11 = arith.constant 0 : index
      %c0_12 = arith.constant 0 : index
      %13 = vector.load %arg7[%c0_11, %c0_12] : memref<16x128xf32, #tpu.memory_space<vmem>>, vector<16x128xf32>
      tpu.vector_store %arg7[%c0_11, %c0_12], %12 {strides = array<i32>} : memref<16x128xf32, #tpu.memory_space<vmem>>, vector<16x128xf32>,
    } else {
    }
    %c0 = arith.constant 0 : index
    %c0_1 = arith.constant 0 : index
    %3 = vector.load %arg7[%c0, %c0_1] : memref<16x128xf32, #tpu.memory_space<vmem>>, vector<16x128xf32>
    %c0_2 = arith.constant 0 : index
    %c0_3 = arith.constant 0 : index
    %4 = vector.load %arg3[%c0_2, %c0_3] : memref<16x32xbf16, #tpu.memory_space<vmem>>, vector<16x32xbf16>
    %c0_4 = arith.constant 0 : index
    %c0_5 = arith.constant 0 : index
    %5 = vector.load %arg4[%c0_4, %c0_5] : memref<32x128xbf16, #tpu.memory_space<vmem>>, vector<32x128xbf16>
    %cst = arith.constant dense<0.000000e+00> : vector<16x128xf32>
    %6 = tpu.matmul %4, %5, %cst {dimension_numbers = #tpu.dot_dimension_numbers<[1], [0], [0], [1], [0, 0, 1, 1], [], []>} : vector<16x32xbf16>, vector<32x128xbf16>, vector<16x128xf32> -> vector<16x128xf32>
    %7 = arith.addf %3, %6 : vector<16x128xf32>
    %c0_6 = arith.constant 0 : index
    %c0_7 = arith.constant 0 : index
    %8 = vector.load %arg7[%c0_6, %c0_7] : memref<16x128xf32, #tpu.memory_space<vmem>>, vector<16x128xf32>
    tpu.vector_store %arg7[%c0_6, %c0_7], %7 {strides = array<i32>} : memref<16x128xf32, #tpu.memory_space<vmem>>, vector<16x128xf32>,
    %c0_i32_8 = arith.constant 0 : i32
    %9 = arith.cmpi eq, %arg2, %c0_i32_8 : i32
    %10 = arith.extui %9 : i1 to i32
    %c0_i32_9 = arith.constant 0 : i32
    %11 = arith.cmpi ne, %10, %c0_i32_9 : i32
    scf.if %11 {
      %c0_10 = arith.constant 0 : index
      %c0_11 = arith.constant 0 : index
      %12 = vector.load %arg7[%c0_10, %c0_11] : memref<16x128xf32, #tpu.memory_space<vmem>>, vector<16x128xf32>
      %c0_12 = arith.constant 0 : index
      %c0_13 = arith.constant 0 : index
      %13 = vector.load %arg5[%c0_12, %c0_13] : memref<1x128xf32, #tpu.memory_space<vmem>>, vector<1x128xf32>
      %14 = vector.broadcast %13 : vector<1x128xf32> to vector<16x128xf32>
      %15 = arith.addf %12, %14 : vector<16x128xf32>
      %cst_14 = arith.constant 0.000000e+00 : f32
      %16 = vector.broadcast %cst_14 : f32 to vector<16x128xf32>
      %17 = arith.maximumf %15, %16 : vector<16x128xf32>
      %18 = arith.truncf %17 : vector<16x128xf32> to vector<16x128xbf16>
      %c0_15 = arith.constant 0 : index
      %c0_16 = arith.constant 0 : index
      %19 = vector.load %arg6[%c0_15, %c0_16] : memref<16x128xbf16, #tpu.memory_space<vmem>>, vector<16x128xbf16>
      tpu.vector_store %arg6[%c0_15, %c0_16], %18 {strides = array<i32>} : memref<16x128xbf16, #tpu.memory_space<vmem>>, vector<16x128xbf16>,
    } else {
    }
    return
  }
  func.func @transform_0(%arg0: i32, %arg1: i32, %arg2: i32) -> (i32, i32) {
    %c0_i32 = arith.constant 0 : i32
    return %arg0, %arg2 : i32, i32
  }
  func.func @transform_1(%arg0: i32, %arg1: i32, %arg2: i32) -> (i32, i32) {
    %c0_i32 = arith.constant 0 : i32
    return %arg2, %arg1 : i32, i32
  }
  func.func @transform_2(%arg0: i32, %arg1: i32, %arg2: i32) -> (i32, i32) {
    %c0_i32 = arith.constant 0 : i32
    %c0_i32_0 = arith.constant 0 : i32
    return %c0_i32, %arg1 : i32, i32
  }
  func.func @transform_3(%arg0: i32, %arg1: i32, %arg2: i32) -> (i32, i32) {
    %c0_i32 = arith.constant 0 : i32
    return %arg0, %arg1 : i32, i32
  }
}

module attributes {stable_mosaic.version = 11 : i64} {
  func.func @_attn_kernel(%arg0: i32, %arg1: i32, %arg2: memref<1x16x32xbf16, #tpu.memory_space<vmem>>, %arg3: memref<1x16x32xbf16, #tpu.memory_space<vmem>>, %arg4: memref<1x16x32xbf16, #tpu.memory_space<vmem>>, %arg5: memref<1x16x32xbf16, #tpu.memory_space<vmem>>) attributes {dimension_semantics = [#tpu.dimension_semantics<parallel>, #tpu.dimension_semantics<parallel>], iteration_bounds = array<i64: 2, 1>, scalar_prefetch = 0 : i64, scratch_operands = 0 : i64, tpu.core_type = #tpu.core_type<tc>, window_params = [{transform_indices = @transform_0, window_bounds = array<i64: 1, 16, 32>}, {transform_indices = @transform_1, window_bounds = array<i64: 1, 16, 32>}, {transform_indices = @transform_2, window_bounds = array<i64: 1, 16, 32>}, {transform_indices = @transform_3, window_bounds = array<i64: 1, 16, 32>}]} {
    %c0 = arith.constant 0 : index
    %c0_0 = arith.constant 0 : index
    %c0_1 = arith.constant 0 : index
    %0 = vector.load %arg2[%c0, %c0_0, %c0_1] : memref<1x16x32xbf16, #tpu.memory_space<vmem>>, vector<1x16x8xbf16>
    %1 = vector.shape_cast %0 : vector<1x16x8xbf16> to vector<16x8xbf16>
    %c0_2 = arith.constant 0 : index
    %c0_3 = arith.constant 0 : index
    %c0_4 = arith.constant 0 : index
    %2 = vector.load %arg3[%c0_2, %c0_3, %c0_4] : memref<1x16x32xbf16, #tpu.memory_space<vmem>>, vector<1x16x8xbf16>
    %3 = vector.shape_cast %2 : vector<1x16x8xbf16> to vector<16x8xbf16>
    %c0_5 = arith.constant 0 : index
    %c0_6 = arith.constant 0 : index
    %c0_7 = arith.constant 0 : index
    %4 = vector.load %arg4[%c0_5, %c0_6, %c0_7] : memref<1x16x32xbf16, #tpu.memory_space<vmem>>, vector<1x16x8xbf16>
    %5 = vector.shape_cast %4 : vector<1x16x8xbf16> to vector<16x8xbf16>
    %cst = arith.constant dense<0.000000e+00> : vector<16x16xf32>
    %6 = tpu.matmul %1, %3, %cst {dimension_numbers = #tpu.dot_dimension_numbers<[1], [1], [0], [0], [0, 0, 1, 0], [], []>} : vector<16x8xbf16>, vector<16x8xbf16>, vector<16x16xf32> -> vector<16x16xf32>
    %cst_8 = arith.constant dense<0xFF800000> : vector<16xf32>
    %7 = vector.multi_reduction <maximumf>, %6, %cst_8 [1] : vector<16x16xf32> to vector<16xf32>
    %8 = vector.shape_cast %7 : vector<16xf32> to vector<16x1xf32>
    %9 = vector.broadcast %8 : vector<16x1xf32> to vector<16x16xf32>
    %10 = arith.subf %6, %9 : vector<16x16xf32>
    %11 = math.exp %10 : vector<16x16xf32>
    %cst_9 = arith.constant dense<0.000000e+00> : vector<16xf32>
    %12 = vector.multi_reduction <add>, %11, %cst_9 [1] : vector<16x16xf32> to vector<16xf32>
    %13 = vector.shape_cast %12 : vector<16xf32> to vector<16x1xf32>
    %14 = tpu.reciprocal %13 {approx = true} : vector<16x1xf32> -> vector<16x1xf32>
    %15 = vector.broadcast %14 : vector<16x1xf32> to vector<16x16xf32>
    %16 = arith.mulf %11, %15 : vector<16x16xf32>
    %17 = arith.truncf %16 : vector<16x16xf32> to vector<16x16xbf16>
    %cst_10 = arith.constant dense<0.000000e+00> : vector<16x8xf32>
    %18 = tpu.matmul %17, %5, %cst_10 {dimension_numbers = #tpu.dot_dimension_numbers<[1], [0], [0], [1], [0, 0, 1, 1], [], []>} : vector<16x16xbf16>, vector<16x8xbf16>, vector<16x8xf32> -> vector<16x8xf32>
    %c0_11 = arith.constant 0 : index
    %c0_12 = arith.constant 0 : index
    %c8 = arith.constant 8 : index
    %19 = vector.load %arg2[%c0_11, %c0_12, %c8] : memref<1x16x32xbf16, #tpu.memory_space<vmem>>, vector<1x16x8xbf16>
    %20 = vector.shape_cast %19 : vector<1x16x8xbf16> to vector<16x8xbf16>
    %c0_13 = arith.constant 0 : index
    %c0_14 = arith.constant 0 : index
    %c8_15 = arith.constant 8 : index
    %21 = vector.load %arg3[%c0_13, %c0_14, %c8_15] : memref<1x16x32xbf16, #tpu.memory_space<vmem>>, vector<1x16x8xbf16>
    %22 = vector.shape_cast %21 : vector<1x16x8xbf16> to vector<16x8xbf16>
    %c0_16 = arith.constant 0 : index
    %c0_17 = arith.constant 0 : index
    %c8_18 = arith.constant 8 : index
    %23 = vector.load %arg4[%c0_16, %c0_17, %c8_18] : memref<1x16x32xbf16, #tpu.memory_space<vmem>>, vector<1x16x8xbf16>
    %24 = vector.shape_cast %23 : vector<1x16x8xbf16> to vector<16x8xbf16>
    %cst_19 = arith.constant dense<0.000000e+00> : vector<16x16xf32>
    %25 = tpu.matmul %20, %22, %cst_19 {dimension_numbers = #tpu.dot_dimension_numbers<[1], [1], [0], [0], [0, 0, 1, 0], [], []>} : vector<16x8xbf16>, vector<16x8xbf16>, vector<16x16xf32> -> vector<16x16xf32>
    %cst_20 = arith.constant dense<0xFF800000> : vector<16xf32>
    %26 = vector.multi_reduction <maximumf>, %25, %cst_20 [1] : vector<16x16xf32> to vector<16xf32>
    %27 = vector.shape_cast %26 : vector<16xf32> to vector<16x1xf32>
    %28 = vector.broadcast %27 : vector<16x1xf32> to vector<16x16xf32>
    %29 = arith.subf %25, %28 : vector<16x16xf32>
    %30 = math.exp %29 : vector<16x16xf32>
    %cst_21 = arith.constant dense<0.000000e+00> : vector<16xf32>
    %31 = vector.multi_reduction <add>, %30, %cst_21 [1] : vector<16x16xf32> to vector<16xf32>
    %32 = vector.shape_cast %31 : vector<16xf32> to vector<16x1xf32>
    %33 = tpu.reciprocal %32 {approx = true} : vector<16x1xf32> -> vector<16x1xf32>
    %34 = vector.broadcast %33 : vector<16x1xf32> to vector<16x16xf32>
    %35 = arith.mulf %30, %34 : vector<16x16xf32>
    %36 = arith.truncf %35 : vector<16x16xf32> to vector<16x16xbf16>
    %cst_22 = arith.constant dense<0.000000e+00> : vector<16x8xf32>
    %37 = tpu.matmul %36, %24, %cst_22 {dimension_numbers = #tpu.dot_dimension_numbers<[1], [0], [0], [1], [0, 0, 1, 1], [], []>} : vector<16x16xbf16>, vector<16x8xbf16>, vector<16x8xf32> -> vector<16x8xf32>
    %c0_23 = arith.constant 0 : index
    %c0_24 = arith.constant 0 : index
    %c16 = arith.constant 16 : index
    %38 = vector.load %arg2[%c0_23, %c0_24, %c16] : memref<1x16x32xbf16, #tpu.memory_space<vmem>>, vector<1x16x8xbf16>
    %39 = vector.shape_cast %38 : vector<1x16x8xbf16> to vector<16x8xbf16>
    %c0_25 = arith.constant 0 : index
    %c0_26 = arith.constant 0 : index
    %c16_27 = arith.constant 16 : index
    %40 = vector.load %arg3[%c0_25, %c0_26, %c16_27] : memref<1x16x32xbf16, #tpu.memory_space<vmem>>, vector<1x16x8xbf16>
    %41 = vector.shape_cast %40 : vector<1x16x8xbf16> to vector<16x8xbf16>
    %c0_28 = arith.constant 0 : index
    %c0_29 = arith.constant 0 : index
    %c16_30 = arith.constant 16 : index
    %42 = vector.load %arg4[%c0_28, %c0_29, %c16_30] : memref<1x16x32xbf16, #tpu.memory_space<vmem>>, vector<1x16x8xbf16>
    %43 = vector.shape_cast %42 : vector<1x16x8xbf16> to vector<16x8xbf16>
    %cst_31 = arith.constant dense<0.000000e+00> : vector<16x16xf32>
    %44 = tpu.matmul %39, %41, %cst_31 {dimension_numbers = #tpu.dot_dimension_numbers<[1], [1], [0], [0], [0, 0, 1, 0], [], []>} : vector<16x8xbf16>, vector<16x8xbf16>, vector<16x16xf32> -> vector<16x16xf32>
    %cst_32 = arith.constant dense<0xFF800000> : vector<16xf32>
    %45 = vector.multi_reduction <maximumf>, %44, %cst_32 [1] : vector<16x16xf32> to vector<16xf32>
    %46 = vector.shape_cast %45 : vector<16xf32> to vector<16x1xf32>
    %47 = vector.broadcast %46 : vector<16x1xf32> to vector<16x16xf32>
    %48 = arith.subf %44, %47 : vector<16x16xf32>
    %49 = math.exp %48 : vector<16x16xf32>
    %cst_33 = arith.constant dense<0.000000e+00> : vector<16xf32>
    %50 = vector.multi_reduction <add>, %49, %cst_33 [1] : vector<16x16xf32> to vector<16xf32>
    %51 = vector.shape_cast %50 : vector<16xf32> to vector<16x1xf32>
    %52 = tpu.reciprocal %51 {approx = true} : vector<16x1xf32> -> vector<16x1xf32>
    %53 = vector.broadcast %52 : vector<16x1xf32> to vector<16x16xf32>
    %54 = arith.mulf %49, %53 : vector<16x16xf32>
    %55 = arith.truncf %54 : vector<16x16xf32> to vector<16x16xbf16>
    %cst_34 = arith.constant dense<0.000000e+00> : vector<16x8xf32>
    %56 = tpu.matmul %55, %43, %cst_34 {dimension_numbers = #tpu.dot_dimension_numbers<[1], [0], [0], [1], [0, 0, 1, 1], [], []>} : vector<16x16xbf16>, vector<16x8xbf16>, vector<16x8xf32> -> vector<16x8xf32>
    %c0_35 = arith.constant 0 : index
    %c0_36 = arith.constant 0 : index
    %c24 = arith.constant 24 : index
    %57 = vector.load %arg2[%c0_35, %c0_36, %c24] : memref<1x16x32xbf16, #tpu.memory_space<vmem>>, vector<1x16x8xbf16>
    %58 = vector.shape_cast %57 : vector<1x16x8xbf16> to vector<16x8xbf16>
    %c0_37 = arith.constant 0 : index
    %c0_38 = arith.constant 0 : index
    %c24_39 = arith.constant 24 : index
    %59 = vector.load %arg3[%c0_37, %c0_38, %c24_39] : memref<1x16x32xbf16, #tpu.memory_space<vmem>>, vector<1x16x8xbf16>
    %60 = vector.shape_cast %59 : vector<1x16x8xbf16> to vector<16x8xbf16>
    %c0_40 = arith.constant 0 : index
    %c0_41 = arith.constant 0 : index
    %c24_42 = arith.constant 24 : index
    %61 = vector.load %arg4[%c0_40, %c0_41, %c24_42] : memref<1x16x32xbf16, #tpu.memory_space<vmem>>, vector<1x16x8xbf16>
    %62 = vector.shape_cast %61 : vector<1x16x8xbf16> to vector<16x8xbf16>
    %cst_43 = arith.constant dense<0.000000e+00> : vector<16x16xf32>
    %63 = tpu.matmul %58, %60, %cst_43 {dimension_numbers = #tpu.dot_dimension_numbers<[1], [1], [0], [0], [0, 0, 1, 0], [], []>} : vector<16x8xbf16>, vector<16x8xbf16>, vector<16x16xf32> -> vector<16x16xf32>
    %cst_44 = arith.constant dense<0xFF800000> : vector<16xf32>
    %64 = vector.multi_reduction <maximumf>, %63, %cst_44 [1] : vector<16x16xf32> to vector<16xf32>
    %65 = vector.shape_cast %64 : vector<16xf32> to vector<16x1xf32>
    %66 = vector.broadcast %65 : vector<16x1xf32> to vector<16x16xf32>
    %67 = arith.subf %63, %66 : vector<16x16xf32>
    %68 = math.exp %67 : vector<16x16xf32>
    %cst_45 = arith.constant dense<0.000000e+00> : vector<16xf32>
    %69 = vector.multi_reduction <add>, %68, %cst_45 [1] : vector<16x16xf32> to vector<16xf32>
    %70 = vector.shape_cast %69 : vector<16xf32> to vector<16x1xf32>
    %71 = tpu.reciprocal %70 {approx = true} : vector<16x1xf32> -> vector<16x1xf32>
    %72 = vector.broadcast %71 : vector<16x1xf32> to vector<16x16xf32>
    %73 = arith.mulf %68, %72 : vector<16x16xf32>
    %74 = arith.truncf %73 : vector<16x16xf32> to vector<16x16xbf16>
    %cst_46 = arith.constant dense<0.000000e+00> : vector<16x8xf32>
    %75 = tpu.matmul %74, %62, %cst_46 {dimension_numbers = #tpu.dot_dimension_numbers<[1], [0], [0], [1], [0, 0, 1, 1], [], []>} : vector<16x16xbf16>, vector<16x8xbf16>, vector<16x8xf32> -> vector<16x8xf32>
    %76 = tpu.concatenate %18, %37, %56, %75 in 1 : vector<16x8xf32>, vector<16x8xf32>, vector<16x8xf32>, vector<16x8xf32> -> vector<16x32xf32>
    %77 = arith.truncf %76 : vector<16x32xf32> to vector<16x32xbf16>
    %c0_47 = arith.constant 0 : index
    %c0_48 = arith.constant 0 : index
    %c0_49 = arith.constant 0 : index
    %78 = vector.load %arg5[%c0_47, %c0_48, %c0_49] : memref<1x16x32xbf16, #tpu.memory_space<vmem>>, vector<1x16x32xbf16>
    %79 = vector.shape_cast %78 : vector<1x16x32xbf16> to vector<16x32xbf16>
    %80 = vector.shape_cast %77 : vector<16x32xbf16> to vector<1x16x32xbf16>
    tpu.vector_store %arg5[%c0_47, %c0_48, %c0_49], %80 {strides = array<i32>} : memref<1x16x32xbf16, #tpu.memory_space<vmem>>, vector<1x16x32xbf16>,
    return
  }
  func.func @transform_0(%arg0: i32, %arg1: i32) -> (i32, i32, i32) {
    %c0_i32 = arith.constant 0 : i32
    %c0_i32_0 = arith.constant 0 : i32
    return %arg0, %arg1, %c0_i32 : i32, i32, i32
  }
  func.func @transform_1(%arg0: i32, %arg1: i32) -> (i32, i32, i32) {
    %c0_i32 = arith.constant 0 : i32
    %c0_i32_0 = arith.constant 0 : i32
    %c0_i32_1 = arith.constant 0 : i32
    return %arg0, %c0_i32, %c0_i32_0 : i32, i32, i32
  }
  func.func @transform_2(%arg0: i32, %arg1: i32) -> (i32, i32, i32) {
    %c0_i32 = arith.constant 0 : i32
    %c0_i32_0 = arith.constant 0 : i32
    %c0_i32_1 = arith.constant 0 : i32
    return %arg0, %c0_i32, %c0_i32_0 : i32, i32, i32
  }
  func.func @transform_3(%arg0: i32, %arg1: i32) -> (i32, i32, i32) {
    %c0_i32 = arith.constant 0 : i32
    %c0_i32_0 = arith.constant 0 : i32
    return %arg0, %arg1, %c0_i32 : i32, i32, i32
  }
}

module attributes {stable_mosaic.version = 11 : i64} {
  func.func @_mm_add_kernel(%arg0: i32, %arg1: i32, %arg2: i32, %arg3: memref<8x32xbf16, #tpu.memory_space<vmem>>, %arg4: memref<8x32xbf16, #tpu.memory_space<vmem>>, %arg5: memref<32x128xbf16, #tpu.memory_space<vmem>>, %arg6: memref<1x128xf32, #tpu.memory_space<vmem>>, %arg7: memref<8x128xbf16, #tpu.memory_space<vmem>>, %arg8: memref<8x128xf32, #tpu.memory_space<vmem>>) attributes {dimension_semantics = [#tpu.dimension_semantics<parallel>, #tpu.dimension_semantics<parallel>, #tpu.dimension_semantics<arbitrary>], iteration_bounds = array<i64: 2, 1, 1>, scalar_prefetch = 0 : i64, scratch_operands = 1 : i64, tpu.core_type = #tpu.core_type<tc>, window_params = [{transform_indices = @transform_0, window_bounds = array<i64: 8, 32>}, {transform_indices = @transform_1, window_bounds = array<i64: 8, 32>}, {transform_indices = @transform_2, window_bounds = array<i64: 32, 128>}, {transform_indices = @transform_3, window_bounds = array<i64: 1, 128>}, {transform_indices = @transform_4, window_bounds = array<i64: 8, 128>}]} {
    %c0_i32 = arith.constant 0 : i32
    %0 = arith.cmpi eq, %arg2, %c0_i32 : i32
    %1 = arith.extui %0 : i1 to i32
    %c0_i32_0 = arith.constant 0 : i32
    %2 = arith.cmpi ne, %1, %c0_i32_0 : i32
    scf.if %2 {
      %cst_12 = arith.constant 0.000000e+00 : f32
      %14 = vector.broadcast %cst_12 : f32 to vector<8x128xf32>
      %c0_13 = arith.constant 0 : index
      %c0_14 = arith.constant 0 : index
      %15 = vector.load %arg8[%c0_13, %c0_14] : memref<8x128xf32, #tpu.memory_space<vmem>>, vector<8x128xf32>
      tpu.vector_store %arg8[%c0_13, %c0_14], %14 {strides = array<i32>} : memref<8x128xf32, #tpu.memory_space<vmem>>, vector<8x128xf32>,
    } else {
    }
    %c0 = arith.constant 0 : index
    %c0_1 = arith.constant 0 : index
    %3 = vector.load %arg8[%c0, %c0_1] : memref<8x128xf32, #tpu.memory_space<vmem>>, vector<8x128xf32>
    %c0_2 = arith.constant 0 : index
    %c0_3 = arith.constant 0 : index
    %4 = vector.load %arg3[%c0_2, %c0_3] : memref<8x32xbf16, #tpu.memory_space<vmem>>, vector<8x32xbf16>
    %c0_4 = arith.constant 0 : index
    %c0_5 = arith.constant 0 : index
    %5 = vector.load %arg4[%c0_4, %c0_5] : memref<8x32xbf16, #tpu.memory_space<vmem>>, vector<8x32xbf16>
    %6 = arith.addf %4, %5 : vector<8x32xbf16>
    %c0_6 = arith.constant 0 : index
    %c0_7 = arith.constant 0 : index
    %7 = vector.load %arg5[%c0_6, %c0_7] : memref<32x128xbf16, #tpu.memory_space<vmem>>, vector<32x128xbf16>
    %cst = arith.constant dense<0.000000e+00> : vector<8x128xf32>
    %8 = tpu.matmul %6, %7, %cst {dimension_numbers = #tpu.dot_dimension_numbers<[1], [0], [0], [1], [0, 0, 1, 1], [], []>} : vector<8x32xbf16>, vector<32x128xbf16>, vector<8x128xf32> -> vector<8x128xf32>
    %9 = arith.addf %3, %8 : vector<8x128xf32>
    %c0_8 = arith.constant 0 : index
    %c0_9 = arith.constant 0 : index
    %10 = vector.load %arg8[%c0_8, %c0_9] : memref<8x128xf32, #tpu.memory_space<vmem>>, vector<8x128xf32>
    tpu.vector_store %arg8[%c0_8, %c0_9], %9 {strides = array<i32>} : memref<8x128xf32, #tpu.memory_space<vmem>>, vector<8x128xf32>,
    %c0_i32_10 = arith.constant 0 : i32
    %11 = arith.cmpi eq, %arg2, %c0_i32_10 : i32
    %12 = arith.extui %11 : i1 to i32
    %c0_i32_11 = arith.constant 0 : i32
    %13 = arith.cmpi ne, %12, %c0_i32_11 : i32
    scf.if %13 {
      %c0_12 = arith.constant 0 : index
      %c0_13 = arith.constant 0 : index
      %14 = vector.load %arg8[%c0_12, %c0_13] : memref<8x128xf32, #tpu.memory_space<vmem>>, vector<8x128xf32>
      %c0_14 = arith.constant 0 : index
      %c0_15 = arith.constant 0 : index
      %15 = vector.load %arg6[%c0_14, %c0_15] : memref<1x128xf32, #tpu.memory_space<vmem>>, vector<1x128xf32>
      %16 = vector.broadcast %15 : vector<1x128xf32> to vector<8x128xf32>
      %17 = arith.addf %14, %16 : vector<8x128xf32>
      %18 = arith.truncf %17 : vector<8x128xf32> to vector<8x128xbf16>
      %c0_16 = arith.constant 0 : index
      %c0_17 = arith.constant 0 : index
      %19 = vector.load %arg7[%c0_16, %c0_17] : memref<8x128xbf16, #tpu.memory_space<vmem>>, vector<8x128xbf16>
      tpu.vector_store %arg7[%c0_16, %c0_17], %18 {strides = array<i32>} : memref<8x128xbf16, #tpu.memory_space<vmem>>, vector<8x128xbf16>,
    } else {
    }
    return
  }
  func.func @transform_0(%arg0: i32, %arg1: i32, %arg2: i32) -> (i32, i32) {
    %c0_i32 = arith.constant 0 : i32
    return %arg0, %arg2 : i32, i32
  }
  func.func @transform_1(%arg0: i32, %arg1: i32, %arg2: i32) -> (i32, i32) {
    %c0_i32 = arith.constant 0 : i32
    return %arg0, %arg2 : i32, i32
  }
  func.func @transform_2(%arg0: i32, %arg1: i32, %arg2: i32) -> (i32, i32) {
    %c0_i32 = arith.constant 0 : i32
    return %arg2, %arg1 : i32, i32
  }
  func.func @transform_3(%arg0: i32, %arg1: i32, %arg2: i32) -> (i32, i32) {
    %c0_i32 = arith.constant 0 : i32
    %c0_i32_0 = arith.constant 0 : i32
    return %c0_i32, %arg1 : i32, i32
  }
  func.func @transform_4(%arg0: i32, %arg1: i32, %arg2: i32) -> (i32, i32) {
    %c0_i32 = arith.constant 0 : i32
    return %arg0, %arg1 : i32, i32
  }
}

module attributes {stable_mosaic.version = 11 : i64} {
  func.func @_attn_kernel(%arg0: i32, %arg1: i32, %arg2: memref<1x8x32xbf16, #tpu.memory_space<vmem>>, %arg3: memref<1x8x32xbf16, #tpu.memory_space<vmem>>, %arg4: memref<1x8x32xbf16, #tpu.memory_space<vmem>>, %arg5: memref<1x8x32xbf16, #tpu.memory_space<vmem>>) attributes {dimension_semantics = [#tpu.dimension_semantics<parallel>, #tpu.dimension_semantics<parallel>], iteration_bounds = array<i64: 2, 1>, scalar_prefetch = 0 : i64, scratch_operands = 0 : i64, tpu.core_type = #tpu.core_type<tc>, window_params = [{transform_indices = @transform_0, window_bounds = array<i64: 1, 8, 32>}, {transform_indices = @transform_1, window_bounds = array<i64: 1, 8, 32>}, {transform_indices = @transform_2, window_bounds = array<i64: 1, 8, 32>}, {transform_indices = @transform_3, window_bounds = array<i64: 1, 8, 32>}]} {
    %c0 = arith.constant 0 : index
    %c0_0 = arith.constant 0 : index
    %c0_1 = arith.constant 0 : index
    %0 = vector.load %arg2[%c0, %c0_0, %c0_1] : memref<1x8x32xbf16, #tpu.memory_space<vmem>>, vector<1x8x8xbf16>
    %1 = vector.shape_cast %0 : vector<1x8x8xbf16> to vector<8x8xbf16>
    %c0_2 = arith.constant 0 : index
    %c0_3 = arith.constant 0 : index
    %c0_4 = arith.constant 0 : index
    %2 = vector.load %arg3[%c0_2, %c0_3, %c0_4] : memref<1x8x32xbf16, #tpu.memory_space<vmem>>, vector<1x8x8xbf16>
    %3 = vector.shape_cast %2 : vector<1x8x8xbf16> to vector<8x8xbf16>
    %c0_5 = arith.constant 0 : index
    %c0_6 = arith.constant 0 : index
    %c0_7 = arith.constant 0 : index
    %4 = vector.load %arg4[%c0_5, %c0_6, %c0_7] : memref<1x8x32xbf16, #tpu.memory_space<vmem>>, vector<1x8x8xbf16>
    %5 = vector.shape_cast %4 : vector<1x8x8xbf16> to vector<8x8xbf16>
    %cst = arith.constant dense<0.000000e+00> : vector<8x8xf32>
    %6 = tpu.matmul %1, %3, %cst {dimension_numbers = #tpu.dot_dimension_numbers<[1], [1], [0], [0], [0, 0, 1, 0], [], []>} : vector<8x8xbf16>, vector<8x8xbf16>, vector<8x8xf32> -> vector<8x8xf32>
    %cst_8 = arith.constant dense<0xFF800000> : vector<8xf32>
    %7 = vector.multi_reduction <maximumf>, %6, %cst_8 [1] : vector<8x8xf32> to vector<8xf32>
    %8 = vector.shape_cast %7 : vector<8xf32> to vector<8x1xf32>
    %9 = vector.broadcast %8 : vector<8x1xf32> to vector<8x8xf32>
    %10 = arith.subf %6, %9 : vector<8x8xf32>
    %11 = math.exp %10 : vector<8x8xf32>
    %cst_9 = arith.constant dense<0.000000e+00> : vector<8xf32>
    %12 = vector.multi_reduction <add>, %11, %cst_9 [1] : vector<8x8xf32> to vector<8xf32>
    %13 = vector.shape_cast %12 : vector<8xf32> to vector<8x1xf32>
    %14 = tpu.reciprocal %13 {approx = true} : vector<8x1xf32> -> vector<8x1xf32>
    %15 = vector.broadcast %14 : vector<8x1xf32> to vector<8x8xf32>
    %16 = arith.mulf %11, %15 : vector<8x8xf32>
    %17 = arith.truncf %16 : vector<8x8xf32> to vector<8x8xbf16>
    %cst_10 = arith.constant dense<0.000000e+00> : vector<8x8xf32>
    %18 = tpu.matmul %17, %5, %cst_10 {dimension_numbers = #tpu.dot_dimension_numbers<[1], [0], [0], [1], [0, 0, 1, 1], [], []>} : vector<8x8xbf16>, vector<8x8xbf16>, vector<8x8xf32> -> vector<8x8xf32>
    %c0_11 = arith.constant 0 : index
    %c0_12 = arith.constant 0 : index
    %c8 = arith.constant 8 : index
    %19 = vector.load %arg2[%c0_11, %c0_12, %c8] : memref<1x8x32xbf16, #tpu.memory_space<vmem>>, vector<1x8x8xbf16>
    %20 = vector.shape_cast %19 : vector<1x8x8xbf16> to vector<8x8xbf16>
    %c0_13 = arith.constant 0 : index
    %c0_14 = arith.constant 0 : index
    %c8_15 = arith.constant 8 : index
    %21 = vector.load %arg3[%c0_13, %c0_14, %c8_15] : memref<1x8x32xbf16, #tpu.memory_space<vmem>>, vector<1x8x8xbf16>
    %22 = vector.shape_cast %21 : vector<1x8x8xbf16> to vector<8x8xbf16>
    %c0_16 = arith.constant 0 : index
    %c0_17 = arith.constant 0 : index
    %c8_18 = arith.constant 8 : index
    %23 = vector.load %arg4[%c0_16, %c0_17, %c8_18] : memref<1x8x32xbf16, #tpu.memory_space<vmem>>, vector<1x8x8xbf16>
    %24 = vector.shape_cast %23 : vector<1x8x8xbf16> to vector<8x8xbf16>
    %cst_19 = arith.constant dense<0.000000e+00> : vector<8x8xf32>
    %25 = tpu.matmul %20, %22, %cst_19 {dimension_numbers = #tpu.dot_dimension_numbers<[1], [1], [0], [0], [0, 0, 1, 0], [], []>} : vector<8x8xbf16>, vector<8x8xbf16>, vector<8x8xf32> -> vector<8x8xf32>
    %cst_20 = arith.constant dense<0xFF800000> : vector<8xf32>
    %26 = vector.multi_reduction <maximumf>, %25, %cst_20 [1] : vector<8x8xf32> to vector<8xf32>
    %27 = vector.shape_cast %26 : vector<8xf32> to vector<8x1xf32>
    %28 = vector.broadcast %27 : vector<8x1xf32> to vector<8x8xf32>
    %29 = arith.subf %25, %28 : vector<8x8xf32>
    %30 = math.exp %29 : vector<8x8xf32>
    %cst_21 = arith.constant dense<0.000000e+00> : vector<8xf32>
    %31 = vector.multi_reduction <add>, %30, %cst_21 [1] : vector<8x8xf32> to vector<8xf32>
    %32 = vector.shape_cast %31 : vector<8xf32> to vector<8x1xf32>
    %33 = tpu.reciprocal %32 {approx = true} : vector<8x1xf32> -> vector<8x1xf32>
    %34 = vector.broadcast %33 : vector<8x1xf32> to vector<8x8xf32>
    %35 = arith.mulf %30, %34 : vector<8x8xf32>
    %36 = arith.truncf %35 : vector<8x8xf32> to vector<8x8xbf16>
    %cst_22 = arith.constant dense<0.000000e+00> : vector<8x8xf32>
    %37 = tpu.matmul %36, %24, %cst_22 {dimension_numbers = #tpu.dot_dimension_numbers<[1], [0], [0], [1], [0, 0, 1, 1], [], []>} : vector<8x8xbf16>, vector<8x8xbf16>, vector<8x8xf32> -> vector<8x8xf32>
    %c0_23 = arith.constant 0 : index
    %c0_24 = arith.constant 0 : index
    %c16 = arith.constant 16 : index
    %38 = vector.load %arg2[%c0_23, %c0_24, %c16] : memref<1x8x32xbf16, #tpu.memory_space<vmem>>, vector<1x8x8xbf16>
    %39 = vector.shape_cast %38 : vector<1x8x8xbf16> to vector<8x8xbf16>
    %c0_25 = arith.constant 0 : index
    %c0_26 = arith.constant 0 : index
    %c16_27 = arith.constant 16 : index
    %40 = vector.load %arg3[%c0_25, %c0_26, %c16_27] : memref<1x8x32xbf16, #tpu.memory_space<vmem>>, vector<1x8x8xbf16>
    %41 = vector.shape_cast %40 : vector<1x8x8xbf16> to vector<8x8xbf16>
    %c0_28 = arith.constant 0 : index
    %c0_29 = arith.constant 0 : index
    %c16_30 = arith.constant 16 : index
    %42 = vector.load %arg4[%c0_28, %c0_29, %c16_30] : memref<1x8x32xbf16, #tpu.memory_space<vmem>>, vector<1x8x8xbf16>
    %43 = vector.shape_cast %42 : vector<1x8x8xbf16> to vector<8x8xbf16>
    %cst_31 = arith.constant dense<0.000000e+00> : vector<8x8xf32>
    %44 = tpu.matmul %39, %41, %cst_31 {dimension_numbers = #tpu.dot_dimension_numbers<[1], [1], [0], [0], [0, 0, 1, 0], [], []>} : vector<8x8xbf16>, vector<8x8xbf16>, vector<8x8xf32> -> vector<8x8xf32>
    %cst_32 = arith.constant dense<0xFF800000> : vector<8xf32>
    %45 = vector.multi_reduction <maximumf>, %44, %cst_32 [1] : vector<8x8xf32> to vector<8xf32>
    %46 = vector.shape_cast %45 : vector<8xf32> to vector<8x1xf32>
    %47 = vector.broadcast %46 : vector<8x1xf32> to vector<8x8xf32>
    %48 = arith.subf %44, %47 : vector<8x8xf32>
    %49 = math.exp %48 : vector<8x8xf32>
    %cst_33 = arith.constant dense<0.000000e+00> : vector<8xf32>
    %50 = vector.multi_reduction <add>, %49, %cst_33 [1] : vector<8x8xf32> to vector<8xf32>
    %51 = vector.shape_cast %50 : vector<8xf32> to vector<8x1xf32>
    %52 = tpu.reciprocal %51 {approx = true} : vector<8x1xf32> -> vector<8x1xf32>
    %53 = vector.broadcast %52 : vector<8x1xf32> to vector<8x8xf32>
    %54 = arith.mulf %49, %53 : vector<8x8xf32>
    %55 = arith.truncf %54 : vector<8x8xf32> to vector<8x8xbf16>
    %cst_34 = arith.constant dense<0.000000e+00> : vector<8x8xf32>
    %56 = tpu.matmul %55, %43, %cst_34 {dimension_numbers = #tpu.dot_dimension_numbers<[1], [0], [0], [1], [0, 0, 1, 1], [], []>} : vector<8x8xbf16>, vector<8x8xbf16>, vector<8x8xf32> -> vector<8x8xf32>
    %c0_35 = arith.constant 0 : index
    %c0_36 = arith.constant 0 : index
    %c24 = arith.constant 24 : index
    %57 = vector.load %arg2[%c0_35, %c0_36, %c24] : memref<1x8x32xbf16, #tpu.memory_space<vmem>>, vector<1x8x8xbf16>
    %58 = vector.shape_cast %57 : vector<1x8x8xbf16> to vector<8x8xbf16>
    %c0_37 = arith.constant 0 : index
    %c0_38 = arith.constant 0 : index
    %c24_39 = arith.constant 24 : index
    %59 = vector.load %arg3[%c0_37, %c0_38, %c24_39] : memref<1x8x32xbf16, #tpu.memory_space<vmem>>, vector<1x8x8xbf16>
    %60 = vector.shape_cast %59 : vector<1x8x8xbf16> to vector<8x8xbf16>
    %c0_40 = arith.constant 0 : index
    %c0_41 = arith.constant 0 : index
    %c24_42 = arith.constant 24 : index
    %61 = vector.load %arg4[%c0_40, %c0_41, %c24_42] : memref<1x8x32xbf16, #tpu.memory_space<vmem>>, vector<1x8x8xbf16>
    %62 = vector.shape_cast %61 : vector<1x8x8xbf16> to vector<8x8xbf16>
    %cst_43 = arith.constant dense<0.000000e+00> : vector<8x8xf32>
    %63 = tpu.matmul %58, %60, %cst_43 {dimension_numbers = #tpu.dot_dimension_numbers<[1], [1], [0], [0], [0, 0, 1, 0], [], []>} : vector<8x8xbf16>, vector<8x8xbf16>, vector<8x8xf32> -> vector<8x8xf32>
    %cst_44 = arith.constant dense<0xFF800000> : vector<8xf32>
    %64 = vector.multi_reduction <maximumf>, %63, %cst_44 [1] : vector<8x8xf32> to vector<8xf32>
    %65 = vector.shape_cast %64 : vector<8xf32> to vector<8x1xf32>
    %66 = vector.broadcast %65 : vector<8x1xf32> to vector<8x8xf32>
    %67 = arith.subf %63, %66 : vector<8x8xf32>
    %68 = math.exp %67 : vector<8x8xf32>
    %cst_45 = arith.constant dense<0.000000e+00> : vector<8xf32>
    %69 = vector.multi_reduction <add>, %68, %cst_45 [1] : vector<8x8xf32> to vector<8xf32>
    %70 = vector.shape_cast %69 : vector<8xf32> to vector<8x1xf32>
    %71 = tpu.reciprocal %70 {approx = true} : vector<8x1xf32> -> vector<8x1xf32>
    %72 = vector.broadcast %71 : vector<8x1xf32> to vector<8x8xf32>
    %73 = arith.mulf %68, %72 : vector<8x8xf32>
    %74 = arith.truncf %73 : vector<8x8xf32> to vector<8x8xbf16>
    %cst_46 = arith.constant dense<0.000000e+00> : vector<8x8xf32>
    %75 = tpu.matmul %74, %62, %cst_46 {dimension_numbers = #tpu.dot_dimension_numbers<[1], [0], [0], [1], [0, 0, 1, 1], [], []>} : vector<8x8xbf16>, vector<8x8xbf16>, vector<8x8xf32> -> vector<8x8xf32>
    %76 = tpu.concatenate %18, %37, %56, %75 in 1 : vector<8x8xf32>, vector<8x8xf32>, vector<8x8xf32>, vector<8x8xf32> -> vector<8x32xf32>
    %77 = arith.truncf %76 : vector<8x32xf32> to vector<8x32xbf16>
    %c0_47 = arith.constant 0 : index
    %c0_48 = arith.constant 0 : index
    %c0_49 = arith.constant 0 : index
    %78 = vector.load %arg5[%c0_47, %c0_48, %c0_49] : memref<1x8x32xbf16, #tpu.memory_space<vmem>>, vector<1x8x32xbf16>
    %79 = vector.shape_cast %78 : vector<1x8x32xbf16> to vector<8x32xbf16>
    %80 = vector.shape_cast %77 : vector<8x32xbf16> to vector<1x8x32xbf16>
    tpu.vector_store %arg5[%c0_47, %c0_48, %c0_49], %80 {strides = array<i32>} : memref<1x8x32xbf16, #tpu.memory_space<vmem>>, vector<1x8x32xbf16>,
    return
  }
  func.func @transform_0(%arg0: i32, %arg1: i32) -> (i32, i32, i32) {
    %c0_i32 = arith.constant 0 : i32
    %c0_i32_0 = arith.constant 0 : i32
    return %arg0, %arg1, %c0_i32 : i32, i32, i32
  }
  func.func @transform_1(%arg0: i32, %arg1: i32) -> (i32, i32, i32) {
    %c0_i32 = arith.constant 0 : i32
    %c0_i32_0 = arith.constant 0 : i32
    %c0_i32_1 = arith.constant 0 : i32
    return %arg0, %c0_i32, %c0_i32_0 : i32, i32, i32
  }
  func.func @transform_2(%arg0: i32, %arg1: i32) -> (i32, i32, i32) {
    %c0_i32 = arith.constant 0 : i32
    %c0_i32_0 = arith.constant 0 : i32
    %c0_i32_1 = arith.constant 0 : i32
    return %arg0, %c0_i32, %c0_i32_0 : i32, i32, i32
  }
  func.func @transform_3(%arg0: i32, %arg1: i32) -> (i32, i32, i32) {
    %c0_i32 = arith.constant 0 : i32
    %c0_i32_0 = arith.constant 0 : i32
    return %arg0, %arg1, %c0_i32 : i32, i32, i32
  }
}

module attributes {stable_mosaic.version = 11 : i64} {
  func.func @_mm_kernel(%arg0: i32, %arg1: i32, %arg2: i32, %arg3: memref<8x32xbf16, #tpu.memory_space<vmem>>, %arg4: memref<32x128xbf16, #tpu.memory_space<vmem>>, %arg5: memref<1x128xf32, #tpu.memory_space<vmem>>, %arg6: memref<8x128xbf16, #tpu.memory_space<vmem>>, %arg7: memref<8x128xf32, #tpu.memory_space<vmem>>) attributes {dimension_semantics = [#tpu.dimension_semantics<parallel>, #tpu.dimension_semantics<parallel>, #tpu.dimension_semantics<arbitrary>], iteration_bounds = array<i64: 2, 1, 1>, scalar_prefetch = 0 : i64, scratch_operands = 1 : i64, tpu.core_type = #tpu.core_type<tc>, window_params = [{transform_indices = @transform_0, window_bounds = array<i64: 8, 32>}, {transform_indices = @transform_1, window_bounds = array<i64: 32, 128>}, {transform_indices = @transform_2, window_bounds = array<i64: 1, 128>}, {transform_indices = @transform_3, window_bounds = array<i64: 8, 128>}]} {
    %c0_i32 = arith.constant 0 : i32
    %0 = arith.cmpi eq, %arg2, %c0_i32 : i32
    %1 = arith.extui %0 : i1 to i32
    %c0_i32_0 = arith.constant 0 : i32
    %2 = arith.cmpi ne, %1, %c0_i32_0 : i32
    scf.if %2 {
      %cst_10 = arith.constant 0.000000e+00 : f32
      %12 = vector.broadcast %cst_10 : f32 to vector<8x128xf32>
      %c0_11 = arith.constant 0 : index
      %c0_12 = arith.constant 0 : index
      %13 = vector.load %arg7[%c0_11, %c0_12] : memref<8x128xf32, #tpu.memory_space<vmem>>, vector<8x128xf32>
      tpu.vector_store %arg7[%c0_11, %c0_12], %12 {strides = array<i32>} : memref<8x128xf32, #tpu.memory_space<vmem>>, vector<8x128xf32>,
    } else {
    }
    %c0 = arith.constant 0 : index
    %c0_1 = arith.constant 0 : index
    %3 = vector.load %arg7[%c0, %c0_1] : memref<8x128xf32, #tpu.memory_space<vmem>>, vector<8x128xf32>
    %c0_2 = arith.constant 0 : index
    %c0_3 = arith.constant 0 : index
    %4 = vector.load %arg3[%c0_2, %c0_3] : memref<8x32xbf16, #tpu.memory_space<vmem>>, vector<8x32xbf16>
    %c0_4 = arith.constant 0 : index
    %c0_5 = arith.constant 0 : index
    %5 = vector.load %arg4[%c0_4, %c0_5] : memref<32x128xbf16, #tpu.memory_space<vmem>>, vector<32x128xbf16>
    %cst = arith.constant dense<0.000000e+00> : vector<8x128xf32>
    %6 = tpu.matmul %4, %5, %cst {dimension_numbers = #tpu.dot_dimension_numbers<[1], [0], [0], [1], [0, 0, 1, 1], [], []>} : vector<8x32xbf16>, vector<32x128xbf16>, vector<8x128xf32> -> vector<8x128xf32>
    %7 = arith.addf %3, %6 : vector<8x128xf32>
    %c0_6 = arith.constant 0 : index
    %c0_7 = arith.constant 0 : index
    %8 = vector.load %arg7[%c0_6, %c0_7] : memref<8x128xf32, #tpu.memory_space<vmem>>, vector<8x128xf32>
    tpu.vector_store %arg7[%c0_6, %c0_7], %7 {strides = array<i32>} : memref<8x128xf32, #tpu.memory_space<vmem>>, vector<8x128xf32>,
    %c0_i32_8 = arith.constant 0 : i32
    %9 = arith.cmpi eq, %arg2, %c0_i32_8 : i32
    %10 = arith.extui %9 : i1 to i32
    %c0_i32_9 = arith.constant 0 : i32
    %11 = arith.cmpi ne, %10, %c0_i32_9 : i32
    scf.if %11 {
      %c0_10 = arith.constant 0 : index
      %c0_11 = arith.constant 0 : index
      %12 = vector.load %arg7[%c0_10, %c0_11] : memref<8x128xf32, #tpu.memory_space<vmem>>, vector<8x128xf32>
      %c0_12 = arith.constant 0 : index
      %c0_13 = arith.constant 0 : index
      %13 = vector.load %arg5[%c0_12, %c0_13] : memref<1x128xf32, #tpu.memory_space<vmem>>, vector<1x128xf32>
      %14 = vector.broadcast %13 : vector<1x128xf32> to vector<8x128xf32>
      %15 = arith.addf %12, %14 : vector<8x128xf32>
      %16 = arith.truncf %15 : vector<8x128xf32> to vector<8x128xbf16>
      %c0_14 = arith.constant 0 : index
      %c0_15 = arith.constant 0 : index
      %17 = vector.load %arg6[%c0_14, %c0_15] : memref<8x128xbf16, #tpu.memory_space<vmem>>, vector<8x128xbf16>
      tpu.vector_store %arg6[%c0_14, %c0_15], %16 {strides = array<i32>} : memref<8x128xbf16, #tpu.memory_space<vmem>>, vector<8x128xbf16>,
    } else {
    }
    return
  }
  func.func @transform_0(%arg0: i32, %arg1: i32, %arg2: i32) -> (i32, i32) {
    %c0_i32 = arith.constant 0 : i32
    return %arg0, %arg2 : i32, i32
  }
  func.func @transform_1(%arg0: i32, %arg1: i32, %arg2: i32) -> (i32, i32) {
    %c0_i32 = arith.constant 0 : i32
    return %arg2, %arg1 : i32, i32
  }
  func.func @transform_2(%arg0: i32, %arg1: i32, %arg2: i32) -> (i32, i32) {
    %c0_i32 = arith.constant 0 : i32
    %c0_i32_0 = arith.constant 0 : i32
    return %c0_i32, %arg1 : i32, i32
  }
  func.func @transform_3(%arg0: i32, %arg1: i32, %arg2: i32) -> (i32, i32) {
    %c0_i32 = arith.constant 0 : i32
    return %arg0, %arg1 : i32, i32
  }
}

module attributes {stable_mosaic.version = 11 : i64} {
  func.func @_mm_res_ln_kernel(%arg0: i32, %arg1: i32, %arg2: memref<8x32xbf16, #tpu.memory_space<vmem>>, %arg3: memref<32x128xbf16, #tpu.memory_space<vmem>>, %arg4: memref<1x128xf32, #tpu.memory_space<vmem>>, %arg5: memref<8x128xbf16, #tpu.memory_space<vmem>>, %arg6: memref<1x128xf32, #tpu.memory_space<vmem>>, %arg7: memref<1x128xf32, #tpu.memory_space<vmem>>, %arg8: memref<8x128xbf16, #tpu.memory_space<vmem>>, %arg9: memref<8x128xf32, #tpu.memory_space<vmem>>) attributes {dimension_semantics = [#tpu.dimension_semantics<parallel>, #tpu.dimension_semantics<arbitrary>], iteration_bounds = array<i64: 2, 1>, scalar_prefetch = 0 : i64, scratch_operands = 1 : i64, tpu.core_type = #tpu.core_type<tc>, window_params = [{transform_indices = @transform_0, window_bounds = array<i64: 8, 32>}, {transform_indices = @transform_1, window_bounds = array<i64: 32, 128>}, {pipeline_mode = #tpu.pipeline_mode<synchronous>, transform_indices = @transform_2, window_bounds = array<i64: 1, 128>}, {transform_indices = @transform_3, window_bounds = array<i64: 8, 128>}, {pipeline_mode = #tpu.pipeline_mode<synchronous>, transform_indices = @transform_4, window_bounds = array<i64: 1, 128>}, {pipeline_mode = #tpu.pipeline_mode<synchronous>, transform_indices = @transform_5, window_bounds = array<i64: 1, 128>}, {transform_indices = @transform_6, window_bounds = array<i64: 8, 128>}]} {
    %c0_i32 = arith.constant 0 : i32
    %0 = arith.cmpi eq, %arg1, %c0_i32 : i32
    %1 = arith.extui %0 : i1 to i32
    %c0_i32_0 = arith.constant 0 : i32
    %2 = arith.cmpi ne, %1, %c0_i32_0 : i32
    scf.if %2 {
      %cst_10 = arith.constant 0.000000e+00 : f32
      %12 = vector.broadcast %cst_10 : f32 to vector<8x128xf32>
      %c0_11 = arith.constant 0 : index
      %c0_12 = arith.constant 0 : index
      %13 = vector.load %arg9[%c0_11, %c0_12] : memref<8x128xf32, #tpu.memory_space<vmem>>, vector<8x128xf32>
      tpu.vector_store %arg9[%c0_11, %c0_12], %12 {strides = array<i32>} : memref<8x128xf32, #tpu.memory_space<vmem>>, vector<8x128xf32>,
    } else {
    }
    %c0 = arith.constant 0 : index
    %c0_1 = arith.constant 0 : index
    %3 = vector.load %arg9[%c0, %c0_1] : memref<8x128xf32, #tpu.memory_space<vmem>>, vector<8x128xf32>
    %c0_2 = arith.constant 0 : index
    %c0_3 = arith.constant 0 : index
    %4 = vector.load %arg2[%c0_2, %c0_3] : memref<8x32xbf16, #tpu.memory_space<vmem>>, vector<8x32xbf16>
    %c0_4 = arith.constant 0 : index
    %c0_5 = arith.constant 0 : index
    %5 = vector.load %arg3[%c0_4, %c0_5] : memref<32x128xbf16, #tpu.memory_space<vmem>>, vector<32x128xbf16>
    %cst = arith.constant dense<0.000000e+00> : vector<8x128xf32>
    %6 = tpu.matmul %4, %5, %cst {dimension_numbers = #tpu.dot_dimension_numbers<[1], [0], [0], [1], [0, 0, 1, 1], [], []>} : vector<8x32xbf16>, vector<32x128xbf16>, vector<8x128xf32> -> vector<8x128xf32>
    %7 = arith.addf %3, %6 : vector<8x128xf32>
    %c0_6 = arith.constant 0 : index
    %c0_7 = arith.constant 0 : index
    %8 = vector.load %arg9[%c0_6, %c0_7] : memref<8x128xf32, #tpu.memory_space<vmem>>, vector<8x128xf32>
    tpu.vector_store %arg9[%c0_6, %c0_7], %7 {strides = array<i32>} : memref<8x128xf32, #tpu.memory_space<vmem>>, vector<8x128xf32>,
    %c0_i32_8 = arith.constant 0 : i32
    %9 = arith.cmpi eq, %arg1, %c0_i32_8 : i32
    %10 = arith.extui %9 : i1 to i32
    %c0_i32_9 = arith.constant 0 : i32
    %11 = arith.cmpi ne, %10, %c0_i32_9 : i32
    scf.if %11 {
      %c0_10 = arith.constant 0 : index
      %c0_11 = arith.constant 0 : index
      %12 = vector.load %arg9[%c0_10, %c0_11] : memref<8x128xf32, #tpu.memory_space<vmem>>, vector<8x128xf32>
      %c0_12 = arith.constant 0 : index
      %c0_13 = arith.constant 0 : index
      %13 = vector.load %arg4[%c0_12, %c0_13] : memref<1x128xf32, #tpu.memory_space<vmem>>, vector<1x128xf32>
      %14 = vector.broadcast %13 : vector<1x128xf32> to vector<8x128xf32>
      %15 = arith.addf %12, %14 : vector<8x128xf32>
      %c0_14 = arith.constant 0 : index
      %c0_15 = arith.constant 0 : index
      %16 = vector.load %arg5[%c0_14, %c0_15] : memref<8x128xbf16, #tpu.memory_space<vmem>>, vector<8x128xbf16>
      %17 = arith.extf %16 : vector<8x128xbf16> to vector<8x128xf32>
      %18 = arith.addf %15, %17 : vector<8x128xf32>
      %c0_16 = arith.constant 0 : index
      %c0_17 = arith.constant 0 : index
      %19 = vector.load %arg6[%c0_16, %c0_17] : memref<1x128xf32, #tpu.memory_space<vmem>>, vector<1x128xf32>
      %c0_18 = arith.constant 0 : index
      %c0_19 = arith.constant 0 : index
      %20 = vector.load %arg7[%c0_18, %c0_19] : memref<1x128xf32, #tpu.memory_space<vmem>>, vector<1x128xf32>
      %cst_20 = arith.constant dense<0.000000e+00> : vector<8xf32>
      %21 = vector.multi_reduction <add>, %18, %cst_20 [1] : vector<8x128xf32> to vector<8xf32>
      %22 = vector.shape_cast %21 : vector<8xf32> to vector<8x1xf32>
      %23 = arith.mulf %18, %18 : vector<8x128xf32>
      %cst_21 = arith.constant dense<0.000000e+00> : vector<8xf32>
      %24 = vector.multi_reduction <add>, %23, %cst_21 [1] : vector<8x128xf32> to vector<8xf32>
      %25 = vector.shape_cast %24 : vector<8xf32> to vector<8x1xf32>
      %cst_22 = arith.constant 3.125000e-02 : f32
      %26 = vector.broadcast %cst_22 : f32 to vector<8x1xf32>
      %27 = arith.mulf %22, %26 : vector<8x1xf32>
      %cst_23 = arith.constant 3.125000e-02 : f32
      %28 = vector.broadcast %cst_23 : f32 to vector<8x1xf32>
      %29 = arith.mulf %25, %28 : vector<8x1xf32>
      %30 = arith.mulf %27, %27 : vector<8x1xf32>
      %31 = arith.subf %29, %30 : vector<8x1xf32>
      %32 = vector.broadcast %27 : vector<8x1xf32> to vector<8x128xf32>
      %33 = arith.subf %18, %32 : vector<8x128xf32>
      %cst_24 = arith.constant 9.99999974E-6 : f32
      %34 = vector.broadcast %cst_24 : f32 to vector<8x1xf32>
      %35 = arith.addf %31, %34 : vector<8x1xf32>
      %36 = math.rsqrt %35 : vector<8x1xf32>
      %37 = vector.broadcast %36 : vector<8x1xf32> to vector<8x128xf32>
      %38 = arith.mulf %33, %37 : vector<8x128xf32>
      %39 = vector.broadcast %19 : vector<1x128xf32> to vector<8x128xf32>
      %40 = arith.mulf %38, %39 : vector<8x128xf32>
      %41 = vector.broadcast %20 : vector<1x128xf32> to vector<8x128xf32>
      %42 = arith.addf %40, %41 : vector<8x128xf32>
      %43 = arith.truncf %42 : vector<8x128xf32> to vector<8x128xbf16>
      %c0_25 = arith.constant 0 : index
      %c0_26 = arith.constant 0 : index
      %44 = vector.load %arg8[%c0_25, %c0_26] : memref<8x128xbf16, #tpu.memory_space<vmem>>, vector<8x128xbf16>
      tpu.vector_store %arg8[%c0_25, %c0_26], %43 {strides = array<i32>} : memref<8x128xbf16, #tpu.memory_space<vmem>>, vector<8x128xbf16>,
    } else {
    }
    return
  }
  func.func @transform_0(%arg0: i32, %arg1: i32) -> (i32, i32) {
    %c0_i32 = arith.constant 0 : i32
    return %arg0, %arg1 : i32, i32
  }
  func.func @transform_1(%arg0: i32, %arg1: i32) -> (i32, i32) {
    %c0_i32 = arith.constant 0 : i32
    %c0_i32_0 = arith.constant 0 : i32
    return %arg1, %c0_i32 : i32, i32
  }
  func.func @transform_2(%arg0: i32, %arg1: i32) -> (i32, i32) {
    %c0_i32 = arith.constant 0 : i32
    %c0_i32_0 = arith.constant 0 : i32
    %c0_i32_1 = arith.constant 0 : i32
    return %c0_i32, %c0_i32_0 : i32, i32
  }
  func.func @transform_3(%arg0: i32, %arg1: i32) -> (i32, i32) {
    %c0_i32 = arith.constant 0 : i32
    %c0_i32_0 = arith.constant 0 : i32
    return %arg0, %c0_i32 : i32, i32
  }
  func.func @transform_4(%arg0: i32, %arg1: i32) -> (i32, i32) {
    %c0_i32 = arith.constant 0 : i32
    %c0_i32_0 = arith.constant 0 : i32
    %c0_i32_1 = arith.constant 0 : i32
    return %c0_i32, %c0_i32_0 : i32, i32
  }
  func.func @transform_5(%arg0: i32, %arg1: i32) -> (i32, i32) {
    %c0_i32 = arith.constant 0 : i32
    %c0_i32_0 = arith.constant 0 : i32
    %c0_i32_1 = arith.constant 0 : i32
    return %c0_i32, %c0_i32_0 : i32, i32
  }
  func.func @transform_6(%arg0: i32, %arg1: i32) -> (i32, i32) {
    %c0_i32 = arith.constant 0 : i32
    %c0_i32_0 = arith.constant 0 : i32
    return %arg0, %c0_i32 : i32, i32
  }
}

module attributes {stable_mosaic.version = 11 : i64} {
  func.func @_attn_kernel(%arg0: i32, %arg1: i32, %arg2: memref<1x8x32xbf16, #tpu.memory_space<vmem>>, %arg3: memref<1x16x32xbf16, #tpu.memory_space<vmem>>, %arg4: memref<1x16x32xbf16, #tpu.memory_space<vmem>>, %arg5: memref<1x8x32xbf16, #tpu.memory_space<vmem>>) attributes {dimension_semantics = [#tpu.dimension_semantics<parallel>, #tpu.dimension_semantics<parallel>], iteration_bounds = array<i64: 2, 1>, scalar_prefetch = 0 : i64, scratch_operands = 0 : i64, tpu.core_type = #tpu.core_type<tc>, window_params = [{transform_indices = @transform_0, window_bounds = array<i64: 1, 8, 32>}, {transform_indices = @transform_1, window_bounds = array<i64: 1, 16, 32>}, {transform_indices = @transform_2, window_bounds = array<i64: 1, 16, 32>}, {transform_indices = @transform_3, window_bounds = array<i64: 1, 8, 32>}]} {
    %c0 = arith.constant 0 : index
    %c0_0 = arith.constant 0 : index
    %c0_1 = arith.constant 0 : index
    %0 = vector.load %arg2[%c0, %c0_0, %c0_1] : memref<1x8x32xbf16, #tpu.memory_space<vmem>>, vector<1x8x8xbf16>
    %1 = vector.shape_cast %0 : vector<1x8x8xbf16> to vector<8x8xbf16>
    %c0_2 = arith.constant 0 : index
    %c0_3 = arith.constant 0 : index
    %c0_4 = arith.constant 0 : index
    %2 = vector.load %arg3[%c0_2, %c0_3, %c0_4] : memref<1x16x32xbf16, #tpu.memory_space<vmem>>, vector<1x16x8xbf16>
    %3 = vector.shape_cast %2 : vector<1x16x8xbf16> to vector<16x8xbf16>
    %c0_5 = arith.constant 0 : index
    %c0_6 = arith.constant 0 : index
    %c0_7 = arith.constant 0 : index
    %4 = vector.load %arg4[%c0_5, %c0_6, %c0_7] : memref<1x16x32xbf16, #tpu.memory_space<vmem>>, vector<1x16x8xbf16>
    %5 = vector.shape_cast %4 : vector<1x16x8xbf16> to vector<16x8xbf16>
    %cst = arith.constant dense<0.000000e+00> : vector<8x16xf32>
    %6 = tpu.matmul %1, %3, %cst {dimension_numbers = #tpu.dot_dimension_numbers<[1], [1], [0], [0], [0, 0, 1, 0], [], []>} : vector<8x8xbf16>, vector<16x8xbf16>, vector<8x16xf32> -> vector<8x16xf32>
    %cst_8 = arith.constant dense<0xFF800000> : vector<8xf32>
    %7 = vector.multi_reduction <maximumf>, %6, %cst_8 [1] : vector<8x16xf32> to vector<8xf32>
    %8 = vector.shape_cast %7 : vector<8xf32> to vector<8x1xf32>
    %9 = vector.broadcast %8 : vector<8x1xf32> to vector<8x16xf32>
    %10 = arith.subf %6, %9 : vector<8x16xf32>
    %11 = math.exp %10 : vector<8x16xf32>
    %cst_9 = arith.constant dense<0.000000e+00> : vector<8xf32>
    %12 = vector.multi_reduction <add>, %11, %cst_9 [1] : vector<8x16xf32> to vector<8xf32>
    %13 = vector.shape_cast %12 : vector<8xf32> to vector<8x1xf32>
    %14 = tpu.reciprocal %13 {approx = true} : vector<8x1xf32> -> vector<8x1xf32>
    %15 = vector.broadcast %14 : vector<8x1xf32> to vector<8x16xf32>
    %16 = arith.mulf %11, %15 : vector<8x16xf32>
    %17 = arith.truncf %16 : vector<8x16xf32> to vector<8x16xbf16>
    %cst_10 = arith.constant dense<0.000000e+00> : vector<8x8xf32>
    %18 = tpu.matmul %17, %5, %cst_10 {dimension_numbers = #tpu.dot_dimension_numbers<[1], [0], [0], [1], [0, 0, 1, 1], [], []>} : vector<8x16xbf16>, vector<16x8xbf16>, vector<8x8xf32> -> vector<8x8xf32>
    %c0_11 = arith.constant 0 : index
    %c0_12 = arith.constant 0 : index
    %c8 = arith.constant 8 : index
    %19 = vector.load %arg2[%c0_11, %c0_12, %c8] : memref<1x8x32xbf16, #tpu.memory_space<vmem>>, vector<1x8x8xbf16>
    %20 = vector.shape_cast %19 : vector<1x8x8xbf16> to vector<8x8xbf16>
    %c0_13 = arith.constant 0 : index
    %c0_14 = arith.constant 0 : index
    %c8_15 = arith.constant 8 : index
    %21 = vector.load %arg3[%c0_13, %c0_14, %c8_15] : memref<1x16x32xbf16, #tpu.memory_space<vmem>>, vector<1x16x8xbf16>
    %22 = vector.shape_cast %21 : vector<1x16x8xbf16> to vector<16x8xbf16>
    %c0_16 = arith.constant 0 : index
    %c0_17 = arith.constant 0 : index
    %c8_18 = arith.constant 8 : index
    %23 = vector.load %arg4[%c0_16, %c0_17, %c8_18] : memref<1x16x32xbf16, #tpu.memory_space<vmem>>, vector<1x16x8xbf16>
    %24 = vector.shape_cast %23 : vector<1x16x8xbf16> to vector<16x8xbf16>
    %cst_19 = arith.constant dense<0.000000e+00> : vector<8x16xf32>
    %25 = tpu.matmul %20, %22, %cst_19 {dimension_numbers = #tpu.dot_dimension_numbers<[1], [1], [0], [0], [0, 0, 1, 0], [], []>} : vector<8x8xbf16>, vector<16x8xbf16>, vector<8x16xf32> -> vector<8x16xf32>
    %cst_20 = arith.constant dense<0xFF800000> : vector<8xf32>
    %26 = vector.multi_reduction <maximumf>, %25, %cst_20 [1] : vector<8x16xf32> to vector<8xf32>
    %27 = vector.shape_cast %26 : vector<8xf32> to vector<8x1xf32>
    %28 = vector.broadcast %27 : vector<8x1xf32> to vector<8x16xf32>
    %29 = arith.subf %25, %28 : vector<8x16xf32>
    %30 = math.exp %29 : vector<8x16xf32>
    %cst_21 = arith.constant dense<0.000000e+00> : vector<8xf32>
    %31 = vector.multi_reduction <add>, %30, %cst_21 [1] : vector<8x16xf32> to vector<8xf32>
    %32 = vector.shape_cast %31 : vector<8xf32> to vector<8x1xf32>
    %33 = tpu.reciprocal %32 {approx = true} : vector<8x1xf32> -> vector<8x1xf32>
    %34 = vector.broadcast %33 : vector<8x1xf32> to vector<8x16xf32>
    %35 = arith.mulf %30, %34 : vector<8x16xf32>
    %36 = arith.truncf %35 : vector<8x16xf32> to vector<8x16xbf16>
    %cst_22 = arith.constant dense<0.000000e+00> : vector<8x8xf32>
    %37 = tpu.matmul %36, %24, %cst_22 {dimension_numbers = #tpu.dot_dimension_numbers<[1], [0], [0], [1], [0, 0, 1, 1], [], []>} : vector<8x16xbf16>, vector<16x8xbf16>, vector<8x8xf32> -> vector<8x8xf32>
    %c0_23 = arith.constant 0 : index
    %c0_24 = arith.constant 0 : index
    %c16 = arith.constant 16 : index
    %38 = vector.load %arg2[%c0_23, %c0_24, %c16] : memref<1x8x32xbf16, #tpu.memory_space<vmem>>, vector<1x8x8xbf16>
    %39 = vector.shape_cast %38 : vector<1x8x8xbf16> to vector<8x8xbf16>
    %c0_25 = arith.constant 0 : index
    %c0_26 = arith.constant 0 : index
    %c16_27 = arith.constant 16 : index
    %40 = vector.load %arg3[%c0_25, %c0_26, %c16_27] : memref<1x16x32xbf16, #tpu.memory_space<vmem>>, vector<1x16x8xbf16>
    %41 = vector.shape_cast %40 : vector<1x16x8xbf16> to vector<16x8xbf16>
    %c0_28 = arith.constant 0 : index
    %c0_29 = arith.constant 0 : index
    %c16_30 = arith.constant 16 : index
    %42 = vector.load %arg4[%c0_28, %c0_29, %c16_30] : memref<1x16x32xbf16, #tpu.memory_space<vmem>>, vector<1x16x8xbf16>
    %43 = vector.shape_cast %42 : vector<1x16x8xbf16> to vector<16x8xbf16>
    %cst_31 = arith.constant dense<0.000000e+00> : vector<8x16xf32>
    %44 = tpu.matmul %39, %41, %cst_31 {dimension_numbers = #tpu.dot_dimension_numbers<[1], [1], [0], [0], [0, 0, 1, 0], [], []>} : vector<8x8xbf16>, vector<16x8xbf16>, vector<8x16xf32> -> vector<8x16xf32>
    %cst_32 = arith.constant dense<0xFF800000> : vector<8xf32>
    %45 = vector.multi_reduction <maximumf>, %44, %cst_32 [1] : vector<8x16xf32> to vector<8xf32>
    %46 = vector.shape_cast %45 : vector<8xf32> to vector<8x1xf32>
    %47 = vector.broadcast %46 : vector<8x1xf32> to vector<8x16xf32>
    %48 = arith.subf %44, %47 : vector<8x16xf32>
    %49 = math.exp %48 : vector<8x16xf32>
    %cst_33 = arith.constant dense<0.000000e+00> : vector<8xf32>
    %50 = vector.multi_reduction <add>, %49, %cst_33 [1] : vector<8x16xf32> to vector<8xf32>
    %51 = vector.shape_cast %50 : vector<8xf32> to vector<8x1xf32>
    %52 = tpu.reciprocal %51 {approx = true} : vector<8x1xf32> -> vector<8x1xf32>
    %53 = vector.broadcast %52 : vector<8x1xf32> to vector<8x16xf32>
    %54 = arith.mulf %49, %53 : vector<8x16xf32>
    %55 = arith.truncf %54 : vector<8x16xf32> to vector<8x16xbf16>
    %cst_34 = arith.constant dense<0.000000e+00> : vector<8x8xf32>
    %56 = tpu.matmul %55, %43, %cst_34 {dimension_numbers = #tpu.dot_dimension_numbers<[1], [0], [0], [1], [0, 0, 1, 1], [], []>} : vector<8x16xbf16>, vector<16x8xbf16>, vector<8x8xf32> -> vector<8x8xf32>
    %c0_35 = arith.constant 0 : index
    %c0_36 = arith.constant 0 : index
    %c24 = arith.constant 24 : index
    %57 = vector.load %arg2[%c0_35, %c0_36, %c24] : memref<1x8x32xbf16, #tpu.memory_space<vmem>>, vector<1x8x8xbf16>
    %58 = vector.shape_cast %57 : vector<1x8x8xbf16> to vector<8x8xbf16>
    %c0_37 = arith.constant 0 : index
    %c0_38 = arith.constant 0 : index
    %c24_39 = arith.constant 24 : index
    %59 = vector.load %arg3[%c0_37, %c0_38, %c24_39] : memref<1x16x32xbf16, #tpu.memory_space<vmem>>, vector<1x16x8xbf16>
    %60 = vector.shape_cast %59 : vector<1x16x8xbf16> to vector<16x8xbf16>
    %c0_40 = arith.constant 0 : index
    %c0_41 = arith.constant 0 : index
    %c24_42 = arith.constant 24 : index
    %61 = vector.load %arg4[%c0_40, %c0_41, %c24_42] : memref<1x16x32xbf16, #tpu.memory_space<vmem>>, vector<1x16x8xbf16>
    %62 = vector.shape_cast %61 : vector<1x16x8xbf16> to vector<16x8xbf16>
    %cst_43 = arith.constant dense<0.000000e+00> : vector<8x16xf32>
    %63 = tpu.matmul %58, %60, %cst_43 {dimension_numbers = #tpu.dot_dimension_numbers<[1], [1], [0], [0], [0, 0, 1, 0], [], []>} : vector<8x8xbf16>, vector<16x8xbf16>, vector<8x16xf32> -> vector<8x16xf32>
    %cst_44 = arith.constant dense<0xFF800000> : vector<8xf32>
    %64 = vector.multi_reduction <maximumf>, %63, %cst_44 [1] : vector<8x16xf32> to vector<8xf32>
    %65 = vector.shape_cast %64 : vector<8xf32> to vector<8x1xf32>
    %66 = vector.broadcast %65 : vector<8x1xf32> to vector<8x16xf32>
    %67 = arith.subf %63, %66 : vector<8x16xf32>
    %68 = math.exp %67 : vector<8x16xf32>
    %cst_45 = arith.constant dense<0.000000e+00> : vector<8xf32>
    %69 = vector.multi_reduction <add>, %68, %cst_45 [1] : vector<8x16xf32> to vector<8xf32>
    %70 = vector.shape_cast %69 : vector<8xf32> to vector<8x1xf32>
    %71 = tpu.reciprocal %70 {approx = true} : vector<8x1xf32> -> vector<8x1xf32>
    %72 = vector.broadcast %71 : vector<8x1xf32> to vector<8x16xf32>
    %73 = arith.mulf %68, %72 : vector<8x16xf32>
    %74 = arith.truncf %73 : vector<8x16xf32> to vector<8x16xbf16>
    %cst_46 = arith.constant dense<0.000000e+00> : vector<8x8xf32>
    %75 = tpu.matmul %74, %62, %cst_46 {dimension_numbers = #tpu.dot_dimension_numbers<[1], [0], [0], [1], [0, 0, 1, 1], [], []>} : vector<8x16xbf16>, vector<16x8xbf16>, vector<8x8xf32> -> vector<8x8xf32>
    %76 = tpu.concatenate %18, %37, %56, %75 in 1 : vector<8x8xf32>, vector<8x8xf32>, vector<8x8xf32>, vector<8x8xf32> -> vector<8x32xf32>
    %77 = arith.truncf %76 : vector<8x32xf32> to vector<8x32xbf16>
    %c0_47 = arith.constant 0 : index
    %c0_48 = arith.constant 0 : index
    %c0_49 = arith.constant 0 : index
    %78 = vector.load %arg5[%c0_47, %c0_48, %c0_49] : memref<1x8x32xbf16, #tpu.memory_space<vmem>>, vector<1x8x32xbf16>
    %79 = vector.shape_cast %78 : vector<1x8x32xbf16> to vector<8x32xbf16>
    %80 = vector.shape_cast %77 : vector<8x32xbf16> to vector<1x8x32xbf16>
    tpu.vector_store %arg5[%c0_47, %c0_48, %c0_49], %80 {strides = array<i32>} : memref<1x8x32xbf16, #tpu.memory_space<vmem>>, vector<1x8x32xbf16>,
    return
  }
  func.func @transform_0(%arg0: i32, %arg1: i32) -> (i32, i32, i32) {
    %c0_i32 = arith.constant 0 : i32
    %c0_i32_0 = arith.constant 0 : i32
    return %arg0, %arg1, %c0_i32 : i32, i32, i32
  }
  func.func @transform_1(%arg0: i32, %arg1: i32) -> (i32, i32, i32) {
    %c0_i32 = arith.constant 0 : i32
    %c0_i32_0 = arith.constant 0 : i32
    %c0_i32_1 = arith.constant 0 : i32
    return %arg0, %c0_i32, %c0_i32_0 : i32, i32, i32
  }
  func.func @transform_2(%arg0: i32, %arg1: i32) -> (i32, i32, i32) {
    %c0_i32 = arith.constant 0 : i32
    %c0_i32_0 = arith.constant 0 : i32
    %c0_i32_1 = arith.constant 0 : i32
    return %arg0, %c0_i32, %c0_i32_0 : i32, i32, i32
  }
  func.func @transform_3(%arg0: i32, %arg1: i32) -> (i32, i32, i32) {
    %c0_i32 = arith.constant 0 : i32
    %c0_i32_0 = arith.constant 0 : i32
    return %arg0, %arg1, %c0_i32 : i32, i32, i32
  }
}

module attributes {stable_mosaic.version = 11 : i64} {
  func.func @_mm_kernel(%arg0: i32, %arg1: i32, %arg2: i32, %arg3: memref<8x32xbf16, #tpu.memory_space<vmem>>, %arg4: memref<32x128xbf16, #tpu.memory_space<vmem>>, %arg5: memref<1x128xf32, #tpu.memory_space<vmem>>, %arg6: memref<8x128xbf16, #tpu.memory_space<vmem>>, %arg7: memref<8x128xf32, #tpu.memory_space<vmem>>) attributes {dimension_semantics = [#tpu.dimension_semantics<parallel>, #tpu.dimension_semantics<parallel>, #tpu.dimension_semantics<arbitrary>], iteration_bounds = array<i64: 2, 1, 1>, scalar_prefetch = 0 : i64, scratch_operands = 1 : i64, tpu.core_type = #tpu.core_type<tc>, window_params = [{transform_indices = @transform_0, window_bounds = array<i64: 8, 32>}, {transform_indices = @transform_1, window_bounds = array<i64: 32, 128>}, {transform_indices = @transform_2, window_bounds = array<i64: 1, 128>}, {transform_indices = @transform_3, window_bounds = array<i64: 8, 128>}]} {
    %c0_i32 = arith.constant 0 : i32
    %0 = arith.cmpi eq, %arg2, %c0_i32 : i32
    %1 = arith.extui %0 : i1 to i32
    %c0_i32_0 = arith.constant 0 : i32
    %2 = arith.cmpi ne, %1, %c0_i32_0 : i32
    scf.if %2 {
      %cst_10 = arith.constant 0.000000e+00 : f32
      %12 = vector.broadcast %cst_10 : f32 to vector<8x128xf32>
      %c0_11 = arith.constant 0 : index
      %c0_12 = arith.constant 0 : index
      %13 = vector.load %arg7[%c0_11, %c0_12] : memref<8x128xf32, #tpu.memory_space<vmem>>, vector<8x128xf32>
      tpu.vector_store %arg7[%c0_11, %c0_12], %12 {strides = array<i32>} : memref<8x128xf32, #tpu.memory_space<vmem>>, vector<8x128xf32>,
    } else {
    }
    %c0 = arith.constant 0 : index
    %c0_1 = arith.constant 0 : index
    %3 = vector.load %arg7[%c0, %c0_1] : memref<8x128xf32, #tpu.memory_space<vmem>>, vector<8x128xf32>
    %c0_2 = arith.constant 0 : index
    %c0_3 = arith.constant 0 : index
    %4 = vector.load %arg3[%c0_2, %c0_3] : memref<8x32xbf16, #tpu.memory_space<vmem>>, vector<8x32xbf16>
    %c0_4 = arith.constant 0 : index
    %c0_5 = arith.constant 0 : index
    %5 = vector.load %arg4[%c0_4, %c0_5] : memref<32x128xbf16, #tpu.memory_space<vmem>>, vector<32x128xbf16>
    %cst = arith.constant dense<0.000000e+00> : vector<8x128xf32>
    %6 = tpu.matmul %4, %5, %cst {dimension_numbers = #tpu.dot_dimension_numbers<[1], [0], [0], [1], [0, 0, 1, 1], [], []>} : vector<8x32xbf16>, vector<32x128xbf16>, vector<8x128xf32> -> vector<8x128xf32>
    %7 = arith.addf %3, %6 : vector<8x128xf32>
    %c0_6 = arith.constant 0 : index
    %c0_7 = arith.constant 0 : index
    %8 = vector.load %arg7[%c0_6, %c0_7] : memref<8x128xf32, #tpu.memory_space<vmem>>, vector<8x128xf32>
    tpu.vector_store %arg7[%c0_6, %c0_7], %7 {strides = array<i32>} : memref<8x128xf32, #tpu.memory_space<vmem>>, vector<8x128xf32>,
    %c0_i32_8 = arith.constant 0 : i32
    %9 = arith.cmpi eq, %arg2, %c0_i32_8 : i32
    %10 = arith.extui %9 : i1 to i32
    %c0_i32_9 = arith.constant 0 : i32
    %11 = arith.cmpi ne, %10, %c0_i32_9 : i32
    scf.if %11 {
      %c0_10 = arith.constant 0 : index
      %c0_11 = arith.constant 0 : index
      %12 = vector.load %arg7[%c0_10, %c0_11] : memref<8x128xf32, #tpu.memory_space<vmem>>, vector<8x128xf32>
      %c0_12 = arith.constant 0 : index
      %c0_13 = arith.constant 0 : index
      %13 = vector.load %arg5[%c0_12, %c0_13] : memref<1x128xf32, #tpu.memory_space<vmem>>, vector<1x128xf32>
      %14 = vector.broadcast %13 : vector<1x128xf32> to vector<8x128xf32>
      %15 = arith.addf %12, %14 : vector<8x128xf32>
      %cst_14 = arith.constant 0.000000e+00 : f32
      %16 = vector.broadcast %cst_14 : f32 to vector<8x128xf32>
      %17 = arith.maximumf %15, %16 : vector<8x128xf32>
      %18 = arith.truncf %17 : vector<8x128xf32> to vector<8x128xbf16>
      %c0_15 = arith.constant 0 : index
      %c0_16 = arith.constant 0 : index
      %19 = vector.load %arg6[%c0_15, %c0_16] : memref<8x128xbf16, #tpu.memory_space<vmem>>, vector<8x128xbf16>
      tpu.vector_store %arg6[%c0_15, %c0_16], %18 {strides = array<i32>} : memref<8x128xbf16, #tpu.memory_space<vmem>>, vector<8x128xbf16>,
    } else {
    }
    return
  }
  func.func @transform_0(%arg0: i32, %arg1: i32, %arg2: i32) -> (i32, i32) {
    %c0_i32 = arith.constant 0 : i32
    return %arg0, %arg2 : i32, i32
  }
  func.func @transform_1(%arg0: i32, %arg1: i32, %arg2: i32) -> (i32, i32) {
    %c0_i32 = arith.constant 0 : i32
    return %arg2, %arg1 : i32, i32
  }
  func.func @transform_2(%arg0: i32, %arg1: i32, %arg2: i32) -> (i32, i32) {
    %c0_i32 = arith.constant 0 : i32
    %c0_i32_0 = arith.constant 0 : i32
    return %c0_i32, %arg1 : i32, i32
  }
  func.func @transform_3(%arg0: i32, %arg1: i32, %arg2: i32) -> (i32, i32) {
    %c0_i32 = arith.constant 0 : i32
    return %arg0, %arg1 : i32, i32
  }
}

module attributes {stable_mosaic.version = 11 : i64} {
  func.func @_mm_res_ln2_kernel(%arg0: i32, %arg1: i32, %arg2: memref<8x64xbf16, #tpu.memory_space<vmem>>, %arg3: memref<64x128xbf16, #tpu.memory_space<vmem>>, %arg4: memref<1x128xf32, #tpu.memory_space<vmem>>, %arg5: memref<8x128xbf16, #tpu.memory_space<vmem>>, %arg6: memref<1x128xf32, #tpu.memory_space<vmem>>, %arg7: memref<1x128xf32, #tpu.memory_space<vmem>>, %arg8: memref<1x128xf32, #tpu.memory_space<vmem>>, %arg9: memref<1x128xf32, #tpu.memory_space<vmem>>, %arg10: memref<8x128xbf16, #tpu.memory_space<vmem>>, %arg11: memref<8x128xbf16, #tpu.memory_space<vmem>>, %arg12: memref<8x128xf32, #tpu.memory_space<vmem>>) attributes {dimension_semantics = [#tpu.dimension_semantics<parallel>, #tpu.dimension_semantics<arbitrary>], iteration_bounds = array<i64: 2, 1>, scalar_prefetch = 0 : i64, scratch_operands = 1 : i64, tpu.core_type = #tpu.core_type<tc>, window_params = [{transform_indices = @transform_0, window_bounds = array<i64: 8, 64>}, {transform_indices = @transform_1, window_bounds = array<i64: 64, 128>}, {pipeline_mode = #tpu.pipeline_mode<synchronous>, transform_indices = @transform_2, window_bounds = array<i64: 1, 128>}, {transform_indices = @transform_3, window_bounds = array<i64: 8, 128>}, {pipeline_mode = #tpu.pipeline_mode<synchronous>, transform_indices = @transform_4, window_bounds = array<i64: 1, 128>}, {pipeline_mode = #tpu.pipeline_mode<synchronous>, transform_indices = @transform_5, window_bounds = array<i64: 1, 128>}, {pipeline_mode = #tpu.pipeline_mode<synchronous>, transform_indices = @transform_6, window_bounds = array<i64: 1, 128>}, {pipeline_mode = #tpu.pipeline_mode<synchronous>, transform_indices = @transform_7, window_bounds = array<i64: 1, 128>}, {transform_indices = @transform_8, window_bounds = array<i64: 8, 128>}, {transform_indices = @transform_9, window_bounds = array<i64: 8, 128>}]} {
    %c0_i32 = arith.constant 0 : i32
    %0 = arith.cmpi eq, %arg1, %c0_i32 : i32
    %1 = arith.extui %0 : i1 to i32
    %c0_i32_0 = arith.constant 0 : i32
    %2 = arith.cmpi ne, %1, %c0_i32_0 : i32
    scf.if %2 {
      %cst_10 = arith.constant 0.000000e+00 : f32
      %12 = vector.broadcast %cst_10 : f32 to vector<8x128xf32>
      %c0_11 = arith.constant 0 : index
      %c0_12 = arith.constant 0 : index
      %13 = vector.load %arg12[%c0_11, %c0_12] : memref<8x128xf32, #tpu.memory_space<vmem>>, vector<8x128xf32>
      tpu.vector_store %arg12[%c0_11, %c0_12], %12 {strides = array<i32>} : memref<8x128xf32, #tpu.memory_space<vmem>>, vector<8x128xf32>,
    } else {
    }
    %c0 = arith.constant 0 : index
    %c0_1 = arith.constant 0 : index
    %3 = vector.load %arg12[%c0, %c0_1] : memref<8x128xf32, #tpu.memory_space<vmem>>, vector<8x128xf32>
    %c0_2 = arith.constant 0 : index
    %c0_3 = arith.constant 0 : index
    %4 = vector.load %arg2[%c0_2, %c0_3] : memref<8x64xbf16, #tpu.memory_space<vmem>>, vector<8x64xbf16>
    %c0_4 = arith.constant 0 : index
    %c0_5 = arith.constant 0 : index
    %5 = vector.load %arg3[%c0_4, %c0_5] : memref<64x128xbf16, #tpu.memory_space<vmem>>, vector<64x128xbf16>
    %cst = arith.constant dense<0.000000e+00> : vector<8x128xf32>
    %6 = tpu.matmul %4, %5, %cst {dimension_numbers = #tpu.dot_dimension_numbers<[1], [0], [0], [1], [0, 0, 1, 1], [], []>} : vector<8x64xbf16>, vector<64x128xbf16>, vector<8x128xf32> -> vector<8x128xf32>
    %7 = arith.addf %3, %6 : vector<8x128xf32>
    %c0_6 = arith.constant 0 : index
    %c0_7 = arith.constant 0 : index
    %8 = vector.load %arg12[%c0_6, %c0_7] : memref<8x128xf32, #tpu.memory_space<vmem>>, vector<8x128xf32>
    tpu.vector_store %arg12[%c0_6, %c0_7], %7 {strides = array<i32>} : memref<8x128xf32, #tpu.memory_space<vmem>>, vector<8x128xf32>,
    %c0_i32_8 = arith.constant 0 : i32
    %9 = arith.cmpi eq, %arg1, %c0_i32_8 : i32
    %10 = arith.extui %9 : i1 to i32
    %c0_i32_9 = arith.constant 0 : i32
    %11 = arith.cmpi ne, %10, %c0_i32_9 : i32
    scf.if %11 {
      %c0_10 = arith.constant 0 : index
      %c0_11 = arith.constant 0 : index
      %12 = vector.load %arg12[%c0_10, %c0_11] : memref<8x128xf32, #tpu.memory_space<vmem>>, vector<8x128xf32>
      %c0_12 = arith.constant 0 : index
      %c0_13 = arith.constant 0 : index
      %13 = vector.load %arg4[%c0_12, %c0_13] : memref<1x128xf32, #tpu.memory_space<vmem>>, vector<1x128xf32>
      %14 = vector.broadcast %13 : vector<1x128xf32> to vector<8x128xf32>
      %15 = arith.addf %12, %14 : vector<8x128xf32>
      %c0_14 = arith.constant 0 : index
      %c0_15 = arith.constant 0 : index
      %16 = vector.load %arg5[%c0_14, %c0_15] : memref<8x128xbf16, #tpu.memory_space<vmem>>, vector<8x128xbf16>
      %17 = arith.extf %16 : vector<8x128xbf16> to vector<8x128xf32>
      %18 = arith.addf %15, %17 : vector<8x128xf32>
      %c0_16 = arith.constant 0 : index
      %c0_17 = arith.constant 0 : index
      %19 = vector.load %arg6[%c0_16, %c0_17] : memref<1x128xf32, #tpu.memory_space<vmem>>, vector<1x128xf32>
      %c0_18 = arith.constant 0 : index
      %c0_19 = arith.constant 0 : index
      %20 = vector.load %arg7[%c0_18, %c0_19] : memref<1x128xf32, #tpu.memory_space<vmem>>, vector<1x128xf32>
      %cst_20 = arith.constant dense<0.000000e+00> : vector<8xf32>
      %21 = vector.multi_reduction <add>, %18, %cst_20 [1] : vector<8x128xf32> to vector<8xf32>
      %22 = vector.shape_cast %21 : vector<8xf32> to vector<8x1xf32>
      %23 = arith.mulf %18, %18 : vector<8x128xf32>
      %cst_21 = arith.constant dense<0.000000e+00> : vector<8xf32>
      %24 = vector.multi_reduction <add>, %23, %cst_21 [1] : vector<8x128xf32> to vector<8xf32>
      %25 = vector.shape_cast %24 : vector<8xf32> to vector<8x1xf32>
      %cst_22 = arith.constant 3.125000e-02 : f32
      %26 = vector.broadcast %cst_22 : f32 to vector<8x1xf32>
      %27 = arith.mulf %22, %26 : vector<8x1xf32>
      %cst_23 = arith.constant 3.125000e-02 : f32
      %28 = vector.broadcast %cst_23 : f32 to vector<8x1xf32>
      %29 = arith.mulf %25, %28 : vector<8x1xf32>
      %30 = arith.mulf %27, %27 : vector<8x1xf32>
      %31 = arith.subf %29, %30 : vector<8x1xf32>
      %32 = vector.broadcast %27 : vector<8x1xf32> to vector<8x128xf32>
      %33 = arith.subf %18, %32 : vector<8x128xf32>
      %cst_24 = arith.constant 9.99999974E-6 : f32
      %34 = vector.broadcast %cst_24 : f32 to vector<8x1xf32>
      %35 = arith.addf %31, %34 : vector<8x1xf32>
      %36 = math.rsqrt %35 : vector<8x1xf32>
      %37 = vector.broadcast %36 : vector<8x1xf32> to vector<8x128xf32>
      %38 = arith.mulf %33, %37 : vector<8x128xf32>
      %39 = vector.broadcast %19 : vector<1x128xf32> to vector<8x128xf32>
      %40 = arith.mulf %38, %39 : vector<8x128xf32>
      %41 = vector.broadcast %20 : vector<1x128xf32> to vector<8x128xf32>
      %42 = arith.addf %40, %41 : vector<8x128xf32>
      %43 = arith.truncf %42 : vector<8x128xf32> to vector<8x128xbf16>
      %c0_25 = arith.constant 0 : index
      %c0_26 = arith.constant 0 : index
      %44 = vector.load %arg10[%c0_25, %c0_26] : memref<8x128xbf16, #tpu.memory_space<vmem>>, vector<8x128xbf16>
      tpu.vector_store %arg10[%c0_25, %c0_26], %43 {strides = array<i32>} : memref<8x128xbf16, #tpu.memory_space<vmem>>, vector<8x128xbf16>,
      %c0_27 = arith.constant 0 : index
      %c0_28 = arith.constant 0 : index
      %45 = vector.load %arg8[%c0_27, %c0_28] : memref<1x128xf32, #tpu.memory_space<vmem>>, vector<1x128xf32>
      %c0_29 = arith.constant 0 : index
      %c0_30 = arith.constant 0 : index
      %46 = vector.load %arg9[%c0_29, %c0_30] : memref<1x128xf32, #tpu.memory_space<vmem>>, vector<1x128xf32>
      %cst_31 = arith.constant dense<0.000000e+00> : vector<8xf32>
      %47 = vector.multi_reduction <add>, %42, %cst_31 [1] : vector<8x128xf32> to vector<8xf32>
      %48 = vector.shape_cast %47 : vector<8xf32> to vector<8x1xf32>
      %49 = arith.mulf %42, %42 : vector<8x128xf32>
      %cst_32 = arith.constant dense<0.000000e+00> : vector<8xf32>
      %50 = vector.multi_reduction <add>, %49, %cst_32 [1] : vector<8x128xf32> to vector<8xf32>
      %51 = vector.shape_cast %50 : vector<8xf32> to vector<8x1xf32>
      %cst_33 = arith.constant 3.125000e-02 : f32
      %52 = vector.broadcast %cst_33 : f32 to vector<8x1xf32>
      %53 = arith.mulf %48, %52 : vector<8x1xf32>
      %cst_34 = arith.constant 3.125000e-02 : f32
      %54 = vector.broadcast %cst_34 : f32 to vector<8x1xf32>
      %55 = arith.mulf %51, %54 : vector<8x1xf32>
      %56 = arith.mulf %53, %53 : vector<8x1xf32>
      %57 = arith.subf %55, %56 : vector<8x1xf32>
      %58 = vector.broadcast %53 : vector<8x1xf32> to vector<8x128xf32>
      %59 = arith.subf %42, %58 : vector<8x128xf32>
      %cst_35 = arith.constant 9.99999974E-6 : f32
      %60 = vector.broadcast %cst_35 : f32 to vector<8x1xf32>
      %61 = arith.addf %57, %60 : vector<8x1xf32>
      %62 = math.rsqrt %61 : vector<8x1xf32>
      %63 = vector.broadcast %62 : vector<8x1xf32> to vector<8x128xf32>
      %64 = arith.mulf %59, %63 : vector<8x128xf32>
      %65 = vector.broadcast %45 : vector<1x128xf32> to vector<8x128xf32>
      %66 = arith.mulf %64, %65 : vector<8x128xf32>
      %67 = vector.broadcast %46 : vector<1x128xf32> to vector<8x128xf32>
      %68 = arith.addf %66, %67 : vector<8x128xf32>
      %69 = arith.truncf %68 : vector<8x128xf32> to vector<8x128xbf16>
      %c0_36 = arith.constant 0 : index
      %c0_37 = arith.constant 0 : index
      %70 = vector.load %arg11[%c0_36, %c0_37] : memref<8x128xbf16, #tpu.memory_space<vmem>>, vector<8x128xbf16>
      tpu.vector_store %arg11[%c0_36, %c0_37], %69 {strides = array<i32>} : memref<8x128xbf16, #tpu.memory_space<vmem>>, vector<8x128xbf16>,
    } else {
    }
    return
  }
  func.func @transform_0(%arg0: i32, %arg1: i32) -> (i32, i32) {
    %c0_i32 = arith.constant 0 : i32
    return %arg0, %arg1 : i32, i32
  }
  func.func @transform_1(%arg0: i32, %arg1: i32) -> (i32, i32) {
    %c0_i32 = arith.constant 0 : i32
    %c0_i32_0 = arith.constant 0 : i32
    return %arg1, %c0_i32 : i32, i32
  }
  func.func @transform_2(%arg0: i32, %arg1: i32) -> (i32, i32) {
    %c0_i32 = arith.constant 0 : i32
    %c0_i32_0 = arith.constant 0 : i32
    %c0_i32_1 = arith.constant 0 : i32
    return %c0_i32, %c0_i32_0 : i32, i32
  }
  func.func @transform_3(%arg0: i32, %arg1: i32) -> (i32, i32) {
    %c0_i32 = arith.constant 0 : i32
    %c0_i32_0 = arith.constant 0 : i32
    return %arg0, %c0_i32 : i32, i32
  }
  func.func @transform_4(%arg0: i32, %arg1: i32) -> (i32, i32) {
    %c0_i32 = arith.constant 0 : i32
    %c0_i32_0 = arith.constant 0 : i32
    %c0_i32_1 = arith.constant 0 : i32
    return %c0_i32, %c0_i32_0 : i32, i32
  }
  func.func @transform_5(%arg0: i32, %arg1: i32) -> (i32, i32) {
    %c0_i32 = arith.constant 0 : i32
    %c0_i32_0 = arith.constant 0 : i32
    %c0_i32_1 = arith.constant 0 : i32
    return %c0_i32, %c0_i32_0 : i32, i32
  }
  func.func @transform_6(%arg0: i32, %arg1: i32) -> (i32, i32) {
    %c0_i32 = arith.constant 0 : i32
    %c0_i32_0 = arith.constant 0 : i32
    %c0_i32_1 = arith.constant 0 : i32
    return %c0_i32, %c0_i32_0 : i32, i32
  }
  func.func @transform_7(%arg0: i32, %arg1: i32) -> (i32, i32) {
    %c0_i32 = arith.constant 0 : i32
    %c0_i32_0 = arith.constant 0 : i32
    %c0_i32_1 = arith.constant 0 : i32
    return %c0_i32, %c0_i32_0 : i32, i32
  }
  func.func @transform_8(%arg0: i32, %arg1: i32) -> (i32, i32) {
    %c0_i32 = arith.constant 0 : i32
    %c0_i32_0 = arith.constant 0 : i32
    return %arg0, %c0_i32 : i32, i32
  }
  func.func @transform_9(%arg0: i32, %arg1: i32) -> (i32, i32) {
    %c0_i32 = arith.constant 0 : i32
    %c0_i32_0 = arith.constant 0 : i32
    return %arg0, %c0_i32 : i32, i32
  }
}

module attributes {stable_mosaic.version = 11 : i64} {
  func.func @_mm_res_ln2_kernel(%arg0: i32, %arg1: i32, %arg2: memref<8x64xbf16, #tpu.memory_space<vmem>>, %arg3: memref<64x128xbf16, #tpu.memory_space<vmem>>, %arg4: memref<1x128xf32, #tpu.memory_space<vmem>>, %arg5: memref<8x128xbf16, #tpu.memory_space<vmem>>, %arg6: memref<1x128xf32, #tpu.memory_space<vmem>>, %arg7: memref<1x128xf32, #tpu.memory_space<vmem>>, %arg8: memref<1x128xf32, #tpu.memory_space<vmem>>, %arg9: memref<1x128xf32, #tpu.memory_space<vmem>>, %arg10: memref<8x128xbf16, #tpu.memory_space<vmem>>, %arg11: memref<8x128xbf16, #tpu.memory_space<vmem>>, %arg12: memref<8x128xf32, #tpu.memory_space<vmem>>) attributes {dimension_semantics = [#tpu.dimension_semantics<parallel>, #tpu.dimension_semantics<arbitrary>], iteration_bounds = array<i64: 2, 1>, scalar_prefetch = 0 : i64, scratch_operands = 1 : i64, tpu.core_type = #tpu.core_type<tc>, window_params = [{transform_indices = @transform_0, window_bounds = array<i64: 8, 64>}, {transform_indices = @transform_1, window_bounds = array<i64: 64, 128>}, {pipeline_mode = #tpu.pipeline_mode<synchronous>, transform_indices = @transform_2, window_bounds = array<i64: 1, 128>}, {transform_indices = @transform_3, window_bounds = array<i64: 8, 128>}, {pipeline_mode = #tpu.pipeline_mode<synchronous>, transform_indices = @transform_4, window_bounds = array<i64: 1, 128>}, {pipeline_mode = #tpu.pipeline_mode<synchronous>, transform_indices = @transform_5, window_bounds = array<i64: 1, 128>}, {pipeline_mode = #tpu.pipeline_mode<synchronous>, transform_indices = @transform_6, window_bounds = array<i64: 1, 128>}, {pipeline_mode = #tpu.pipeline_mode<synchronous>, transform_indices = @transform_7, window_bounds = array<i64: 1, 128>}, {transform_indices = @transform_8, window_bounds = array<i64: 8, 128>}, {transform_indices = @transform_9, window_bounds = array<i64: 8, 128>}]} {
    %c0_i32 = arith.constant 0 : i32
    %0 = arith.cmpi eq, %arg1, %c0_i32 : i32
    %1 = arith.extui %0 : i1 to i32
    %c0_i32_0 = arith.constant 0 : i32
    %2 = arith.cmpi ne, %1, %c0_i32_0 : i32
    scf.if %2 {
      %cst_10 = arith.constant 0.000000e+00 : f32
      %12 = vector.broadcast %cst_10 : f32 to vector<8x128xf32>
      %c0_11 = arith.constant 0 : index
      %c0_12 = arith.constant 0 : index
      %13 = vector.load %arg12[%c0_11, %c0_12] : memref<8x128xf32, #tpu.memory_space<vmem>>, vector<8x128xf32>
      tpu.vector_store %arg12[%c0_11, %c0_12], %12 {strides = array<i32>} : memref<8x128xf32, #tpu.memory_space<vmem>>, vector<8x128xf32>,
    } else {
    }
    %c0 = arith.constant 0 : index
    %c0_1 = arith.constant 0 : index
    %3 = vector.load %arg12[%c0, %c0_1] : memref<8x128xf32, #tpu.memory_space<vmem>>, vector<8x128xf32>
    %c0_2 = arith.constant 0 : index
    %c0_3 = arith.constant 0 : index
    %4 = vector.load %arg2[%c0_2, %c0_3] : memref<8x64xbf16, #tpu.memory_space<vmem>>, vector<8x64xbf16>
    %c0_4 = arith.constant 0 : index
    %c0_5 = arith.constant 0 : index
    %5 = vector.load %arg3[%c0_4, %c0_5] : memref<64x128xbf16, #tpu.memory_space<vmem>>, vector<64x128xbf16>
    %cst = arith.constant dense<0.000000e+00> : vector<8x128xf32>
    %6 = tpu.matmul %4, %5, %cst {dimension_numbers = #tpu.dot_dimension_numbers<[1], [0], [0], [1], [0, 0, 1, 1], [], []>} : vector<8x64xbf16>, vector<64x128xbf16>, vector<8x128xf32> -> vector<8x128xf32>
    %7 = arith.addf %3, %6 : vector<8x128xf32>
    %c0_6 = arith.constant 0 : index
    %c0_7 = arith.constant 0 : index
    %8 = vector.load %arg12[%c0_6, %c0_7] : memref<8x128xf32, #tpu.memory_space<vmem>>, vector<8x128xf32>
    tpu.vector_store %arg12[%c0_6, %c0_7], %7 {strides = array<i32>} : memref<8x128xf32, #tpu.memory_space<vmem>>, vector<8x128xf32>,
    %c0_i32_8 = arith.constant 0 : i32
    %9 = arith.cmpi eq, %arg1, %c0_i32_8 : i32
    %10 = arith.extui %9 : i1 to i32
    %c0_i32_9 = arith.constant 0 : i32
    %11 = arith.cmpi ne, %10, %c0_i32_9 : i32
    scf.if %11 {
      %c0_10 = arith.constant 0 : index
      %c0_11 = arith.constant 0 : index
      %12 = vector.load %arg12[%c0_10, %c0_11] : memref<8x128xf32, #tpu.memory_space<vmem>>, vector<8x128xf32>
      %c0_12 = arith.constant 0 : index
      %c0_13 = arith.constant 0 : index
      %13 = vector.load %arg4[%c0_12, %c0_13] : memref<1x128xf32, #tpu.memory_space<vmem>>, vector<1x128xf32>
      %14 = vector.broadcast %13 : vector<1x128xf32> to vector<8x128xf32>
      %15 = arith.addf %12, %14 : vector<8x128xf32>
      %c0_14 = arith.constant 0 : index
      %c0_15 = arith.constant 0 : index
      %16 = vector.load %arg5[%c0_14, %c0_15] : memref<8x128xbf16, #tpu.memory_space<vmem>>, vector<8x128xbf16>
      %17 = arith.extf %16 : vector<8x128xbf16> to vector<8x128xf32>
      %18 = arith.addf %15, %17 : vector<8x128xf32>
      %c0_16 = arith.constant 0 : index
      %c0_17 = arith.constant 0 : index
      %19 = vector.load %arg6[%c0_16, %c0_17] : memref<1x128xf32, #tpu.memory_space<vmem>>, vector<1x128xf32>
      %c0_18 = arith.constant 0 : index
      %c0_19 = arith.constant 0 : index
      %20 = vector.load %arg7[%c0_18, %c0_19] : memref<1x128xf32, #tpu.memory_space<vmem>>, vector<1x128xf32>
      %cst_20 = arith.constant dense<0.000000e+00> : vector<8xf32>
      %21 = vector.multi_reduction <add>, %18, %cst_20 [1] : vector<8x128xf32> to vector<8xf32>
      %22 = vector.shape_cast %21 : vector<8xf32> to vector<8x1xf32>
      %23 = arith.mulf %18, %18 : vector<8x128xf32>
      %cst_21 = arith.constant dense<0.000000e+00> : vector<8xf32>
      %24 = vector.multi_reduction <add>, %23, %cst_21 [1] : vector<8x128xf32> to vector<8xf32>
      %25 = vector.shape_cast %24 : vector<8xf32> to vector<8x1xf32>
      %cst_22 = arith.constant 3.125000e-02 : f32
      %26 = vector.broadcast %cst_22 : f32 to vector<8x1xf32>
      %27 = arith.mulf %22, %26 : vector<8x1xf32>
      %cst_23 = arith.constant 3.125000e-02 : f32
      %28 = vector.broadcast %cst_23 : f32 to vector<8x1xf32>
      %29 = arith.mulf %25, %28 : vector<8x1xf32>
      %30 = arith.mulf %27, %27 : vector<8x1xf32>
      %31 = arith.subf %29, %30 : vector<8x1xf32>
      %32 = vector.broadcast %27 : vector<8x1xf32> to vector<8x128xf32>
      %33 = arith.subf %18, %32 : vector<8x128xf32>
      %cst_24 = arith.constant 9.99999974E-6 : f32
      %34 = vector.broadcast %cst_24 : f32 to vector<8x1xf32>
      %35 = arith.addf %31, %34 : vector<8x1xf32>
      %36 = math.rsqrt %35 : vector<8x1xf32>
      %37 = vector.broadcast %36 : vector<8x1xf32> to vector<8x128xf32>
      %38 = arith.mulf %33, %37 : vector<8x128xf32>
      %39 = vector.broadcast %19 : vector<1x128xf32> to vector<8x128xf32>
      %40 = arith.mulf %38, %39 : vector<8x128xf32>
      %41 = vector.broadcast %20 : vector<1x128xf32> to vector<8x128xf32>
      %42 = arith.addf %40, %41 : vector<8x128xf32>
      %43 = arith.truncf %42 : vector<8x128xf32> to vector<8x128xbf16>
      %c0_25 = arith.constant 0 : index
      %c0_26 = arith.constant 0 : index
      %44 = vector.load %arg10[%c0_25, %c0_26] : memref<8x128xbf16, #tpu.memory_space<vmem>>, vector<8x128xbf16>
      tpu.vector_store %arg10[%c0_25, %c0_26], %43 {strides = array<i32>} : memref<8x128xbf16, #tpu.memory_space<vmem>>, vector<8x128xbf16>,
      %c0_27 = arith.constant 0 : index
      %c0_28 = arith.constant 0 : index
      %45 = vector.load %arg8[%c0_27, %c0_28] : memref<1x128xf32, #tpu.memory_space<vmem>>, vector<1x128xf32>
      %c0_29 = arith.constant 0 : index
      %c0_30 = arith.constant 0 : index
      %46 = vector.load %arg9[%c0_29, %c0_30] : memref<1x128xf32, #tpu.memory_space<vmem>>, vector<1x128xf32>
      %cst_31 = arith.constant dense<0.000000e+00> : vector<8xf32>
      %47 = vector.multi_reduction <add>, %42, %cst_31 [1] : vector<8x128xf32> to vector<8xf32>
      %48 = vector.shape_cast %47 : vector<8xf32> to vector<8x1xf32>
      %49 = arith.mulf %42, %42 : vector<8x128xf32>
      %cst_32 = arith.constant dense<0.000000e+00> : vector<8xf32>
      %50 = vector.multi_reduction <add>, %49, %cst_32 [1] : vector<8x128xf32> to vector<8xf32>
      %51 = vector.shape_cast %50 : vector<8xf32> to vector<8x1xf32>
      %cst_33 = arith.constant 3.125000e-02 : f32
      %52 = vector.broadcast %cst_33 : f32 to vector<8x1xf32>
      %53 = arith.mulf %48, %52 : vector<8x1xf32>
      %cst_34 = arith.constant 3.125000e-02 : f32
      %54 = vector.broadcast %cst_34 : f32 to vector<8x1xf32>
      %55 = arith.mulf %51, %54 : vector<8x1xf32>
      %56 = arith.mulf %53, %53 : vector<8x1xf32>
      %57 = arith.subf %55, %56 : vector<8x1xf32>
      %58 = vector.broadcast %53 : vector<8x1xf32> to vector<8x128xf32>
      %59 = arith.subf %42, %58 : vector<8x128xf32>
      %cst_35 = arith.constant 9.99999974E-6 : f32
      %60 = vector.broadcast %cst_35 : f32 to vector<8x1xf32>
      %61 = arith.addf %57, %60 : vector<8x1xf32>
      %62 = math.rsqrt %61 : vector<8x1xf32>
      %63 = vector.broadcast %62 : vector<8x1xf32> to vector<8x128xf32>
      %64 = arith.mulf %59, %63 : vector<8x128xf32>
      %65 = vector.broadcast %45 : vector<1x128xf32> to vector<8x128xf32>
      %66 = arith.mulf %64, %65 : vector<8x128xf32>
      %67 = vector.broadcast %46 : vector<1x128xf32> to vector<8x128xf32>
      %68 = arith.addf %66, %67 : vector<8x128xf32>
      %69 = arith.truncf %68 : vector<8x128xf32> to vector<8x128xbf16>
      %c0_36 = arith.constant 0 : index
      %c0_37 = arith.constant 0 : index
      %70 = vector.load %arg11[%c0_36, %c0_37] : memref<8x128xbf16, #tpu.memory_space<vmem>>, vector<8x128xbf16>
      tpu.vector_store %arg11[%c0_36, %c0_37], %69 {strides = array<i32>} : memref<8x128xbf16, #tpu.memory_space<vmem>>, vector<8x128xbf16>,
    } else {
    }
    return
  }
  func.func @transform_0(%arg0: i32, %arg1: i32) -> (i32, i32) {
    %c0_i32 = arith.constant 0 : i32
    return %arg0, %arg1 : i32, i32
  }
  func.func @transform_1(%arg0: i32, %arg1: i32) -> (i32, i32) {
    %c0_i32 = arith.constant 0 : i32
    %c0_i32_0 = arith.constant 0 : i32
    return %arg1, %c0_i32 : i32, i32
  }
  func.func @transform_2(%arg0: i32, %arg1: i32) -> (i32, i32) {
    %c0_i32 = arith.constant 0 : i32
    %c0_i32_0 = arith.constant 0 : i32
    %c0_i32_1 = arith.constant 0 : i32
    return %c0_i32, %c0_i32_0 : i32, i32
  }
  func.func @transform_3(%arg0: i32, %arg1: i32) -> (i32, i32) {
    %c0_i32 = arith.constant 0 : i32
    %c0_i32_0 = arith.constant 0 : i32
    return %arg0, %c0_i32 : i32, i32
  }
  func.func @transform_4(%arg0: i32, %arg1: i32) -> (i32, i32) {
    %c0_i32 = arith.constant 0 : i32
    %c0_i32_0 = arith.constant 0 : i32
    %c0_i32_1 = arith.constant 0 : i32
    return %c0_i32, %c0_i32_0 : i32, i32
  }
  func.func @transform_5(%arg0: i32, %arg1: i32) -> (i32, i32) {
    %c0_i32 = arith.constant 0 : i32
    %c0_i32_0 = arith.constant 0 : i32
    %c0_i32_1 = arith.constant 0 : i32
    return %c0_i32, %c0_i32_0 : i32, i32
  }
  func.func @transform_6(%arg0: i32, %arg1: i32) -> (i32, i32) {
    %c0_i32 = arith.constant 0 : i32
    %c0_i32_0 = arith.constant 0 : i32
    %c0_i32_1 = arith.constant 0 : i32
    return %c0_i32, %c0_i32_0 : i32, i32
  }
  func.func @transform_7(%arg0: i32, %arg1: i32) -> (i32, i32) {
    %c0_i32 = arith.constant 0 : i32
    %c0_i32_0 = arith.constant 0 : i32
    %c0_i32_1 = arith.constant 0 : i32
    return %c0_i32, %c0_i32_0 : i32, i32
  }
  func.func @transform_8(%arg0: i32, %arg1: i32) -> (i32, i32) {
    %c0_i32 = arith.constant 0 : i32
    %c0_i32_0 = arith.constant 0 : i32
    return %arg0, %c0_i32 : i32, i32
  }
  func.func @transform_9(%arg0: i32, %arg1: i32) -> (i32, i32) {
    %c0_i32 = arith.constant 0 : i32
    %c0_i32_0 = arith.constant 0 : i32
    return %arg0, %c0_i32 : i32, i32
  }
}

module attributes {stable_mosaic.version = 11 : i64} {
  func.func @_mm_kernel(%arg0: i32, %arg1: i32, %arg2: i32, %arg3: memref<16x32xbf16, #tpu.memory_space<vmem>>, %arg4: memref<32x128xbf16, #tpu.memory_space<vmem>>, %arg5: memref<1x128xf32, #tpu.memory_space<vmem>>, %arg6: memref<16x128xf32, #tpu.memory_space<vmem>>, %arg7: memref<16x128xf32, #tpu.memory_space<vmem>>) attributes {dimension_semantics = [#tpu.dimension_semantics<parallel>, #tpu.dimension_semantics<parallel>, #tpu.dimension_semantics<arbitrary>], iteration_bounds = array<i64: 2, 1, 1>, scalar_prefetch = 0 : i64, scratch_operands = 1 : i64, tpu.core_type = #tpu.core_type<tc>, window_params = [{transform_indices = @transform_0, window_bounds = array<i64: 16, 32>}, {transform_indices = @transform_1, window_bounds = array<i64: 32, 128>}, {transform_indices = @transform_2, window_bounds = array<i64: 1, 128>}, {transform_indices = @transform_3, window_bounds = array<i64: 16, 128>}]} {
    %c0_i32 = arith.constant 0 : i32
    %0 = arith.cmpi eq, %arg2, %c0_i32 : i32
    %1 = arith.extui %0 : i1 to i32
    %c0_i32_0 = arith.constant 0 : i32
    %2 = arith.cmpi ne, %1, %c0_i32_0 : i32
    scf.if %2 {
      %cst_10 = arith.constant 0.000000e+00 : f32
      %12 = vector.broadcast %cst_10 : f32 to vector<16x128xf32>
      %c0_11 = arith.constant 0 : index
      %c0_12 = arith.constant 0 : index
      %13 = vector.load %arg7[%c0_11, %c0_12] : memref<16x128xf32, #tpu.memory_space<vmem>>, vector<16x128xf32>
      tpu.vector_store %arg7[%c0_11, %c0_12], %12 {strides = array<i32>} : memref<16x128xf32, #tpu.memory_space<vmem>>, vector<16x128xf32>,
    } else {
    }
    %c0 = arith.constant 0 : index
    %c0_1 = arith.constant 0 : index
    %3 = vector.load %arg7[%c0, %c0_1] : memref<16x128xf32, #tpu.memory_space<vmem>>, vector<16x128xf32>
    %c0_2 = arith.constant 0 : index
    %c0_3 = arith.constant 0 : index
    %4 = vector.load %arg3[%c0_2, %c0_3] : memref<16x32xbf16, #tpu.memory_space<vmem>>, vector<16x32xbf16>
    %c0_4 = arith.constant 0 : index
    %c0_5 = arith.constant 0 : index
    %5 = vector.load %arg4[%c0_4, %c0_5] : memref<32x128xbf16, #tpu.memory_space<vmem>>, vector<32x128xbf16>
    %cst = arith.constant dense<0.000000e+00> : vector<16x128xf32>
    %6 = tpu.matmul %4, %5, %cst {dimension_numbers = #tpu.dot_dimension_numbers<[1], [0], [0], [1], [0, 0, 1, 1], [], []>} : vector<16x32xbf16>, vector<32x128xbf16>, vector<16x128xf32> -> vector<16x128xf32>
    %7 = arith.addf %3, %6 : vector<16x128xf32>
    %c0_6 = arith.constant 0 : index
    %c0_7 = arith.constant 0 : index
    %8 = vector.load %arg7[%c0_6, %c0_7] : memref<16x128xf32, #tpu.memory_space<vmem>>, vector<16x128xf32>
    tpu.vector_store %arg7[%c0_6, %c0_7], %7 {strides = array<i32>} : memref<16x128xf32, #tpu.memory_space<vmem>>, vector<16x128xf32>,
    %c0_i32_8 = arith.constant 0 : i32
    %9 = arith.cmpi eq, %arg2, %c0_i32_8 : i32
    %10 = arith.extui %9 : i1 to i32
    %c0_i32_9 = arith.constant 0 : i32
    %11 = arith.cmpi ne, %10, %c0_i32_9 : i32
    scf.if %11 {
      %c0_10 = arith.constant 0 : index
      %c0_11 = arith.constant 0 : index
      %12 = vector.load %arg7[%c0_10, %c0_11] : memref<16x128xf32, #tpu.memory_space<vmem>>, vector<16x128xf32>
      %c0_12 = arith.constant 0 : index
      %c0_13 = arith.constant 0 : index
      %13 = vector.load %arg5[%c0_12, %c0_13] : memref<1x128xf32, #tpu.memory_space<vmem>>, vector<1x128xf32>
      %14 = vector.broadcast %13 : vector<1x128xf32> to vector<16x128xf32>
      %15 = arith.addf %12, %14 : vector<16x128xf32>
      %c0_14 = arith.constant 0 : index
      %c0_15 = arith.constant 0 : index
      %16 = vector.load %arg6[%c0_14, %c0_15] : memref<16x128xf32, #tpu.memory_space<vmem>>, vector<16x128xf32>
      tpu.vector_store %arg6[%c0_14, %c0_15], %15 {strides = array<i32>} : memref<16x128xf32, #tpu.memory_space<vmem>>, vector<16x128xf32>,
    } else {
    }
    return
  }
  func.func @transform_0(%arg0: i32, %arg1: i32, %arg2: i32) -> (i32, i32) {
    %c0_i32 = arith.constant 0 : i32
    return %arg0, %arg2 : i32, i32
  }
  func.func @transform_1(%arg0: i32, %arg1: i32, %arg2: i32) -> (i32, i32) {
    %c0_i32 = arith.constant 0 : i32
    return %arg2, %arg1 : i32, i32
  }
  func.func @transform_2(%arg0: i32, %arg1: i32, %arg2: i32) -> (i32, i32) {
    %c0_i32 = arith.constant 0 : i32
    %c0_i32_0 = arith.constant 0 : i32
    return %c0_i32, %arg1 : i32, i32
  }
  func.func @transform_3(%arg0: i32, %arg1: i32, %arg2: i32) -> (i32, i32) {
    %c0_i32 = arith.constant 0 : i32
    return %arg0, %arg1 : i32, i32
  }
}

module attributes {stable_mosaic.version = 11 : i64} {
  func.func @_mm_kernel(%arg0: i32, %arg1: i32, %arg2: i32, %arg3: memref<16x32xbf16, #tpu.memory_space<vmem>>, %arg4: memref<32x128xbf16, #tpu.memory_space<vmem>>, %arg5: memref<1x128xf32, #tpu.memory_space<vmem>>, %arg6: memref<16x128xf32, #tpu.memory_space<vmem>>, %arg7: memref<16x128xf32, #tpu.memory_space<vmem>>) attributes {dimension_semantics = [#tpu.dimension_semantics<parallel>, #tpu.dimension_semantics<parallel>, #tpu.dimension_semantics<arbitrary>], iteration_bounds = array<i64: 2, 1, 1>, scalar_prefetch = 0 : i64, scratch_operands = 1 : i64, tpu.core_type = #tpu.core_type<tc>, window_params = [{transform_indices = @transform_0, window_bounds = array<i64: 16, 32>}, {transform_indices = @transform_1, window_bounds = array<i64: 32, 128>}, {transform_indices = @transform_2, window_bounds = array<i64: 1, 128>}, {transform_indices = @transform_3, window_bounds = array<i64: 16, 128>}]} {
    %c0_i32 = arith.constant 0 : i32
    %0 = arith.cmpi eq, %arg2, %c0_i32 : i32
    %1 = arith.extui %0 : i1 to i32
    %c0_i32_0 = arith.constant 0 : i32
    %2 = arith.cmpi ne, %1, %c0_i32_0 : i32
    scf.if %2 {
      %cst_10 = arith.constant 0.000000e+00 : f32
      %12 = vector.broadcast %cst_10 : f32 to vector<16x128xf32>
      %c0_11 = arith.constant 0 : index
      %c0_12 = arith.constant 0 : index
      %13 = vector.load %arg7[%c0_11, %c0_12] : memref<16x128xf32, #tpu.memory_space<vmem>>, vector<16x128xf32>
      tpu.vector_store %arg7[%c0_11, %c0_12], %12 {strides = array<i32>} : memref<16x128xf32, #tpu.memory_space<vmem>>, vector<16x128xf32>,
    } else {
    }
    %c0 = arith.constant 0 : index
    %c0_1 = arith.constant 0 : index
    %3 = vector.load %arg7[%c0, %c0_1] : memref<16x128xf32, #tpu.memory_space<vmem>>, vector<16x128xf32>
    %c0_2 = arith.constant 0 : index
    %c0_3 = arith.constant 0 : index
    %4 = vector.load %arg3[%c0_2, %c0_3] : memref<16x32xbf16, #tpu.memory_space<vmem>>, vector<16x32xbf16>
    %c0_4 = arith.constant 0 : index
    %c0_5 = arith.constant 0 : index
    %5 = vector.load %arg4[%c0_4, %c0_5] : memref<32x128xbf16, #tpu.memory_space<vmem>>, vector<32x128xbf16>
    %cst = arith.constant dense<0.000000e+00> : vector<16x128xf32>
    %6 = tpu.matmul %4, %5, %cst {dimension_numbers = #tpu.dot_dimension_numbers<[1], [0], [0], [1], [0, 0, 1, 1], [], []>} : vector<16x32xbf16>, vector<32x128xbf16>, vector<16x128xf32> -> vector<16x128xf32>
    %7 = arith.addf %3, %6 : vector<16x128xf32>
    %c0_6 = arith.constant 0 : index
    %c0_7 = arith.constant 0 : index
    %8 = vector.load %arg7[%c0_6, %c0_7] : memref<16x128xf32, #tpu.memory_space<vmem>>, vector<16x128xf32>
    tpu.vector_store %arg7[%c0_6, %c0_7], %7 {strides = array<i32>} : memref<16x128xf32, #tpu.memory_space<vmem>>, vector<16x128xf32>,
    %c0_i32_8 = arith.constant 0 : i32
    %9 = arith.cmpi eq, %arg2, %c0_i32_8 : i32
    %10 = arith.extui %9 : i1 to i32
    %c0_i32_9 = arith.constant 0 : i32
    %11 = arith.cmpi ne, %10, %c0_i32_9 : i32
    scf.if %11 {
      %c0_10 = arith.constant 0 : index
      %c0_11 = arith.constant 0 : index
      %12 = vector.load %arg7[%c0_10, %c0_11] : memref<16x128xf32, #tpu.memory_space<vmem>>, vector<16x128xf32>
      %c0_12 = arith.constant 0 : index
      %c0_13 = arith.constant 0 : index
      %13 = vector.load %arg5[%c0_12, %c0_13] : memref<1x128xf32, #tpu.memory_space<vmem>>, vector<1x128xf32>
      %14 = vector.broadcast %13 : vector<1x128xf32> to vector<16x128xf32>
      %15 = arith.addf %12, %14 : vector<16x128xf32>
      %16 = arith.negf %15 : vector<16x128xf32>
      %17 = math.exp %16 : vector<16x128xf32>
      %cst_14 = arith.constant 1.000000e+00 : f32
      %18 = vector.broadcast %cst_14 : f32 to vector<16x128xf32>
      %19 = arith.addf %18, %17 : vector<16x128xf32>
      %20 = arith.divf %18, %19 : vector<16x128xf32>
      %c0_15 = arith.constant 0 : index
      %c0_16 = arith.constant 0 : index
      %21 = vector.load %arg6[%c0_15, %c0_16] : memref<16x128xf32, #tpu.memory_space<vmem>>, vector<16x128xf32>
      tpu.vector_store %arg6[%c0_15, %c0_16], %20 {strides = array<i32>} : memref<16x128xf32, #tpu.memory_space<vmem>>, vector<16x128xf32>,
    } else {
    }
    return
  }
  func.func @transform_0(%arg0: i32, %arg1: i32, %arg2: i32) -> (i32, i32) {
    %c0_i32 = arith.constant 0 : i32
    return %arg0, %arg2 : i32, i32
  }
  func.func @transform_1(%arg0: i32, %arg1: i32, %arg2: i32) -> (i32, i32) {
    %c0_i32 = arith.constant 0 : i32
    return %arg2, %arg1 : i32, i32
  }
  func.func @transform_2(%arg0: i32, %arg1: i32, %arg2: i32) -> (i32, i32) {
    %c0_i32 = arith.constant 0 : i32
    %c0_i32_0 = arith.constant 0 : i32
    return %c0_i32, %arg1 : i32, i32
  }
  func.func @transform_3(%arg0: i32, %arg1: i32, %arg2: i32) -> (i32, i32) {
    %c0_i32 = arith.constant 0 : i32
    return %arg0, %arg1 : i32, i32
  }
}

</mosaic_0001>

<bundles_post_ra>
// kernel: _lambda_.41
= control target key start
LH: loop header
LB: loop body
LE: loop exit
PB: predicated region body
PF: predicated region fallthrough
CT: control target
= control target key end

     0   :  { %s673_s15 = smov 0   ;;  %s675_s16 = smov 0   ;;  %s718_s0 = inlined_call_operand.vmem [shape: bf16[32,32], index: 0, kind: input, shape index: {}]   ;;  %s719_s1 = inlined_call_operand.vmem [shape: bf16[32,32], index: 1, kind: input, shape index: {}]   ;;  %s720_s2 = inlined_call_operand.vmem [shape: bf16[32,128], index: 2, kind: input, shape index: {}]   ;;  %s721_s3 = inlined_call_operand.vmem [shape: f32[1,128], index: 3, kind: input, shape index: {}]   ;;  %s722_s4 = inlined_call_operand.vmem [shape: bf16[32,128], index: 4, kind: output, shape index: {}]  }
   0x1   :  { %s677_s17 = smov 0  }
   0x2 LB: > { %s33_s18 = sadd.s32 1, %s640_s16  ;;  %p560_p0 = scmp.ge.s32.totalorder %s644_s17, 1  ;;  %s644_s17 = sphi %s677_s17, %s14_s17   ;;  %s640_s16 = sphi %s675_s16, %s724_s16   ;;  %s636_s15 = sphi %s673_s15, %s723_s15  }
   0x3   : > { %p35_p1 = scmp.ge.s32.totalorder %s33_s18, 2  ;;  %p229_p2 = scmp.lt.s32.totalorder %s644_s17, 3 }
   0x5   : > { %s726_s18 = smov (%p35_p1, %s33_s18), 0  ;;  %p230_p3 = pnand %p560_p0, %p229_p2 }
   0x6   : > { %v620_v0 = vld [vmem:[%s720_s2] sm:$0xff] (!%p230_p3)   ;;  %v646_v1 = vmov (!%p230_p3), 0.0   ;;  %v621_v2 = vld [vmem:[%s720_s2 + $0x8] sm:$0xff] (!%p230_p3)   ;;  %vm647_vm0 = vmmov (!%p230_p3), 0   ;;  %s561_s23 = sshll.u32 (!%p230_p3), %s636_s15, 1  ;;  %vm355_vm1 = vcmask (!%p230_p3), 261120  }
   0x7   : > { %233 = sbr.rel (%p230_p3) target bundleno = 242 (0xf2), region = 36  ;;  %586 = vmatprep.subr.bf16.mxu0 (!%p230_p3), %v646_v1  ;;  %590 = vmatprep.mubr.msk.bf16.mxu0 (!%p230_p3), %vm647_vm0, %v646_v1  ;;  %p281_p4 = scmp.lt.s32.totalorder (!%p230_p3), %s561_s23, 3  ;;  %v571_v11 = vld [vmem:[%s721_s3] ss:$0 sm:$0xff] (!%p230_p3) }
   0x8   : > { %587 = vmatpush3.bf16.msra.mxu0 (!%p230_p3), %v620_v0 }
   0x9   : > { %588 = vmatprep.subr.bf16.mxu0 (!%p230_p3), %v646_v1 }
   0xc   : > { %589 = vmatpush3.bf16.msra.mxu0 (!%p230_p3), %v621_v2 }
   0xe   : > { %s728_s23 = smov (!%p281_p4, %s561_s23), 3 }
   0xf   : > { %s562_s24 = sshll.u32 %s728_s23, 2 }
  0x10   : > { %s287_s27 = scalar_lea.vmem %s718_s0, %s562_s24  ;;  %s296_s30 = scalar_lea.vmem %s719_s1, %s562_s24 }
  0x11   : > { %v328_v3 = vld [vmem:[%s287_s27] sm:$0xf]  ;;  %v329_v4 = vld [vmem:[%s287_s27 + $0x4] sm:$0xf]  ;;  %s317_s9 = scalar_lea.vmem %s722_s4, %s562_s24 }
  0x12   : > { %v330_v5 = vld [vmem:[%s296_s30] sm:$0xf]  ;;  %v331_v6 = vld [vmem:[%s296_s30 + $0x4] sm:$0xf] }
  0x13   : > { %v332_v7 = vadd.bf16 %v330_v5, %v328_v3  ;;  %v333_v8 = vadd.bf16 %v331_v6, %v329_v4 }
  0x15   : > { %v567_v9 = vcombine.low %v332_v7, %v333_v8 }
  0x17   : > { %591 = vmatmul.mubr.msk.bf16.vlgmr.msra.gmra.mrb[0].mxu0 %vm355_vm1, %v567_v9 }
  0xea   : > { %v393_v10 = vpop.f32.mrb[0].mxu0 }
  0xeb   : > { %v592_v12 = vpop.f32.mrb[1].mxu0  ;;  %v416_v14 = vadd.f32 %v571_v11, %v393_v10 }
  0xec   : > { %v396_v13 = vpop.f32.mrb[2].mxu0 }
  0xed   : > { %v417_v15 = vadd.f32 %v571_v11, %v396_v13  ;;  %v593_v16 = vpop.f32.mrb[3].mxu0 }
  0xef   : > { %v581_v17 = vpack.c.bf16 %v417_v15, %v416_v14 }
  0xf1   : > { %582 = vst [vmem:[%s317_s9] sm:$0xff] %v581_v17  }
  0xf2 PF: > { %s14_s17 = sadd.s32 1, %s644_s17   ;;  %s723_s15 = smov %s640_s16 }
  0xf3   : > { %p11_p5 = scmp.ge.s32.totalorder %s14_s17, 4   ;;  %s724_s16 = smov %s726_s18 }
  0xf5   :  { %13 = sbr.rel (!%p11_p5) target bundleno = 2 (0x2), region = 83 }

// kernel: _lambda_.40
= control target key start
LH: loop header
LB: loop body
LE: loop exit
PB: predicated region body
PF: predicated region fallthrough
CT: control target
= control target key end

     0   :  { %s614_s12 = smov 0   ;;  %s616_s13 = smov 0   ;;  %s662_s0 = inlined_call_operand.vmem [shape: bf16[32,64], index: 0, kind: input, shape index: {}]   ;;  %s663_s1 = inlined_call_operand.vmem [shape: bf16[64,128], index: 1, kind: input, shape index: {}]   ;;  %s664_s2 = inlined_call_operand.vmem [shape: f32[1,128], index: 2, kind: input, shape index: {}]   ;;  %s665_s3 = inlined_call_operand.vmem [shape: bf16[32,128], index: 3, kind: output, shape index: {}]  }
   0x1   :  { %s618_s14 = smov 0  }
   0x2 LB: > { %s32_s15 = sadd.s32 1, %s586_s13  ;;  %p497_p0 = scmp.ge.s32.totalorder %s590_s14, 1  ;;  %s590_s14 = sphi %s618_s14, %s13_s14   ;;  %s586_s13 = sphi %s616_s13, %s667_s13   ;;  %s582_s12 = sphi %s614_s12, %s666_s12  }
   0x3   : > { %p34_p1 = scmp.ge.s32.totalorder %s32_s15, 2  ;;  %p188_p2 = scmp.lt.s32.totalorder %s590_s14, 3 }
   0x5   : > { %s669_s15 = smov (%p34_p1, %s32_s15), 0  ;;  %p189_p3 = pnand %p497_p0, %p188_p2 }
   0x6   : > { %v563_v0 = vld [vmem:[%s663_s1] sm:$0xff] (!%p189_p3)   ;;  %v592_v1 = vmov (!%p189_p3), 0.0   ;;  %v564_v2 = vld [vmem:[%s663_s1 + $0x8] sm:$0xff] (!%p189_p3)   ;;  %vm593_vm0 = vmmov (!%p189_p3), 0   ;;  %s498_s20 = sshll.u32 (!%p189_p3), %s582_s12, 1  ;;  %v565_v3 = vld [vmem:[%s663_s1 + $0x10] sm:$0xff] (!%p189_p3)  }
   0x7   : > { %192 = sbr.rel (%p189_p3) target bundleno = 242 (0xf2), region = 32  ;;  %525 = vmatprep.subr.bf16.mxu0 (!%p189_p3), %v592_v1  ;;  %533 = vmatprep.mubr.msk.bf16.mxu0 (!%p189_p3), %vm593_vm0, %v592_v1  ;;  %p230_p4 = scmp.lt.s32.totalorder (!%p189_p3), %s498_s20, 3  ;;  %v566_v4 = vld [vmem:[%s663_s1 + $0x18] sm:$0xff] (!%p189_p3)   ;;  %vm307_vm1 = vcmask (!%p189_p3), 523264   ;;  %v508_v7 = vld [vmem:[%s664_s2] ss:$0 sm:$0xff] (!%p189_p3) }
   0x8   : > { %526 = vmatpush3.bf16.msra.mxu0 (!%p189_p3), %v563_v0 }
   0x9   : > { %527 = vmatprep.subr.bf16.mxu0 (!%p189_p3), %v592_v1 }
   0xc   : > { %528 = vmatpush3.bf16.msra.mxu0 (!%p189_p3), %v564_v2 }
   0xd   : > { %529 = vmatprep.subr.bf16.mxu0 (!%p189_p3), %v592_v1 }
   0xe   : > { %s671_s20 = smov (!%p230_p4, %s498_s20), 3 }
   0xf   : > { %s499_s23 = sshll.u32 %s671_s20, 2 }
  0x10   : > { %s236_s26 = scalar_lea.vmem %s662_s0, %s499_s23  ;;  %530 = vmatpush3.bf16.msra.mxu0 %v565_v3  ;;  %s257_s6 = scalar_lea.vmem %s665_s3, %s499_s23 }
  0x11   : > { %531 = vmatprep.subr.bf16.mxu0 %v592_v1  ;;  %v567_v5 = vld [vmem:[%s236_s26] sm:$0xff]  }
  0x14   : > { %532 = vmatpush3.bf16.msra.mxu0 %v566_v4 }
  0x17   : > { %534 = vmatmul.mubr.msk.bf16.vlgmr.msra.gmra.mrb[0].mxu0 %vm307_vm1, %v567_v5 }
  0xea   : > { %v345_v6 = vpop.f32.mrb[0].mxu0 }
  0xeb   : > { %v535_v8 = vpop.f32.mrb[1].mxu0  ;;  %v368_v10 = vadd.f32 %v508_v7, %v345_v6 }
  0xec   : > { %v348_v9 = vpop.f32.mrb[2].mxu0 }
  0xed   : > { %v369_v11 = vadd.f32 %v508_v7, %v348_v9  ;;  %v536_v12 = vpop.f32.mrb[3].mxu0 }
  0xef   : > { %v518_v13 = vpack.c.bf16 %v369_v11, %v368_v10 }
  0xf1   : > { %519 = vst [vmem:[%s257_s6] sm:$0xff] %v518_v13  }
  0xf2 PF: > { %s13_s14 = sadd.s32 1, %s590_s14   ;;  %s666_s12 = smov %s586_s13 }
  0xf3   : > { %p10_p5 = scmp.ge.s32.totalorder %s13_s14, 4   ;;  %s667_s13 = smov %s669_s15 }
  0xf5   :  { %12 = sbr.rel (!%p10_p5) target bundleno = 2 (0x2), region = 76 }

// kernel: _lambda_.39
= control target key start
LH: loop header
LB: loop body
LE: loop exit
PB: predicated region body
PF: predicated region fallthrough
CT: control target
= control target key end

     0   :  { %s697_s12 = smov 0   ;;  %s699_s13 = smov 0   ;;  %s773_s0 = inlined_call_operand.vmem [shape: bf16[32,192], index: 0, kind: input, shape index: {}]   ;;  %s774_s1 = inlined_call_operand.vmem [shape: bf16[192,128], index: 1, kind: input, shape index: {}]   ;;  %s775_s2 = inlined_call_operand.vmem [shape: f32[1,128], index: 2, kind: input, shape index: {}]   ;;  %s776_s3 = inlined_call_operand.vmem [shape: bf16[32,128], index: 3, kind: output, shape index: {}]  }
   0x1   :  { %s701_s14 = smov 0  }
   0x2 LB: > { %s32_s15 = sadd.s32 1, %s670_s13  ;;  %p578_p0 = scmp.ge.s32.totalorder %s674_s14, 1  ;;  %s674_s14 = sphi %s701_s14, %s13_s14   ;;  %s670_s13 = sphi %s699_s13, %s778_s13   ;;  %s666_s12 = sphi %s697_s12, %s777_s12  }
   0x3   : > { %p34_p1 = scmp.ge.s32.totalorder %s32_s15, 2  ;;  %p191_p2 = scmp.lt.s32.totalorder %s674_s14, 3 }
   0x5   : > { %s780_s15 = smov (%p34_p1, %s32_s15), 0  ;;  %p192_p3 = pnand %p578_p0, %p191_p2 }
   0x6   : > { %v637_v0 = vld [vmem:[%s774_s1] sm:$0xff] (!%p192_p3)   ;;  %v676_v1 = vmov (!%p192_p3), 0   ;;  %s579_s18 = sshll.u32 (!%p192_p3), %s666_s12, 1  ;;  %v638_v2 = vld [vmem:[%s774_s1 + $0x8] sm:$0xff] (!%p192_p3)   ;;  %v639_v3 = vld [vmem:[%s774_s1 + $0x10] sm:$0xff] (!%p192_p3)   ;;  %vm383_vm0 = vcmask (!%p192_p3), 523264  }
   0x7   : > { %195 = sbr.rel (%p192_p3) target bundleno = 276 (0x114), region = 32  ;;  %387 = vmatprep.subr.bf16.mxu0 (!%p192_p3), %v676_v1  ;;  %p236_p4 = scmp.lt.s32.totalorder (!%p192_p3), %s579_s18, 3  ;;  %v640_v4 = vld [vmem:[%s774_s1 + $0x18] sm:$0xff] (!%p192_p3)   ;;  %v641_v6 = vld [vmem:[%s774_s1 + $0x20] sm:$0xff] (!%p192_p3)   ;;  %v642_v7 = vld [vmem:[%s774_s1 + $0x28] sm:$0xff] (!%p192_p3)  }
   0x8   : > { %388 = vmatpush1.bf16.msra.mxu0 (!%p192_p3), %v637_v0  ;;  %v643_v8 = vld [vmem:[%s774_s1 + $0x30] sm:$0xff] (!%p192_p3)   ;;  %v644_v9 = vld [vmem:[%s774_s1 + $0x38] sm:$0xff] (!%p192_p3)   ;;  %v645_v10 = vld [vmem:[%s774_s1 + $0x40] sm:$0xff] (!%p192_p3)  }
   0x9   : > { %389 = vmatprep.subr.bf16.mxu0 (!%p192_p3), %v676_v1  ;;  %v646_v11 = vld [vmem:[%s774_s1 + $0x48] sm:$0xff] (!%p192_p3)   ;;  %v647_v12 = vld [vmem:[%s774_s1 + $0x50] sm:$0xff] (!%p192_p3)   ;;  %v648_v13 = vld [vmem:[%s774_s1 + $0x58] sm:$0xff] (!%p192_p3)  }
   0xa   : > { %v599_v15 = vld [vmem:[%s775_s2] ss:$0 sm:$0xff] (!%p192_p3) }
   0xc   : > { %390 = vmatpush1.bf16.msra.mxu0 (!%p192_p3), %v638_v2 }
   0xd   : > { %391 = vmatprep.subr.bf16.mxu0 (!%p192_p3), %v676_v1 }
   0xe   : > { %s782_s18 = smov (!%p236_p4, %s579_s18), 3 }
   0xf   : > { %s604_s23 = sshll.u32 %s782_s18, 3  ;;  %s583_s24 = sshll.u32 %s782_s18, 2 }
  0x10   : > { %392 = vmatpush1.bf16.msra.mxu0 %v639_v3  ;;  %s243_s28 = scalar_lea.vmem %s773_s0, %s604_s23  ;;  %s265_s27 = scalar_lea.vmem %s776_s3, %s583_s24 }
  0x11   : > { %393 = vmatprep.subr.bf16.mxu0 %v676_v1  ;;  %v651_v5 = vld [vmem:[%s243_s28 + $0x4] ss:$8 sps:$4 sm:$0xff]   ;;  %v649_v14 = vld [vmem:[%s243_s28] ss:$8 sps:$4 sm:$0xff]  }
  0x12   : > { %598 = vmatprep.mubr.msk.bf16.mxu0 %vm383_vm0, %v651_v5 }
  0x14   : > { %394 = vmatpush1.bf16.msra.mxu0 %v640_v4 }
  0x15   : > { %395 = vmatprep.subr.bf16.mxu0 %v676_v1 }
  0x18   : > { %396 = vmatpush1.bf16.msra.mxu0 %v641_v6 }
  0x19   : > { %397 = vmatprep.subr.bf16.mxu0 %v676_v1 }
  0x1c   : > { %398 = vmatpush1.bf16.msra.mxu0 %v642_v7 }
  0x1d   : > { %399 = vmatprep.subr.bf16.mxu0 %v676_v1 }
  0x20   : > { %400 = vmatpush1.bf16.msra.mxu0 %v643_v8 }
  0x21   : > { %401 = vmatprep.subr.bf16.mxu0 %v676_v1 }
  0x24   : > { %402 = vmatpush1.bf16.msra.mxu0 %v644_v9 }
  0x25   : > { %403 = vmatprep.subr.bf16.mxu0 %v676_v1 }
  0x28   : > { %404 = vmatpush1.bf16.msra.mxu0 %v645_v10 }
  0x29   : > { %405 = vmatprep.subr.bf16.mxu0 %v676_v1 }
  0x2c   : > { %406 = vmatpush1.bf16.msra.mxu0 %v646_v11 }
  0x2d   : > { %407 = vmatprep.subr.bf16.mxu0 %v676_v1 }
  0x30   : > { %408 = vmatpush1.bf16.msra.mxu0 %v647_v12 }
  0x31   : > { %409 = vmatprep.subr.bf16.mxu0 %v676_v1 }
  0x34   : > { %410 = vmatpush1.bf16.msra.mxu0 %v648_v13 }
  0x37   : > { %420 = vmatmul.mubr.bf16.vlgmr.msra.gmra.mrb[0].mxu0 %v649_v14 }
 0x10a   : > { %v421_v16 = vpop.f32.mrb[0].mxu0 }
 0x10b   : > { %v444_v17 = vadd.f32 %v599_v15, %v421_v16  ;;  %v423_v18 = vpop.f32.mrb[1].mxu0 }
 0x10c   : > { %v424_v19 = vpop.f32.mrb[2].mxu0 }
 0x10d   : > { %v445_v20 = vadd.f32 %v599_v15, %v424_v19  ;;  %v426_v21 = vpop.f32.mrb[3].mxu0  ;;  %v446_v22 = vmax.f32 %v444_v17, 0.0 }
 0x10f   : > { %v447_v23 = vmax.f32 %v445_v20, 0.0 }
 0x111   : > { %v610_v24 = vpack.c.bf16 %v447_v23, %v446_v22 }
 0x113   : > { %611 = vst [vmem:[%s265_s27] sm:$0xff] %v610_v24  }
 0x114 PF: > { %s13_s14 = sadd.s32 1, %s674_s14   ;;  %s777_s12 = smov %s670_s13 }
 0x115   : > { %p10_p5 = scmp.ge.s32.totalorder %s13_s14, 4   ;;  %s778_s13 = smov %s780_s15 }
 0x117   :  { %12 = sbr.rel (!%p10_p5) target bundleno = 2 (0x2), region = 76 }

// kernel: _lambda_.42
= control target key start
LH: loop header
LB: loop body
LE: loop exit
PB: predicated region body
PF: predicated region fallthrough
CT: control target
= control target key end

     0   :  { %s588_s12 = smov 0   ;;  %s590_s13 = smov 0   ;;  %s630_s0 = inlined_call_operand.vmem [shape: bf16[32,32], index: 0, kind: input, shape index: {}]   ;;  %s631_s1 = inlined_call_operand.vmem [shape: bf16[32,128], index: 1, kind: input, shape index: {}]   ;;  %s632_s2 = inlined_call_operand.vmem [shape: f32[1,128], index: 2, kind: input, shape index: {}]   ;;  %s633_s3 = inlined_call_operand.vmem [shape: bf16[32,128], index: 3, kind: output, shape index: {}]  }
   0x1   :  { %s592_s14 = smov 0  }
   0x2 LB: > { %s32_s15 = sadd.s32 1, %s560_s13  ;;  %p481_p0 = scmp.ge.s32.totalorder %s564_s14, 1  ;;  %s564_s14 = sphi %s592_s14, %s13_s14   ;;  %s560_s13 = sphi %s590_s13, %s635_s13   ;;  %s556_s12 = sphi %s588_s12, %s634_s12  }
   0x3   : > { %p34_p1 = scmp.ge.s32.totalorder %s32_s15, 2  ;;  %p188_p2 = scmp.lt.s32.totalorder %s564_s14, 3 }
   0x5   : > { %s637_s15 = smov (%p34_p1, %s32_s15), 0  ;;  %p189_p3 = pnand %p481_p0, %p188_p2 }
   0x6   : > { %v539_v0 = vld [vmem:[%s631_s1] sm:$0xff] (!%p189_p3)   ;;  %v566_v1 = vmov (!%p189_p3), 0.0   ;;  %v540_v2 = vld [vmem:[%s631_s1 + $0x8] sm:$0xff] (!%p189_p3)   ;;  %vm567_vm0 = vmmov (!%p189_p3), 0   ;;  %s482_s20 = sshll.u32 (!%p189_p3), %s556_s12, 1  ;;  %vm291_vm1 = vcmask (!%p189_p3), 261120  }
   0x7   : > { %192 = sbr.rel (%p189_p3) target bundleno = 237 (0xed), region = 32  ;;  %505 = vmatprep.subr.bf16.mxu0 (!%p189_p3), %v566_v1  ;;  %509 = vmatprep.mubr.msk.bf16.mxu0 (!%p189_p3), %vm567_vm0, %v566_v1  ;;  %p230_p4 = scmp.lt.s32.totalorder (!%p189_p3), %s482_s20, 3  ;;  %v490_v5 = vld [vmem:[%s632_s2] ss:$0 sm:$0xff] (!%p189_p3) }
   0x8   : > { %506 = vmatpush3.bf16.msra.mxu0 (!%p189_p3), %v539_v0 }
   0x9   : > { %507 = vmatprep.subr.bf16.mxu0 (!%p189_p3), %v566_v1 }
   0xc   : > { %508 = vmatpush3.bf16.msra.mxu0 (!%p189_p3), %v540_v2 }
   0xe   : > { %s639_s20 = smov (!%p230_p4, %s482_s20), 3 }
   0xf   : > { %s483_s21 = sshll.u32 %s639_s20, 2 }
  0x10   : > { %s236_s24 = scalar_lea.vmem %s630_s0, %s483_s21  ;;  %s257_s29 = scalar_lea.vmem %s633_s3, %s483_s21 }
  0x11   : > { %v541_v3 = vld [vmem:[%s236_s24] sm:$0xff]  }
  0x12   : > { %510 = vmatmul.mubr.msk.bf16.vlgmr.msra.gmra.mrb[0].mxu0 %vm291_vm1, %v541_v3 }
  0xe5   : > { %v329_v4 = vpop.f32.mrb[0].mxu0 }
  0xe6   : > { %v511_v6 = vpop.f32.mrb[1].mxu0  ;;  %v352_v8 = vadd.f32 %v490_v5, %v329_v4 }
  0xe7   : > { %v332_v7 = vpop.f32.mrb[2].mxu0 }
  0xe8   : > { %v353_v9 = vadd.f32 %v490_v5, %v332_v7  ;;  %v512_v10 = vpop.f32.mrb[3].mxu0 }
  0xea   : > { %v500_v11 = vpack.c.bf16 %v353_v9, %v352_v8 }
  0xec   : > { %501 = vst [vmem:[%s257_s29] sm:$0xff] %v500_v11  }
  0xed PF: > { %s13_s14 = sadd.s32 1, %s564_s14   ;;  %s634_s12 = smov %s560_s13 }
  0xee   : > { %p10_p5 = scmp.ge.s32.totalorder %s13_s14, 4   ;;  %s635_s13 = smov %s637_s15 }
  0xf0   :  { %12 = sbr.rel (!%p10_p5) target bundleno = 2 (0x2), region = 76 }

// kernel: _lambda_.46
= control target key start
LH: loop header
LB: loop body
LE: loop exit
PB: predicated region body
PF: predicated region fallthrough
CT: control target
= control target key end

     0   :  { %s737_s21 = smov 0   ;;  %s739_s22 = smov 0   ;;  %s799_s0 = inlined_call_operand.vmem [shape: bf16[32,64], index: 0, kind: input, shape index: {}]   ;;  %s800_s1 = inlined_call_operand.vmem [shape: bf16[64,128], index: 1, kind: input, shape index: {}]   ;;  %s801_s2 = inlined_call_operand.vmem [shape: f32[1,128], index: 2, kind: input, shape index: {}]   ;;  %s802_s3 = inlined_call_operand.vmem [shape: bf16[32,128], index: 3, kind: input, shape index: {}]   ;;  %s803_s4 = inlined_call_operand.vmem [shape: f32[1,128], index: 4, kind: input, shape index: {}]   ;;  %s804_s5 = inlined_call_operand.vmem [shape: f32[1,128], index: 5, kind: input, shape index: {}]   ;;  %s805_s6 = inlined_call_operand.vmem [shape: bf16[32,128], index: 6, kind: output, shape index: {}]  }
   0x1   :  { %s741_s23 = smov 0  }
   0x2 LB: > { %s28_s24 = sadd.s32 1, %s694_s22  ;;  %p593_p0 = scmp.ge.s32.totalorder %s698_s23, 1  ;;  %s698_s23 = sphi %s741_s23, %s16_s23   ;;  %s694_s22 = sphi %s739_s22, %s807_s22   ;;  %s690_s21 = sphi %s737_s21, %s806_s21  }
   0x3   : > { %p30_p1 = scmp.ge.s32.totalorder %s28_s24, 2  ;;  %p252_p2 = scmp.lt.s32.totalorder %s698_s23, 3 }
   0x5   : > { %s809_s24 = smov (%p30_p1, %s28_s24), 0  ;;  %p253_p3 = pnand %p593_p0, %p252_p2 }
   0x6   : > { %v667_v0 = vld [vmem:[%s800_s1] sm:$0xff] (!%p253_p3)   ;;  %v700_v1 = vmov (!%p253_p3), 0.0   ;;  %v668_v2 = vld [vmem:[%s800_s1 + $0x8] sm:$0xff] (!%p253_p3)   ;;  %vm701_vm0 = vmmov (!%p253_p3), 0   ;;  %s594_s29 = sshll.u32 (!%p253_p3), %s690_s21, 1  ;;  %v669_v3 = vld [vmem:[%s800_s1 + $0x10] sm:$0xff] (!%p253_p3)  }
   0x7   : > { %256 = sbr.rel (%p253_p3) target bundleno = 413 (0x19d), region = 44  ;;  %629 = vmatprep.subr.bf16.mxu0 (!%p253_p3), %v700_v1  ;;  %637 = vmatprep.mubr.msk.bf16.mxu0 (!%p253_p3), %vm701_vm0, %v700_v1  ;;  %p296_p4 = scmp.lt.s32.totalorder (!%p253_p3), %s594_s29, 3  ;;  %v670_v4 = vld [vmem:[%s800_s1 + $0x18] sm:$0xff] (!%p253_p3)   ;;  %vm370_vm1 = vcmask (!%p253_p3), 523264   ;;  %v606_v7 = vld [vmem:[%s801_s2] ss:$0 sm:$0xff] (!%p253_p3) }
   0x8   : > { %630 = vmatpush3.bf16.msra.mxu0 (!%p253_p3), %v667_v0  ;;  %v607_v37 = vld [vmem:[%s803_s4] ss:$0 sm:$0xff] (!%p253_p3) }
   0x9   : > { %631 = vmatprep.subr.bf16.mxu0 (!%p253_p3), %v700_v1  ;;  %v608_v42 = vld [vmem:[%s804_s5] ss:$0 sm:$0xff] (!%p253_p3) }
   0xc   : > { %632 = vmatpush3.bf16.msra.mxu0 (!%p253_p3), %v668_v2 }
   0xd   : > { %633 = vmatprep.subr.bf16.mxu0 (!%p253_p3), %v700_v1 }
   0xe   : > { %s811_s29 = smov (!%p296_p4, %s594_s29), 3 }
   0xf   : > { %s764_s8 = sshll.u32 %s811_s29, 2 }
  0x10   : > { %s302_s11 = scalar_lea.vmem %s799_s0, %s764_s8  ;;  %634 = vmatpush3.bf16.msra.mxu0 %v669_v3  ;;  %s314_s16 = scalar_lea.vmem %s802_s3, %s764_s8 }
  0x11   : > { %635 = vmatprep.subr.bf16.mxu0 %v700_v1  ;;  %v671_v5 = vld [vmem:[%s302_s11] sm:$0xff]   ;;  %s320_s28 = scalar_lea.vmem %s805_s6, %s764_s8 }
  0x12   : > { %v616_v6 = vld [vmem:[%s314_s16] sm:$0xff]  }
  0x13   : > { %v617_v8 = vunpack.c.l.bf16 %v616_v6  ;;  %v618_v12 = vunpack.c.h.bf16 %v616_v6 }
  0x14   : > { %636 = vmatpush3.bf16.msra.mxu0 %v670_v4 }
  0x17   : > { %638 = vmatmul.mubr.msk.bf16.vlgmr.msra.gmra.mrb[0].mxu0 %vm370_vm1, %v671_v5 }
  0xea   : > { %v408_v9 = vpop.f32.mrb[0].mxu0 }
  0xeb   : > { %v431_v10 = vadd.f32 %v606_v7, %v408_v9  ;;  %v639_v11 = vpop.f32.mrb[1].mxu0 }
  0xec   : > { %v411_v13 = vpop.f32.mrb[2].mxu0 }
  0xed   : > { %v437_v14 = vadd.f32 %v617_v8, %v431_v10  ;;  %v432_v15 = vadd.f32 %v606_v7, %v411_v13  ;;  %v640_v16 = vpop.f32.mrb[3].mxu0 }
  0xef   : > { %v438_v17 = vadd.f32 %v618_v12, %v432_v15  ;;  %441 = vadd.xlane.f32.xlu0 %v437_v14  ;;  %v445_v18 = vmul.f32 %v437_v14, %v437_v14 }
  0xf1   : > { %447 = vadd.xlane.f32.xlu1 %v445_v18  ;;  %v446_v19 = vmul.f32 %v438_v17, %v438_v17 }
  0xf3   : > { %443 = vadd.xlane.f32.xlu0 %v438_v17 }
  0xf5   : > { %449 = vadd.xlane.f32.xlu1 %v446_v19 }
 0x17c   : > { %v442_v20 = vpop.xlane.xlu0 %441 }
 0x17d   : > { %v451_v21 = vmul.f32 0.03125, %v442_v20 }
 0x17e   : > { %v448_v22 = vpop.xlane.xlu1 %447 }
 0x17f   : > { %v455_v23 = vmul.f32 %v451_v21, %v451_v21  ;;  %v453_v24 = vmul.f32 0.03125, %v448_v22  ;;  %v459_v34 = vsub.f32 %v437_v14, %v451_v21 }
 0x180   : > { %v444_v25 = vpop.xlane.xlu0 %443 }
 0x181   : > { %v457_v26 = vsub.f32 %v453_v24, %v455_v23  ;;  %v452_v27 = vmul.f32 0.03125, %v444_v25 }
 0x182   : > { %v450_v28 = vpop.xlane.xlu1 %449 }
 0x183   : > { %v461_v29 = vadd.f32 1e-05, %v457_v26  ;;  %v456_v30 = vmul.f32 %v452_v27, %v452_v27  ;;  %v454_v31 = vmul.f32 0.03125, %v450_v28  ;;  %v460_v38 = vsub.f32 %v438_v17, %v452_v27 }
 0x185   : > { %672 = vrsqrt.f32 %v461_v29  ;;  %v458_v32 = vsub.f32 %v454_v31, %v456_v30 }
 0x187   : > { %v462_v33 = vadd.f32 1e-05, %v458_v32 }
 0x189   : > { %674 = vrsqrt.f32 %v462_v33 }
 0x18f   : > { %v673_v35 = vpop.eup %672 }
 0x190   : > { %v465_v36 = vmul.f32 %v673_v35, %v459_v34 }
 0x192   : > { %v473_v40 = vmul.f32 %v607_v37, %v465_v36 }
 0x193   : > { %v675_v39 = vpop.eup %674 }
 0x194   : > { %v466_v41 = vmul.f32 %v675_v39, %v460_v38  ;;  %v481_v44 = vadd.f32 %v608_v42, %v473_v40 }
 0x196   : > { %v474_v43 = vmul.f32 %v607_v37, %v466_v41 }
 0x198   : > { %v482_v45 = vadd.f32 %v608_v42, %v474_v43 }
 0x19a   : > { %v622_v46 = vpack.c.bf16 %v482_v45, %v481_v44 }
 0x19c   : > { %623 = vst [vmem:[%s320_s28] sm:$0xff] %v622_v46  }
 0x19d PF: > { %s16_s23 = sadd.s32 1, %s698_s23   ;;  %s806_s21 = smov %s694_s22 }
 0x19e   : > { %p13_p5 = scmp.ge.s32.totalorder %s16_s23, 4   ;;  %s807_s22 = smov %s809_s24 }
 0x1a0   :  { %15 = sbr.rel (!%p13_p5) target bundleno = 2 (0x2), region = 88 }

// kernel: _lambda_.44
= control target key start
LH: loop header
LB: loop body
LE: loop exit
PB: predicated region body
PF: predicated region fallthrough
CT: control target
= control target key end

     0   :  { %s711_s21 = smov 0   ;;  %s713_s22 = smov 0   ;;  %s767_s0 = inlined_call_operand.vmem [shape: bf16[32,32], index: 0, kind: input, shape index: {}]   ;;  %s768_s1 = inlined_call_operand.vmem [shape: bf16[32,128], index: 1, kind: input, shape index: {}]   ;;  %s769_s2 = inlined_call_operand.vmem [shape: f32[1,128], index: 2, kind: input, shape index: {}]   ;;  %s770_s3 = inlined_call_operand.vmem [shape: bf16[32,128], index: 3, kind: input, shape index: {}]   ;;  %s771_s4 = inlined_call_operand.vmem [shape: f32[1,128], index: 4, kind: input, shape index: {}]   ;;  %s772_s5 = inlined_call_operand.vmem [shape: f32[1,128], index: 5, kind: input, shape index: {}]   ;;  %s773_s6 = inlined_call_operand.vmem [shape: bf16[32,128], index: 6, kind: output, shape index: {}]  }
   0x1   :  { %s715_s23 = smov 0  }
   0x2 LB: > { %s28_s24 = sadd.s32 1, %s668_s22  ;;  %p577_p0 = scmp.ge.s32.totalorder %s672_s23, 1  ;;  %s672_s23 = sphi %s715_s23, %s16_s23   ;;  %s668_s22 = sphi %s713_s22, %s775_s22   ;;  %s664_s21 = sphi %s711_s21, %s774_s21  }
   0x3   : > { %p30_p1 = scmp.ge.s32.totalorder %s28_s24, 2  ;;  %p252_p2 = scmp.lt.s32.totalorder %s672_s23, 3 }
   0x5   : > { %s777_s24 = smov (%p30_p1, %s28_s24), 0  ;;  %p253_p3 = pnand %p577_p0, %p252_p2 }
   0x6   : > { %v643_v0 = vld [vmem:[%s768_s1] sm:$0xff] (!%p253_p3)   ;;  %v674_v1 = vmov (!%p253_p3), 0.0   ;;  %v644_v2 = vld [vmem:[%s768_s1 + $0x8] sm:$0xff] (!%p253_p3)   ;;  %vm675_vm0 = vmmov (!%p253_p3), 0   ;;  %s578_s29 = sshll.u32 (!%p253_p3), %s664_s21, 1  ;;  %vm354_vm1 = vcmask (!%p253_p3), 261120  }
   0x7   : > { %256 = sbr.rel (%p253_p3) target bundleno = 408 (0x198), region = 44  ;;  %609 = vmatprep.subr.bf16.mxu0 (!%p253_p3), %v674_v1  ;;  %613 = vmatprep.mubr.msk.bf16.mxu0 (!%p253_p3), %vm675_vm0, %v674_v1  ;;  %p296_p4 = scmp.lt.s32.totalorder (!%p253_p3), %s578_s29, 3  ;;  %v588_v5 = vld [vmem:[%s769_s2] ss:$0 sm:$0xff] (!%p253_p3) }
   0x8   : > { %610 = vmatpush3.bf16.msra.mxu0 (!%p253_p3), %v643_v0  ;;  %v589_v35 = vld [vmem:[%s771_s4] ss:$0 sm:$0xff] (!%p253_p3) }
   0x9   : > { %611 = vmatprep.subr.bf16.mxu0 (!%p253_p3), %v674_v1  ;;  %v590_v40 = vld [vmem:[%s772_s5] ss:$0 sm:$0xff] (!%p253_p3) }
   0xc   : > { %612 = vmatpush3.bf16.msra.mxu0 (!%p253_p3), %v644_v2 }
   0xe   : > { %s779_s29 = smov (!%p296_p4, %s578_s29), 3 }
   0xf   : > { %s735_s30 = sshll.u32 %s779_s29, 2 }
  0x10   : > { %s302_s9 = scalar_lea.vmem %s767_s0, %s735_s30  ;;  %s314_s12 = scalar_lea.vmem %s770_s3, %s735_s30 }
  0x11   : > { %v645_v3 = vld [vmem:[%s302_s9] sm:$0xff]   ;;  %s320_s21 = scalar_lea.vmem %s773_s6, %s735_s30 }
  0x12   : > { %614 = vmatmul.mubr.msk.bf16.vlgmr.msra.gmra.mrb[0].mxu0 %vm354_vm1, %v645_v3  ;;  %v598_v4 = vld [vmem:[%s314_s12] sm:$0xff]  }
  0x13   : > { %v599_v6 = vunpack.c.l.bf16 %v598_v4  ;;  %v600_v10 = vunpack.c.h.bf16 %v598_v4 }
  0xe5   : > { %v392_v7 = vpop.f32.mrb[0].mxu0 }
  0xe6   : > { %v415_v8 = vadd.f32 %v588_v5, %v392_v7  ;;  %v615_v9 = vpop.f32.mrb[1].mxu0 }
  0xe7   : > { %v395_v11 = vpop.f32.mrb[2].mxu0 }
  0xe8   : > { %v421_v12 = vadd.f32 %v599_v6, %v415_v8  ;;  %v416_v13 = vadd.f32 %v588_v5, %v395_v11  ;;  %v616_v14 = vpop.f32.mrb[3].mxu0 }
  0xea   : > { %v422_v15 = vadd.f32 %v600_v10, %v416_v13  ;;  %425 = vadd.xlane.f32.xlu0 %v421_v12  ;;  %v429_v16 = vmul.f32 %v421_v12, %v421_v12 }
  0xec   : > { %431 = vadd.xlane.f32.xlu1 %v429_v16  ;;  %v430_v17 = vmul.f32 %v422_v15, %v422_v15 }
  0xee   : > { %427 = vadd.xlane.f32.xlu0 %v422_v15 }
  0xf0   : > { %433 = vadd.xlane.f32.xlu1 %v430_v17 }
 0x177   : > { %v426_v18 = vpop.xlane.xlu0 %425 }
 0x178   : > { %v435_v19 = vmul.f32 0.03125, %v426_v18 }
 0x179   : > { %v432_v20 = vpop.xlane.xlu1 %431 }
 0x17a   : > { %v439_v21 = vmul.f32 %v435_v19, %v435_v19  ;;  %v437_v22 = vmul.f32 0.03125, %v432_v20  ;;  %v443_v32 = vsub.f32 %v421_v12, %v435_v19 }
 0x17b   : > { %v428_v23 = vpop.xlane.xlu0 %427 }
 0x17c   : > { %v441_v24 = vsub.f32 %v437_v22, %v439_v21  ;;  %v436_v25 = vmul.f32 0.03125, %v428_v23 }
 0x17d   : > { %v434_v26 = vpop.xlane.xlu1 %433 }
 0x17e   : > { %v445_v27 = vadd.f32 1e-05, %v441_v24  ;;  %v440_v28 = vmul.f32 %v436_v25, %v436_v25  ;;  %v438_v29 = vmul.f32 0.03125, %v434_v26  ;;  %v444_v36 = vsub.f32 %v422_v15, %v436_v25 }
 0x180   : > { %646 = vrsqrt.f32 %v445_v27  ;;  %v442_v30 = vsub.f32 %v438_v29, %v440_v28 }
 0x182   : > { %v446_v31 = vadd.f32 1e-05, %v442_v30 }
 0x184   : > { %648 = vrsqrt.f32 %v446_v31 }
 0x18a   : > { %v647_v33 = vpop.eup %646 }
 0x18b   : > { %v449_v34 = vmul.f32 %v647_v33, %v443_v32 }
 0x18d   : > { %v457_v38 = vmul.f32 %v589_v35, %v449_v34 }
 0x18e   : > { %v649_v37 = vpop.eup %648 }
 0x18f   : > { %v450_v39 = vmul.f32 %v649_v37, %v444_v36  ;;  %v465_v42 = vadd.f32 %v590_v40, %v457_v38 }
 0x191   : > { %v458_v41 = vmul.f32 %v589_v35, %v450_v39 }
 0x193   : > { %v466_v43 = vadd.f32 %v590_v40, %v458_v41 }
 0x195   : > { %v604_v44 = vpack.c.bf16 %v466_v43, %v465_v42 }
 0x197   : > { %605 = vst [vmem:[%s320_s21] sm:$0xff] %v604_v44  }
 0x198 PF: > { %s16_s23 = sadd.s32 1, %s672_s23   ;;  %s774_s21 = smov %s668_s22 }
 0x199   : > { %p13_p5 = scmp.ge.s32.totalorder %s16_s23, 4   ;;  %s775_s22 = smov %s777_s24 }
 0x19b   :  { %15 = sbr.rel (!%p13_p5) target bundleno = 2 (0x2), region = 88 }

// kernel: _lambda_.45
= control target key start
LH: loop header
LB: loop body
LE: loop exit
PB: predicated region body
PF: predicated region fallthrough
CT: control target
= control target key end

     0   :  { %s590_s12 = smov 0   ;;  %s592_s13 = smov 0   ;;  %s632_s0 = inlined_call_operand.vmem [shape: bf16[32,32], index: 0, kind: input, shape index: {}]   ;;  %s633_s1 = inlined_call_operand.vmem [shape: bf16[32,128], index: 1, kind: input, shape index: {}]   ;;  %s634_s2 = inlined_call_operand.vmem [shape: f32[1,128], index: 2, kind: input, shape index: {}]   ;;  %s635_s3 = inlined_call_operand.vmem [shape: bf16[32,128], index: 3, kind: output, shape index: {}]  }
   0x1   :  { %s594_s14 = smov 0  }
   0x2 LB: > { %s32_s15 = sadd.s32 1, %s562_s13  ;;  %p483_p0 = scmp.ge.s32.totalorder %s566_s14, 1  ;;  %s566_s14 = sphi %s594_s14, %s13_s14   ;;  %s562_s13 = sphi %s592_s13, %s637_s13   ;;  %s558_s12 = sphi %s590_s12, %s636_s12  }
   0x3   : > { %p34_p1 = scmp.ge.s32.totalorder %s32_s15, 2  ;;  %p188_p2 = scmp.lt.s32.totalorder %s566_s14, 3 }
   0x5   : > { %s639_s15 = smov (%p34_p1, %s32_s15), 0  ;;  %p189_p3 = pnand %p483_p0, %p188_p2 }
   0x6   : > { %v541_v0 = vld [vmem:[%s633_s1] sm:$0xff] (!%p189_p3)   ;;  %v568_v1 = vmov (!%p189_p3), 0.0   ;;  %v542_v2 = vld [vmem:[%s633_s1 + $0x8] sm:$0xff] (!%p189_p3)   ;;  %vm569_vm0 = vmmov (!%p189_p3), 0   ;;  %s484_s20 = sshll.u32 (!%p189_p3), %s558_s12, 1  ;;  %vm291_vm1 = vcmask (!%p189_p3), 261120  }
   0x7   : > { %192 = sbr.rel (%p189_p3) target bundleno = 239 (0xef), region = 32  ;;  %507 = vmatprep.subr.bf16.mxu0 (!%p189_p3), %v568_v1  ;;  %511 = vmatprep.mubr.msk.bf16.mxu0 (!%p189_p3), %vm569_vm0, %v568_v1  ;;  %p230_p4 = scmp.lt.s32.totalorder (!%p189_p3), %s484_s20, 3  ;;  %v492_v4 = vld [vmem:[%s634_s2] ss:$0 sm:$0xff] (!%p189_p3) }
   0x8   : > { %508 = vmatpush3.bf16.msra.mxu0 (!%p189_p3), %v541_v0 }
   0x9   : > { %509 = vmatprep.subr.bf16.mxu0 (!%p189_p3), %v568_v1 }
   0xc   : > { %510 = vmatpush3.bf16.msra.mxu0 (!%p189_p3), %v542_v2 }
   0xe   : > { %s641_s20 = smov (!%p230_p4, %s484_s20), 3 }
   0xf   : > { %s485_s21 = sshll.u32 %s641_s20, 2 }
  0x10   : > { %s236_s24 = scalar_lea.vmem %s632_s0, %s485_s21  ;;  %s257_s29 = scalar_lea.vmem %s635_s3, %s485_s21 }
  0x11   : > { %v543_v3 = vld [vmem:[%s236_s24] sm:$0xff]  }
  0x12   : > { %512 = vmatmul.mubr.msk.bf16.vlgmr.msra.gmra.mrb[0].mxu0 %vm291_vm1, %v543_v3 }
  0xe5   : > { %v329_v5 = vpop.f32.mrb[0].mxu0 }
  0xe6   : > { %v352_v6 = vadd.f32 %v492_v4, %v329_v5  ;;  %v513_v7 = vpop.f32.mrb[1].mxu0 }
  0xe7   : > { %v332_v8 = vpop.f32.mrb[2].mxu0 }
  0xe8   : > { %v353_v9 = vadd.f32 %v492_v4, %v332_v8  ;;  %v514_v10 = vpop.f32.mrb[3].mxu0  ;;  %v354_v11 = vmax.f32 %v352_v6, 0.0 }
  0xea   : > { %v355_v12 = vmax.f32 %v353_v9, 0.0 }
  0xec   : > { %v502_v13 = vpack.c.bf16 %v355_v12, %v354_v11 }
  0xee   : > { %503 = vst [vmem:[%s257_s29] sm:$0xff] %v502_v13  }
  0xef PF: > { %s13_s14 = sadd.s32 1, %s566_s14   ;;  %s636_s12 = smov %s562_s13 }
  0xf0   : > { %p10_p5 = scmp.ge.s32.totalorder %s13_s14, 4   ;;  %s637_s13 = smov %s639_s15 }
  0xf2   :  { %12 = sbr.rel (!%p10_p5) target bundleno = 2 (0x2), region = 76 }

// kernel: _lambda_.43
= control target key start
LH: loop header
LB: loop body
LE: loop exit
PB: predicated region body
PF: predicated region fallthrough
CT: control target
= control target key end

     0   :  { %s1137_s12 = smov 0   ;;  %s1139_s13 = smov 0   ;;  %s1259_s0 = inlined_call_operand.vmem [shape: bf16[2,16,32], index: 0, kind: input, shape index: {}]   ;;  %s1260_s1 = inlined_call_operand.vmem [shape: bf16[2,16,32], index: 1, kind: input, shape index: {}]   ;;  %s1261_s2 = inlined_call_operand.vmem [shape: bf16[2,16,32], index: 2, kind: input, shape index: {}]   ;;  %s1262_s3 = inlined_call_operand.vmem [shape: bf16[2,16,32], index: 3, kind: output, shape index: {}]  }
   0x1   :  { %s1141_s14 = smov 0  }
   0x2 LB: > { %s25_s15 = sadd.s32 1, %s1103_s13  ;;  %p909_p0 = scmp.ge.s32.totalorder %s1107_s14, 1  ;;  %s1107_s14 = sphi %s1141_s14, %s13_s14   ;;  %s1103_s13 = sphi %s1139_s13, %s1264_s13   ;;  %s1099_s12 = sphi %s1137_s12, %s1263_s12  }
   0x3   : > { %p27_p1 = scmp.ge.s32.totalorder %s25_s15, 2  ;;  %p178_p2 = scmp.lt.s32.totalorder %s1107_s14, 3 }
   0x5   : > { %s1266_s15 = smov (%p27_p1, %s25_s15), 0  ;;  %p179_p3 = pnand %p909_p0, %p178_p2 }
   0x6   : > { %p221_p4 = scmp.lt.s32.totalorder (!%p179_p3), %s1099_s12, 1  ;;  %v1109_v0 = vmov (!%p179_p3), 0.0   ;;  %vm1110_vm0 = vmmov (!%p179_p3), 0   ;;  %vm267_vm1 = vcmask (!%p179_p3), 64512   ;;  %vm315_vm2 = vcmask (!%p179_p3), 130048   ;;  %s1111_s23 = smov (!%p179_p3), 120  }
   0x7   : > { %182 = sbr.rel (%p179_p3) target bundleno = 1496 (0x5d8), region = 32  ;;  %955 = vmatprep.subr.bf16.mxu0 (!%p179_p3), %v1109_v0  ;;  %957 = vmatprep.mubr.msk.bf16.mxu0 (!%p179_p3), %vm1110_vm0, %v1109_v0  ;;  %s1112_s24 = smov (!%p179_p3), 104   ;;  %vm780_vm3 = vcmask (!%p179_p3), 195584   ;;  %vm791_vm4 = vcmask (!%p179_p3), 257024  }
   0x8   : > { %961 = vmatprep.subr.bf16.mxu1 (!%p179_p3), %v1109_v0  ;;  %963 = vmatprep.mubr.msk.bf16.mxu1 (!%p179_p3), %vm1110_vm0, %v1109_v0  ;;  %s1113_s28 = smov (!%p179_p3), 112   ;;  %s1114_s29 = smov (!%p179_p3), 8  }
   0x9   : > { %s1115_s30 = smov (!%p179_p3), 16   ;;  %s1116_s4 = smov (!%p179_p3), 24  }
   0xe   : > { %s1268_s12 = smov (!%p221_p4, %s1099_s12), 1 }
   0xf   : > { %s1161_s16 = sshll.u32 %s1268_s12, 3 }
  0x10   : > { %s234_s19 = scalar_lea.vmem %s1260_s1, %s1161_s16  ;;  %s228_s22 = scalar_lea.vmem %s1259_s0, %s1161_s16 }
  0x11   : > { %v1050_v1 = vld [vmem:[%s234_s19] sm:$0xff]   ;;  %s239_s27 = scalar_lea.vmem %s1261_s2, %s1161_s16  ;;  %s248_s7 = scalar_lea.vmem %s1262_s3, %s1161_s16 }
  0x12   : > { %v272_v2 = vsel %vm267_vm1, %v1050_v1, 0  ;;  %v1051_v3 = vld [vmem:[%s228_s22] sm:$0xff]  }
  0x13   : > { %956 = vmatpush3.bf16.xpose.msra.mxu0 %v272_v2  ;;  %v1186_v20 = vld [vmem:[%s239_s27] sm:$0xff]  }
  0x14   : > { %973 = vmatprep.subr.bf16.mxu0 %v1109_v0  ;;  %962 = vmatpush3.bf16.msra.mxu1 %v1186_v20 }
  0x15   : > { %967 = vmatprep.subr.bf16.mxu1 %v1109_v0 }
  0x1a   : > { %958 = vmatmul.mubr.msk.bf16.vlgmr.msra.gmra.mrb[0].mxu0 %vm267_vm1, %v1051_v3 }
  0x1b   : > { %975 = vmatprep.mubr.msk.bf16.mxu0 %vm1110_vm0, %v1109_v0 }
  0xed   : > { %v308_v4 = vpop.f32.mrb[0].mxu0 }
  0xee   : > { %v959_v5 = vpop.f32.mrb[1].mxu0  ;;  %v316_v6 = vsel %vm315_vm2, %v308_v4, -inf }
  0xef   : > { %317 = vmax.xlane.f32.xlu0 %v316_v6  ;;  %v311_v7 = vpop.f32.mrb[2].mxu0 }
  0xf0   : > { %v960_v8 = vpop.f32.mrb[3].mxu0  ;;  %v319_v9 = vsel %vm315_vm2, %v311_v7, -inf }
  0xf3   : > { %320 = vmax.xlane.f32.xlu0 %v319_v9 }
 0x109   : > { %391 = vrot.lane.b32.xlu0 %v1050_v1, %s1111_s23 }
 0x10d   : > { %633 = vrot.lane.b32.xlu0 %v1050_v1, %s1112_s24 }
 0x17c   : > { %v318_v10 = vpop.xlane.xlu0 %317 }
 0x17d   : > { %v322_v11 = vsub.f32 %v308_v4, %v318_v10 }
 0x17f   : > { %v324_v12 = vmul.f32 1.442695, %v322_v11 }
 0x180   : > { %v321_v13 = vpop.xlane.xlu0 %320 }
 0x181   : > { %1053 = vpow2.f32 %v324_v12  ;;  %v323_v14 = vsub.f32 %v311_v7, %v321_v13 }
 0x183   : > { %v326_v15 = vmul.f32 1.442695, %v323_v14 }
 0x184   : > { %v392_v25 = vpop.permute.xlu0 %391 }
 0x185   : > { %1055 = vpow2.f32 %v326_v15  ;;  %v397_v29 = vsel %vm267_vm1, %v392_v25, 0 }
 0x188   : > { %v634_v33 = vpop.permute.xlu0 %633 }
 0x189   : > { %v639_v35 = vsel %vm267_vm1, %v634_v33, 0 }
 0x18b   : > { %v1054_v16 = vpop.eup %1053 }
 0x18c   : > { %v328_v17 = vsel %vm315_vm2, %v1054_v16, 0.0 }
 0x18d   : > { %329 = vadd.xlane.f32.xlu1 %v328_v17 }
 0x18f   : > { %v1056_v18 = vpop.eup %1055 }
 0x190   : > { %v331_v19 = vsel %vm315_vm2, %v1056_v18, 0.0 }
 0x191   : > { %332 = vadd.xlane.f32.xlu1 %v331_v19 }
 0x1a2   : > { %389 = vrot.lane.b32.xlu1 %v1051_v3, %s1111_s23 }
 0x1a6   : > { %512 = vrot.lane.b32.xlu1 %v1050_v1, %s1113_s28 }
 0x1aa   : > { %510 = vrot.lane.b32.xlu1 %v1051_v3, %s1113_s28 }
 0x1ae   : > { %631 = vrot.lane.b32.xlu1 %v1051_v3, %s1112_s24 }
 0x21a   : > { %v330_v21 = vpop.xlane.xlu1 %329 }
 0x21b   : > { %1057 = vrcp.f32 %v330_v21 }
 0x21e   : > { %v333_v22 = vpop.xlane.xlu1 %332 }
 0x21f   : > { %1059 = vrcp.f32 %v333_v22 }
 0x222   : > { %v390_v28 = vpop.permute.xlu1 %389 }
 0x225   : > { %v1058_v23 = vpop.eup %1057 }
 0x226   : > { %v336_v26 = vmul.f32 %v1058_v23, %v1054_v16  ;;  %v513_v31 = vpop.permute.xlu1 %512 }
 0x227   : > { %v518_v32 = vsel %vm267_vm1, %v513_v31, 0 }
 0x229   : > { %v1060_v24 = vpop.eup %1059 }
 0x22a   : > { %v337_v27 = vmul.f32 %v1060_v24, %v1056_v18  ;;  %v511_v34 = vpop.permute.xlu1 %510 }
 0x22c   : > { %v338_v30 = vpack.c.bf16 %v337_v27, %v336_v26 }
 0x22e   : > { %964 = vmatmul.mubr.msk.bf16.vlgmr.msra.gmra.mrb[0].mxu1 %vm315_vm2, %v338_v30  ;;  %v632_v36 = vpop.permute.xlu1 %631 }
 0x22f   : > { %968 = vmatpush3.bf16.xpose.msra.mxu1 %v397_v29  ;;  %969 = vmatprep.mubr.msk.bf16.mxu1 %vm1110_vm0, %v1109_v0 }
 0x230   : > { %979 = vmatprep.subr.bf16.mxu1 %v1109_v0 }
 0x236   : > { %970 = vmatmul.mubr.msk.bf16.vlgmr.msra.gmra.mrb[4].mxu1 %vm267_vm1, %v390_v28 }
 0x237   : > { %980 = vmatpush3.bf16.xpose.msra.mxu1 %v518_v32  ;;  %981 = vmatprep.mubr.msk.bf16.mxu1 %vm1110_vm0, %v1109_v0 }
 0x238   : > { %991 = vmatprep.subr.bf16.mxu1 %v1109_v0 }
 0x23e   : > { %982 = vmatmul.mubr.msk.bf16.vlgmr.msra.gmra.mrb[8].mxu1 %vm267_vm1, %v511_v34 }
 0x23f   : > { %992 = vmatpush3.bf16.xpose.msra.mxu1 %v639_v35  ;;  %993 = vmatprep.mubr.msk.bf16.mxu1 %vm1110_vm0, %v1109_v0 }
 0x246   : > { %994 = vmatmul.mubr.msk.bf16.vlgmr.msra.gmra.mrb[12].mxu1 %vm267_vm1, %v632_v36 }
 0x301   : > { %v1209_v37 = vpop.f32.mrb[0].mxu1 }
 0x302   : > { %v965_v38 = vpop.f32.mrb[1].mxu1 }
 0x303   : > { %v1211_v39 = vpop.f32.mrb[2].mxu1 }
 0x304   : > { %v966_v40 = vpop.f32.mrb[3].mxu1 }
 0x309   : > { %v433_v41 = vpop.f32.mrb[4].mxu1 }
 0x30a   : > { %v971_v42 = vpop.f32.mrb[5].mxu1  ;;  %v440_v43 = vsel %vm315_vm2, %v433_v41, -inf }
 0x30b   : > { %441 = vmax.xlane.f32.xlu0 %v440_v43  ;;  %v436_v44 = vpop.f32.mrb[6].mxu1 }
 0x30c   : > { %v972_v45 = vpop.f32.mrb[7].mxu1  ;;  %v443_v46 = vsel %vm315_vm2, %v436_v44, -inf }
 0x30d   : > { %444 = vmax.xlane.f32.xlu1 %v443_v46 }
 0x311   : > { %v554_v47 = vpop.f32.mrb[8].mxu1 }
 0x312   : > { %v983_v48 = vpop.f32.mrb[9].mxu1  ;;  %v561_v49 = vsel %vm315_vm2, %v554_v47, -inf }
 0x313   : > { %562 = vmax.xlane.f32.xlu0 %v561_v49  ;;  %v557_v50 = vpop.f32.mrb[10].mxu1 }
 0x314   : > { %v984_v51 = vpop.f32.mrb[11].mxu1  ;;  %v564_v52 = vsel %vm315_vm2, %v557_v50, -inf }
 0x317   : > { %565 = vmax.xlane.f32.xlu0 %v564_v52 }
 0x319   : > { %v675_v53 = vpop.f32.mrb[12].mxu1 }
 0x31a   : > { %v995_v54 = vpop.f32.mrb[13].mxu1  ;;  %v682_v55 = vsel %vm315_vm2, %v675_v53, -inf }
 0x31b   : > { %683 = vmax.xlane.f32.xlu0 %v682_v55  ;;  %v678_v56 = vpop.f32.mrb[14].mxu1 }
 0x31c   : > { %v685_v57 = vsel %vm315_vm2, %v678_v56, -inf  ;;  %v996_v58 = vpop.f32.mrb[15].mxu1 }
 0x31d   : > { %686 = vmax.xlane.f32.xlu1 %v685_v57 }
 0x398   : > { %v442_v59 = vpop.xlane.xlu0 %441 }
 0x399   : > { %v446_v60 = vsub.f32 %v433_v41, %v442_v59 }
 0x39a   : > { %v445_v61 = vpop.xlane.xlu1 %444 }
 0x39b   : > { %v448_v62 = vmul.f32 1.442695, %v446_v60  ;;  %v447_v63 = vsub.f32 %v436_v44, %v445_v61 }
 0x39d   : > { %1061 = vpow2.f32 %v448_v62  ;;  %v450_v1 = vmul.f32 1.442695, %v447_v63 }
 0x39f   : > { %1063 = vpow2.f32 %v450_v1 }
 0x3a0   : > { %v563_v2 = vpop.xlane.xlu0 %562 }
 0x3a1   : > { %v567_v3 = vsub.f32 %v554_v47, %v563_v2 }
 0x3a3   : > { %v569_v4 = vmul.f32 1.442695, %v567_v3 }
 0x3a4   : > { %v566_v5 = vpop.xlane.xlu0 %565 }
 0x3a5   : > { %1065 = vpow2.f32 %v569_v4  ;;  %v568_v6 = vsub.f32 %v557_v50, %v566_v5 }
 0x3a7   : > { %v1062_v7 = vpop.eup %1061  ;;  %v571_v8 = vmul.f32 1.442695, %v568_v6 }
 0x3a8   : > { %v684_v9 = vpop.xlane.xlu0 %683  ;;  %v452_v10 = vsel %vm315_vm2, %v1062_v7, 0.0 }
 0x3a9   : > { %v1064_v11 = vpop.eup %1063  ;;  %1067 = vpow2.f32 %v571_v8  ;;  %v688_v12 = vsub.f32 %v675_v53, %v684_v9  ;;  %453 = vadd.xlane.f32.xlu0 %v452_v10 }
 0x3aa   : > { %v455_v13 = vsel %vm315_vm2, %v1064_v11, 0.0  ;;  %v687_v22 = vpop.xlane.xlu1 %686 }
 0x3ab   : > { %v690_v14 = vmul.f32 1.442695, %v688_v12  ;;  %456 = vadd.xlane.f32.xlu1 %v455_v13  ;;  %v689_v23 = vsub.f32 %v678_v56, %v687_v22 }
 0x3ad   : > { %1069 = vpow2.f32 %v690_v14  ;;  %v692_v24 = vmul.f32 1.442695, %v689_v23 }
 0x3af   : > { %v1066_v15 = vpop.eup %1065  ;;  %1071 = vpow2.f32 %v692_v24 }
 0x3b0   : > { %v573_v16 = vsel %vm315_vm2, %v1066_v15, 0.0 }
 0x3b1   : > { %574 = vadd.xlane.f32.xlu0 %v573_v16 }
 0x3b3   : > { %v1068_v17 = vpop.eup %1067 }
 0x3b4   : > { %v576_v18 = vsel %vm315_vm2, %v1068_v17, 0.0 }
 0x3b5   : > { %577 = vadd.xlane.f32.xlu1 %v576_v18 }
 0x3b7   : > { %v1070_v19 = vpop.eup %1069 }
 0x3b8   : > { %v694_v21 = vsel %vm315_vm2, %v1070_v19, 0.0 }
 0x3b9   : > { %695 = vadd.xlane.f32.xlu0 %v694_v21  ;;  %v1072_v25 = vpop.eup %1071 }
 0x3ba   : > { %v697_v26 = vsel %vm315_vm2, %v1072_v25, 0.0 }
 0x3c6   : > { %584 = vrot.lane.b32.xlu1 %v1186_v20, %s1113_s28 }
 0x3cf   : > { %463 = vrot.lane.b32.xlu0 %v1186_v20, %s1111_s23 }
 0x3ea   : > { %698 = vadd.xlane.f32.xlu1 %v697_v26 }
 0x3fb   : > { %705 = vrot.lane.b32.xlu1 %v1186_v20, %s1112_s24 }
 0x436   : > { %v454_v28 = vpop.xlane.xlu0 %453 }
 0x438   : > { %v457_v27 = vpop.xlane.xlu1 %456 }
 0x439   : > { %1073 = vrcp.f32 %v457_v27 }
 0x43a   : > { %1075 = vrcp.f32 %v454_v28 }
 0x43e   : > { %v575_v29 = vpop.xlane.xlu0 %574 }
 0x442   : > { %v578_v30 = vpop.xlane.xlu1 %577 }
 0x443   : > { %1077 = vrcp.f32 %v578_v30  ;;  %v1074_v31 = vpop.eup %1073 }
 0x444   : > { %1079 = vrcp.f32 %v575_v29  ;;  %v1076_v33 = vpop.eup %1075  ;;  %v461_v34 = vmul.f32 %v1074_v31, %v1064_v11 }
 0x445   : > { %v460_v35 = vmul.f32 %v1076_v33, %v1062_v7 }
 0x446   : > { %v696_v32 = vpop.xlane.xlu0 %695  ;;  %v585_v20 = vpop.permute.xlu1 %584 }
 0x447   : > { %v462_v38 = vpack.c.bf16 %v461_v34, %v460_v35  ;;  %1081 = vrcp.f32 %v696_v32 }
 0x44a   : > { %v464_v36 = vpop.permute.xlu0 %463 }
 0x44b   : > { %974 = vmatpush3.bf16.msra.mxu0 %v464_v36 }
 0x44c   : > { %985 = vmatprep.subr.bf16.mxu0 %v1109_v0 }
 0x44d   : > { %v1078_v40 = vpop.eup %1077 }
 0x44e   : > { %976 = vmatmul.mubr.msk.bf16.vlgmr.msra.gmra.mrb[4].mxu0 %vm315_vm2, %v462_v38  ;;  %v1080_v41 = vpop.eup %1079  ;;  %v582_v42 = vmul.f32 %v1078_v40, %v1068_v17 }
 0x44f   : > { %986 = vmatpush3.bf16.msra.mxu0 %v585_v20  ;;  %987 = vmatprep.mubr.msk.bf16.mxu0 %vm1110_vm0, %v1109_v0  ;;  %v581_v43 = vmul.f32 %v1080_v41, %v1066_v15 }
 0x450   : > { %997 = vmatprep.subr.bf16.mxu0 %v1109_v0 }
 0x451   : > { %v583_v44 = vpack.c.bf16 %v582_v42, %v581_v43  ;;  %v1082_v47 = vpop.eup %1081 }
 0x452   : > { %v702_v49 = vmul.f32 %v1082_v47, %v1070_v19 }
 0x456   : > { %988 = vmatmul.mubr.msk.bf16.vlgmr.msra.gmra.mrb[8].mxu0 %vm315_vm2, %v583_v44 }
 0x457   : > { %999 = vmatprep.mubr.msk.bf16.mxu0 %vm1110_vm0, %v1109_v0 }
 0x477   : > { %v699_v45 = vpop.xlane.xlu1 %698 }
 0x478   : > { %1083 = vrcp.f32 %v699_v45 }
 0x47b   : > { %v706_v46 = vpop.permute.xlu1 %705 }
 0x47c   : > { %998 = vmatpush3.bf16.msra.mxu0 %v706_v46 }
 0x482   : > { %v1084_v48 = vpop.eup %1083 }
 0x483   : > { %v703_v50 = vmul.f32 %v1084_v48, %v1072_v25 }
 0x485   : > { %v704_v51 = vpack.c.bf16 %v703_v50, %v702_v49 }
 0x487   : > { %1000 = vmatmul.mubr.msk.bf16.vlgmr.msra.gmra.mrb[12].mxu0 %vm315_vm2, %v704_v51 }
 0x521   : > { %v503_v52 = vpop.f32.mrb[4].mxu0 }
 0x522   : > { %v977_v53 = vpop.f32.mrb[5].mxu0 }
 0x523   : > { %v506_v54 = vpop.f32.mrb[6].mxu0 }
 0x524   : > { %v1035_v55 = vpack.i.bf16 %v506_v54, %v503_v52  ;;  %v978_v56 = vpop.f32.mrb[7].mxu0 }
 0x526   : > { %1036 = vrot.lane.b32.xlu1 %v1035_v55, %s1114_s29 }
 0x529   : > { %v624_v0 = vpop.f32.mrb[8].mxu0 }
 0x52a   : > { %v989_v57 = vpop.f32.mrb[9].mxu0 }
 0x52b   : > { %v627_v58 = vpop.f32.mrb[10].mxu0 }
 0x52c   : > { %v1040_v59 = vpack.i.bf16 %v627_v58, %v624_v0  ;;  %v990_v60 = vpop.f32.mrb[11].mxu0 }
 0x52e   : > { %1041 = vrot.lane.b32.xlu0 %v1040_v59, %s1115_s30 }
 0x55a   : > { %v745_v61 = vpop.f32.mrb[12].mxu0 }
 0x55b   : > { %v1001_v62 = vpop.f32.mrb[13].mxu0 }
 0x55c   : > { %v748_v63 = vpop.f32.mrb[14].mxu0 }
 0x55d   : > { %v1045_v1 = vpack.i.bf16 %v748_v63, %v745_v61  ;;  %v1002_v2 = vpop.f32.mrb[15].mxu0 }
 0x55f   : > { %1046 = vrot.lane.b32.xlu1 %v1045_v1, %s1116_s4 }
 0x598   : > { %v1037_v3 = vpop.permute.xlu1 %1036 }
 0x599   : > { %v1039_v5 = vunpack.i.h.bf16 %v1037_v3  ;;  %v1038_v6 = vunpack.i.l.bf16 %v1037_v3 }
 0x59b   : > { %v777_v10 = vsel %vm267_vm1, %v1211_v39, %v1039_v5  ;;  %v776_v11 = vsel %vm267_vm1, %v1209_v37, %v1038_v6 }
 0x5a0   : > { %v1042_v4 = vpop.permute.xlu0 %1041 }
 0x5a1   : > { %v1044_v7 = vunpack.i.h.bf16 %v1042_v4  ;;  %v1043_v8 = vunpack.i.l.bf16 %v1042_v4 }
 0x5a3   : > { %v779_v14 = vsel %vm315_vm2, %v777_v10, %v1044_v7  ;;  %v778_v15 = vsel %vm315_vm2, %v776_v11, %v1043_v8 }
 0x5d1   : > { %v1047_v9 = vpop.permute.xlu1 %1046 }
 0x5d2   : > { %v1049_v12 = vunpack.i.h.bf16 %v1047_v9  ;;  %v1048_v13 = vunpack.i.l.bf16 %v1047_v9 }
 0x5d4   : > { %v782_v16 = vsel %vm780_vm3, %v779_v14, %v1049_v12  ;;  %v781_v17 = vsel %vm780_vm3, %v778_v15, %v1048_v13 }
 0x5d5   : > { %v938_v18 = vpack.c.bf16 %v782_v16, %v782_v16  ;;  %v937_v19 = vpack.c.bf16 %v781_v17, %v781_v17 }
 0x5d7   : > { %793 = vst.msk [vmem:[%s248_s7 + $0x4] sm:$0xf] %vm791_vm4, %v938_v18  ;;  %792 = vst.msk [vmem:[%s248_s7] sm:$0xf] %vm791_vm4, %v937_v19 }
 0x5d8 PF: > { %s13_s14 = sadd.s32 1, %s1107_s14   ;;  %s1263_s12 = smov %s1103_s13 }
 0x5d9   : > { %p10_p5 = scmp.ge.s32.totalorder %s13_s14, 4   ;;  %s1264_s13 = smov %s1266_s15 }
 0x5db   :  { %12 = sbr.rel (!%p10_p5) target bundleno = 2 (0x2), region = 68 }

// kernel: _lambda_.53
= control target key start
LH: loop header
LB: loop body
LE: loop exit
PB: predicated region body
PF: predicated region fallthrough
CT: control target
= control target key end

     0   :  { %s621_s15 = smov 0   ;;  %s623_s16 = smov 0   ;;  %s666_s0 = inlined_call_operand.vmem [shape: bf16[16,32], index: 0, kind: input, shape index: {}]   ;;  %s667_s1 = inlined_call_operand.vmem [shape: bf16[16,32], index: 1, kind: input, shape index: {}]   ;;  %s668_s2 = inlined_call_operand.vmem [shape: bf16[32,128], index: 2, kind: input, shape index: {}]   ;;  %s669_s3 = inlined_call_operand.vmem [shape: f32[1,128], index: 3, kind: input, shape index: {}]   ;;  %s670_s4 = inlined_call_operand.vmem [shape: bf16[16,128], index: 4, kind: output, shape index: {}]  }
   0x1   :  { %s625_s17 = smov 0  }
   0x2 LB: > { %s33_s18 = sadd.s32 1, %s588_s16  ;;  %p521_p0 = scmp.ge.s32.totalorder %s592_s17, 1  ;;  %s592_s17 = sphi %s625_s17, %s14_s17   ;;  %s588_s16 = sphi %s623_s16, %s672_s16   ;;  %s584_s15 = sphi %s621_s15, %s671_s15  }
   0x3   : > { %p35_p1 = scmp.ge.s32.totalorder %s33_s18, 2  ;;  %p225_p2 = scmp.lt.s32.totalorder %s592_s17, 3 }
   0x5   : > { %s674_s18 = smov (%p35_p1, %s33_s18), 0  ;;  %p226_p3 = pnand %p521_p0, %p225_p2 }
   0x6   : > { %v568_v0 = vld [vmem:[%s668_s2] sm:$0xff] (!%p226_p3)   ;;  %v594_v1 = vmov (!%p226_p3), 0.0   ;;  %v569_v2 = vld [vmem:[%s668_s2 + $0x8] sm:$0xff] (!%p226_p3)   ;;  %vm595_vm0 = vmmov (!%p226_p3), 0   ;;  %p273_p4 = scmp.lt.s32.totalorder (!%p226_p3), %s584_s15, 1  ;;  %vm332_vm1 = vcmask (!%p226_p3), 261120  }
   0x7   : > { %229 = sbr.rel (%p226_p3) target bundleno = 238 (0xee), region = 36  ;;  %534 = vmatprep.subr.bf16.mxu0 (!%p226_p3), %v594_v1  ;;  %538 = vmatprep.mubr.msk.bf16.mxu0 (!%p226_p3), %vm595_vm0, %v594_v1  ;;  %v528_v6 = vld [vmem:[%s669_s3] ss:$0 sm:$0xff] (!%p226_p3) }
   0x8   : > { %535 = vmatpush3.bf16.msra.mxu0 (!%p226_p3), %v568_v0 }
   0x9   : > { %536 = vmatprep.subr.bf16.mxu0 (!%p226_p3), %v594_v1 }
   0xc   : > { %537 = vmatpush3.bf16.msra.mxu0 (!%p226_p3), %v569_v2 }
   0xe   : > { %s676_s15 = smov (!%p273_p4, %s584_s15), 1 }
   0xf   : > { %s522_s23 = sshll.u32 %s676_s15, 2 }
  0x10   : > { %s279_s26 = scalar_lea.vmem %s666_s0, %s522_s23  ;;  %s286_s29 = scalar_lea.vmem %s667_s1, %s522_s23 }
  0x11   : > { %v313_v3 = vld [vmem:[%s279_s26] sm:$0xf]  ;;  %s305_s8 = scalar_lea.vmem %s670_s4, %s522_s23 }
  0x12   : > { %v314_v4 = vld [vmem:[%s286_s29] sm:$0xf] }
  0x13   : > { %v315_v5 = vadd.bf16 %v314_v4, %v313_v3 }
  0x15   : > { %539 = vmatmul.mubr.msk.bf16.vlgmr.msra.gmra.mrb[0].mxu0 %vm332_vm1, %v315_v5 }
  0xe8   : > { %v370_v7 = vpop.f32.mrb[0].mxu0 }
  0xe9   : > { %v389_v8 = vadd.f32 %v528_v6, %v370_v7  ;;  %v540_v9 = vpop.f32.mrb[1].mxu0 }
  0xea   : > { %v373_v10 = vpop.f32.mrb[2].mxu0 }
  0xeb   : > { %v390_v11 = vpack.c.bf16 %v389_v8, %v389_v8  ;;  %v541_v12 = vpop.f32.mrb[3].mxu0 }
  0xed   : > { %391 = vst [vmem:[%s305_s8] sm:$0xf] %v390_v11 }
  0xee PF: > { %s14_s17 = sadd.s32 1, %s592_s17   ;;  %s671_s15 = smov %s588_s16 }
  0xef   : > { %p11_p5 = scmp.ge.s32.totalorder %s14_s17, 4   ;;  %s672_s16 = smov %s674_s18 }
  0xf1   :  { %13 = sbr.rel (!%p11_p5) target bundleno = 2 (0x2), region = 83 }

// kernel: _lambda_.54
= control target key start
LH: loop header
LB: loop body
LE: loop exit
PB: predicated region body
PF: predicated region fallthrough
CT: control target
= control target key end

     0   :  { %s543_s12 = smov 0   ;;  %s545_s13 = smov 0   ;;  %s585_s0 = inlined_call_operand.vmem [shape: bf16[16,32], index: 0, kind: input, shape index: {}]   ;;  %s586_s1 = inlined_call_operand.vmem [shape: bf16[32,128], index: 1, kind: input, shape index: {}]   ;;  %s587_s2 = inlined_call_operand.vmem [shape: f32[1,128], index: 2, kind: input, shape index: {}]   ;;  %s588_s3 = inlined_call_operand.vmem [shape: bf16[16,128], index: 3, kind: output, shape index: {}]  }
   0x1   :  { %s547_s14 = smov 0  }
   0x2 LB: > { %s32_s15 = sadd.s32 1, %s515_s13  ;;  %p449_p0 = scmp.ge.s32.totalorder %s519_s14, 1  ;;  %s519_s14 = sphi %s547_s14, %s13_s14   ;;  %s515_s13 = sphi %s545_s13, %s590_s13   ;;  %s511_s12 = sphi %s543_s12, %s589_s12  }
   0x3   : > { %p34_p1 = scmp.ge.s32.totalorder %s32_s15, 2  ;;  %p186_p2 = scmp.lt.s32.totalorder %s519_s14, 3 }
   0x5   : > { %s592_s15 = smov (%p34_p1, %s32_s15), 0  ;;  %p187_p3 = pnand %p449_p0, %p186_p2 }
   0x6   : > { %v495_v0 = vld [vmem:[%s586_s1] sm:$0xff] (!%p187_p3)   ;;  %v521_v1 = vmov (!%p187_p3), 0.0   ;;  %v496_v2 = vld [vmem:[%s586_s1 + $0x8] sm:$0xff] (!%p187_p3)   ;;  %vm522_vm0 = vmmov (!%p187_p3), 0   ;;  %p225_p4 = scmp.lt.s32.totalorder (!%p187_p3), %s511_s12, 1  ;;  %vm275_vm1 = vcmask (!%p187_p3), 261120  }
   0x7   : > { %190 = sbr.rel (%p187_p3) target bundleno = 235 (0xeb), region = 32  ;;  %461 = vmatprep.subr.bf16.mxu0 (!%p187_p3), %v521_v1  ;;  %465 = vmatprep.mubr.msk.bf16.mxu0 (!%p187_p3), %vm522_vm0, %v521_v1  ;;  %v455_v4 = vld [vmem:[%s587_s2] ss:$0 sm:$0xff] (!%p187_p3) }
   0x8   : > { %462 = vmatpush3.bf16.msra.mxu0 (!%p187_p3), %v495_v0 }
   0x9   : > { %463 = vmatprep.subr.bf16.mxu0 (!%p187_p3), %v521_v1 }
   0xc   : > { %464 = vmatpush3.bf16.msra.mxu0 (!%p187_p3), %v496_v2 }
   0xe   : > { %s594_s12 = smov (!%p225_p4, %s511_s12), 1 }
   0xf   : > { %s450_s20 = sshll.u32 %s594_s12, 2 }
  0x10   : > { %s231_s23 = scalar_lea.vmem %s585_s0, %s450_s20  ;;  %s250_s28 = scalar_lea.vmem %s588_s3, %s450_s20 }
  0x11   : > { %v258_v3 = vld [vmem:[%s231_s23] sm:$0xf] }
  0x12   : > { %466 = vmatmul.mubr.msk.bf16.vlgmr.msra.gmra.mrb[0].mxu0 %vm275_vm1, %v258_v3 }
  0xe5   : > { %v313_v5 = vpop.f32.mrb[0].mxu0 }
  0xe6   : > { %v332_v6 = vadd.f32 %v455_v4, %v313_v5  ;;  %v467_v7 = vpop.f32.mrb[1].mxu0 }
  0xe7   : > { %v316_v8 = vpop.f32.mrb[2].mxu0 }
  0xe8   : > { %v333_v9 = vpack.c.bf16 %v332_v6, %v332_v6  ;;  %v468_v10 = vpop.f32.mrb[3].mxu0 }
  0xea   : > { %334 = vst [vmem:[%s250_s28] sm:$0xf] %v333_v9 }
  0xeb PF: > { %s13_s14 = sadd.s32 1, %s519_s14   ;;  %s589_s12 = smov %s515_s13 }
  0xec   : > { %p10_p5 = scmp.ge.s32.totalorder %s13_s14, 4   ;;  %s590_s13 = smov %s592_s15 }
  0xee   :  { %12 = sbr.rel (!%p10_p5) target bundleno = 2 (0x2), region = 76 }

// kernel: _lambda_.55
= control target key start
LH: loop header
LB: loop body
LE: loop exit
PB: predicated region body
PF: predicated region fallthrough
CT: control target
= control target key end

     0   :  { %s987_s12 = smov 0   ;;  %s989_s13 = smov 0   ;;  %s1098_s0 = inlined_call_operand.vmem [shape: bf16[2,8,32], index: 0, kind: input, shape index: {}]   ;;  %s1099_s1 = inlined_call_operand.vmem [shape: bf16[2,8,32], index: 1, kind: input, shape index: {}]   ;;  %s1100_s2 = inlined_call_operand.vmem [shape: bf16[2,8,32], index: 2, kind: input, shape index: {}]   ;;  %s1101_s3 = inlined_call_operand.vmem [shape: bf16[2,8,32], index: 3, kind: output, shape index: {}]  }
   0x1   :  { %s991_s14 = smov 0  }
   0x2 LB: > { %s25_s15 = sadd.s32 1, %s953_s13  ;;  %p802_p0 = scmp.ge.s32.totalorder %s957_s14, 1  ;;  %s957_s14 = sphi %s991_s14, %s13_s14   ;;  %s953_s13 = sphi %s989_s13, %s1103_s13   ;;  %s949_s12 = sphi %s987_s12, %s1102_s12  }
   0x3   : > { %p27_p1 = scmp.ge.s32.totalorder %s25_s15, 2  ;;  %p173_p2 = scmp.lt.s32.totalorder %s957_s14, 3 }
   0x5   : > { %s1105_s15 = smov (%p27_p1, %s25_s15), 0  ;;  %p174_p3 = pnand %p802_p0, %p173_p2 }
   0x6   : > { %p209_p4 = scmp.lt.s32.totalorder (!%p174_p3), %s949_s12, 1  ;;  %v959_v0 = vmov (!%p174_p3), 0.0   ;;  %vm960_vm0 = vmmov (!%p174_p3), 0   ;;  %vm235_vm1 = vcmask (!%p174_p3), 64512   ;;  %s961_s23 = smov (!%p174_p3), 120   ;;  %vm297_vm2 = vcmask (!%p174_p3), 1043456  }
   0x7   : > { %177 = sbr.rel (%p174_p3) target bundleno = 1474 (0x5c2), region = 32  ;;  %836 = vmatprep.subr.bf16.mxu0 (!%p174_p3), %v959_v0  ;;  %838 = vmatprep.mubr.msk.bf16.mxu0 (!%p174_p3), %vm960_vm0, %v959_v0  ;;  %s962_s24 = smov (!%p174_p3), 112   ;;  %vm693_vm3 = vcmask (!%p174_p3), 130048   ;;  %vm695_vm4 = vcmask (!%p174_p3), 195584   ;;  %vm698_vm5 = vcmask (!%p174_p3), 257024  }
   0x8   : > { %842 = vmatprep.subr.bf16.mxu1 (!%p174_p3), %v959_v0  ;;  %844 = vmatprep.mubr.msk.bf16.mxu1 (!%p174_p3), %vm960_vm0, %v959_v0  ;;  %s963_s25 = smov (!%p174_p3), 104   ;;  %s964_s29 = smov (!%p174_p3), 8  }
   0x9   : > { %s965_s30 = smov (!%p174_p3), 16   ;;  %s966_s4 = smov (!%p174_p3), 24  }
   0xe   : > { %s1107_s12 = smov (!%p209_p4, %s949_s12), 1 }
   0xf   : > { %s1011_s16 = sshll.u32 %s1107_s12, 2 }
  0x10   : > { %s219_s19 = scalar_lea.vmem %s1099_s1, %s1011_s16  ;;  %s215_s22 = scalar_lea.vmem %s1098_s0, %s1011_s16 }
  0x11   : > { %v233_v1 = vld [vmem:[%s219_s19] sm:$0xf]  ;;  %s223_s28 = scalar_lea.vmem %s1100_s2, %s1011_s16  ;;  %s230_s7 = scalar_lea.vmem %s1101_s3, %s1011_s16 }
  0x12   : > { %v240_v2 = vsel %vm235_vm1, %v233_v1, 0  ;;  %v232_v3 = vld [vmem:[%s215_s22] sm:$0xf]  ;;  %v810_v9 = vcombine.low %v233_v1, %v233_v1 }
  0x13   : > { %837 = vmatpush3.bf16.xpose.msra.mxu0 %v240_v2  ;;  %v809_v10 = vcombine.low %v232_v3, %v232_v3  ;;  %v1037_v16 = vld [vmem:[%s223_s28] sm:$0xf] }
  0x14   : > { %854 = vmatprep.subr.bf16.mxu0 %v959_v0  ;;  %349 = vrot.lane.b32.xlu1 %v810_v9, %s961_s23  ;;  %v299_v17 = vsel %vm297_vm2, %v1037_v16, 0  ;;  %v812_v60 = vcombine.low %v1037_v16, %v1037_v16 }
  0x15   : > { %843 = vmatpush3.bf16.msra.mxu1 %v299_v17 }
  0x16   : > { %848 = vmatprep.subr.bf16.mxu1 %v959_v0 }
  0x18   : > { %344 = vrot.lane.b32.xlu1 %v809_v10, %s961_s23 }
  0x1a   : > { %839 = vmatmul.mubr.msk.bf16.vlgmr.msra.gmra.mrb[0].mxu0 %vm235_vm1, %v232_v3 }
  0x1b   : > { %856 = vmatprep.mubr.msk.bf16.mxu0 %vm960_vm0, %v959_v0 }
  0x1c   : > { %460 = vrot.lane.b32.xlu1 %v809_v10, %s962_s24 }
  0x20   : > { %572 = vrot.lane.b32.xlu1 %v810_v9, %s963_s25 }
  0x24   : > { %570 = vrot.lane.b32.xlu1 %v809_v10, %s963_s25 }
  0x86   : > { %v350_v20 = vpop.permute.xlu1 %349 }
  0x87   : > { %v355_v22 = vsel %vm235_vm1, %v350_v20, 0 }
  0x8a   : > { %v345_v24 = vpop.permute.xlu1 %344 }
  0x8e   : > { %v461_v26 = vpop.permute.xlu1 %460 }
  0x92   : > { %v573_v28 = vpop.permute.xlu1 %572 }
  0x93   : > { %v578_v29 = vsel %vm235_vm1, %v573_v28, 0 }
  0x96   : > { %v571_v30 = vpop.permute.xlu1 %570 }
  0xed   : > { %v276_v4 = vpop.f32.mrb[0].mxu0 }
  0xee   : > { %v840_v5 = vpop.f32.mrb[1].mxu0  ;;  %v282_v6 = vsel %vm235_vm1, %v276_v4, -inf }
  0xef   : > { %283 = vmax.xlane.f32.xlu0 %v282_v6  ;;  %v279_v7 = vpop.f32.mrb[2].mxu0 }
  0xf0   : > { %v841_v8 = vpop.f32.mrb[3].mxu0 }
 0x17c   : > { %v284_v11 = vpop.xlane.xlu0 %283 }
 0x17d   : > { %v285_v12 = vsub.f32 %v276_v4, %v284_v11 }
 0x17f   : > { %v286_v13 = vmul.f32 1.442695, %v285_v12 }
 0x181   : > { %919 = vpow2.f32 %v286_v13 }
 0x18b   : > { %v920_v14 = vpop.eup %919 }
 0x18c   : > { %v288_v15 = vsel %vm235_vm1, %v920_v14, 0.0 }
 0x18d   : > { %289 = vadd.xlane.f32.xlu0 %v288_v15 }
 0x1a3   : > { %462 = vrot.lane.b32.xlu0 %v810_v9, %s962_s24 }
 0x21a   : > { %v290_v18 = vpop.xlane.xlu0 %289 }
 0x21b   : > { %921 = vrcp.f32 %v290_v18 }
 0x21e   : > { %v463_v25 = vpop.permute.xlu0 %462 }
 0x21f   : > { %v468_v27 = vsel %vm235_vm1, %v463_v25, 0 }
 0x225   : > { %v922_v19 = vpop.eup %921 }
 0x226   : > { %v292_v21 = vmul.f32 %v922_v19, %v920_v14 }
 0x228   : > { %v293_v23 = vpack.c.bf16 %v292_v21, %v292_v21 }
 0x22a   : > { %845 = vmatmul.mubr.msk.bf16.vlgmr.msra.gmra.mrb[0].mxu1 %vm235_vm1, %v293_v23 }
 0x22b   : > { %849 = vmatpush3.bf16.xpose.msra.mxu1 %v355_v22  ;;  %850 = vmatprep.mubr.msk.bf16.mxu1 %vm960_vm0, %v959_v0 }
 0x22c   : > { %860 = vmatprep.subr.bf16.mxu1 %v959_v0 }
 0x232   : > { %851 = vmatmul.mubr.msk.bf16.vlgmr.msra.gmra.mrb[4].mxu1 %vm235_vm1, %v345_v24 }
 0x233   : > { %861 = vmatpush3.bf16.xpose.msra.mxu1 %v468_v27  ;;  %862 = vmatprep.mubr.msk.bf16.mxu1 %vm960_vm0, %v959_v0 }
 0x234   : > { %872 = vmatprep.subr.bf16.mxu1 %v959_v0 }
 0x23a   : > { %863 = vmatmul.mubr.msk.bf16.vlgmr.msra.gmra.mrb[8].mxu1 %vm235_vm1, %v461_v26 }
 0x23b   : > { %873 = vmatpush3.bf16.xpose.msra.mxu1 %v578_v29  ;;  %874 = vmatprep.mubr.msk.bf16.mxu1 %vm960_vm0, %v959_v0 }
 0x242   : > { %875 = vmatmul.mubr.msk.bf16.vlgmr.msra.gmra.mrb[12].mxu1 %vm235_vm1, %v571_v30 }
 0x2fd   : > { %v1058_v31 = vpop.f32.mrb[0].mxu1 }
 0x2fe   : > { %v846_v32 = vpop.f32.mrb[1].mxu1 }
 0x2ff   : > { %v338_v33 = vpop.f32.mrb[2].mxu1 }
 0x300   : > { %v847_v34 = vpop.f32.mrb[3].mxu1 }
 0x305   : > { %v391_v35 = vpop.f32.mrb[4].mxu1 }
 0x306   : > { %v852_v36 = vpop.f32.mrb[5].mxu1  ;;  %v397_v37 = vsel %vm235_vm1, %v391_v35, -inf }
 0x307   : > { %398 = vmax.xlane.f32.xlu1 %v397_v37  ;;  %v394_v38 = vpop.f32.mrb[6].mxu1 }
 0x308   : > { %v853_v39 = vpop.f32.mrb[7].mxu1 }
 0x30d   : > { %v504_v40 = vpop.f32.mrb[8].mxu1 }
 0x30e   : > { %v510_v41 = vsel %vm235_vm1, %v504_v40, -inf  ;;  %v864_v42 = vpop.f32.mrb[9].mxu1 }
 0x30f   : > { %511 = vmax.xlane.f32.xlu0 %v510_v41  ;;  %v507_v43 = vpop.f32.mrb[10].mxu1 }
 0x310   : > { %v865_v44 = vpop.f32.mrb[11].mxu1 }
 0x315   : > { %v614_v45 = vpop.f32.mrb[12].mxu1 }
 0x316   : > { %v620_v46 = vsel %vm235_vm1, %v614_v45, -inf  ;;  %v876_v47 = vpop.f32.mrb[13].mxu1 }
 0x317   : > { %621 = vmax.xlane.f32.xlu1 %v620_v46  ;;  %v617_v48 = vpop.f32.mrb[14].mxu1 }
 0x318   : > { %v877_v49 = vpop.f32.mrb[15].mxu1 }
 0x394   : > { %v399_v50 = vpop.xlane.xlu1 %398 }
 0x395   : > { %v400_v51 = vsub.f32 %v391_v35, %v399_v50 }
 0x397   : > { %v401_v52 = vmul.f32 1.442695, %v400_v51 }
 0x399   : > { %923 = vpow2.f32 %v401_v52 }
 0x39c   : > { %v512_v53 = vpop.xlane.xlu0 %511 }
 0x39d   : > { %v513_v54 = vsub.f32 %v504_v40, %v512_v53 }
 0x39f   : > { %v514_v55 = vmul.f32 1.442695, %v513_v54 }
 0x3a1   : > { %925 = vpow2.f32 %v514_v55 }
 0x3a3   : > { %v924_v56 = vpop.eup %923 }
 0x3a4   : > { %v403_v57 = vsel %vm235_vm1, %v924_v56, 0.0  ;;  %v622_v61 = vpop.xlane.xlu1 %621 }
 0x3a5   : > { %404 = vadd.xlane.f32.xlu1 %v403_v57  ;;  %v623_v62 = vsub.f32 %v614_v45, %v622_v61 }
 0x3a7   : > { %v624_v63 = vmul.f32 1.442695, %v623_v62 }
 0x3a9   : > { %927 = vpow2.f32 %v624_v63 }
 0x3ab   : > { %v926_v58 = vpop.eup %925 }
 0x3ac   : > { %v516_v59 = vsel %vm235_vm1, %v926_v58, 0.0 }
 0x3ad   : > { %517 = vadd.xlane.f32.xlu0 %v516_v59 }
 0x3b3   : > { %v928_v1 = vpop.eup %927 }
 0x3b4   : > { %v626_v2 = vsel %vm235_vm1, %v928_v1, 0.0 }
 0x3b6   : > { %522 = vrot.lane.b32.xlu1 %v812_v60, %s962_s24 }
 0x3c3   : > { %412 = vrot.lane.b32.xlu0 %v812_v60, %s961_s23 }
 0x3da   : > { %627 = vadd.xlane.f32.xlu1 %v626_v2 }
 0x3eb   : > { %632 = vrot.lane.b32.xlu1 %v812_v60, %s963_s25 }
 0x432   : > { %v405_v3 = vpop.xlane.xlu1 %404 }
 0x433   : > { %929 = vrcp.f32 %v405_v3 }
 0x436   : > { %v523_v9 = vpop.permute.xlu1 %522 }
 0x437   : > { %v528_v11 = vsel %vm297_vm2, %v523_v9, 0 }
 0x43a   : > { %v518_v4 = vpop.xlane.xlu0 %517 }
 0x43b   : > { %931 = vrcp.f32 %v518_v4 }
 0x43d   : > { %v930_v5 = vpop.eup %929 }
 0x43e   : > { %v407_v6 = vmul.f32 %v930_v5, %v924_v56  ;;  %v413_v7 = vpop.permute.xlu0 %412 }
 0x43f   : > { %v418_v8 = vsel %vm297_vm2, %v413_v7, 0 }
 0x440   : > { %855 = vmatpush3.bf16.msra.mxu0 %v418_v8  ;;  %v408_v10 = vpack.c.bf16 %v407_v6, %v407_v6 }
 0x441   : > { %866 = vmatprep.subr.bf16.mxu0 %v959_v0 }
 0x443   : > { %857 = vmatmul.mubr.msk.bf16.vlgmr.msra.gmra.mrb[4].mxu0 %vm235_vm1, %v408_v10 }
 0x444   : > { %867 = vmatpush3.bf16.msra.mxu0 %v528_v11  ;;  %868 = vmatprep.mubr.msk.bf16.mxu0 %vm960_vm0, %v959_v0 }
 0x445   : > { %v932_v12 = vpop.eup %931  ;;  %878 = vmatprep.subr.bf16.mxu0 %v959_v0 }
 0x446   : > { %v520_v13 = vmul.f32 %v932_v12, %v926_v58 }
 0x448   : > { %v521_v14 = vpack.c.bf16 %v520_v13, %v520_v13 }
 0x44b   : > { %869 = vmatmul.mubr.msk.bf16.vlgmr.msra.gmra.mrb[8].mxu0 %vm235_vm1, %v521_v14 }
 0x44c   : > { %880 = vmatprep.mubr.msk.bf16.mxu0 %vm960_vm0, %v959_v0 }
 0x467   : > { %v628_v15 = vpop.xlane.xlu1 %627 }
 0x468   : > { %933 = vrcp.f32 %v628_v15 }
 0x46b   : > { %v633_v16 = vpop.permute.xlu1 %632 }
 0x46c   : > { %v638_v17 = vsel %vm297_vm2, %v633_v16, 0 }
 0x46d   : > { %879 = vmatpush3.bf16.msra.mxu0 %v638_v17 }
 0x472   : > { %v934_v18 = vpop.eup %933 }
 0x473   : > { %v630_v19 = vmul.f32 %v934_v18, %v928_v1 }
 0x475   : > { %v631_v20 = vpack.c.bf16 %v630_v19, %v630_v19 }
 0x477   : > { %881 = vmatmul.mubr.msk.bf16.vlgmr.msra.gmra.mrb[12].mxu0 %vm235_vm1, %v631_v20 }
 0x516   : > { %v454_v21 = vpop.f32.mrb[4].mxu0 }
 0x517   : > { %681 = vrot.lane.b32.xlu0 %v454_v21, %s964_s29  ;;  %v858_v22 = vpop.f32.mrb[5].mxu0 }
 0x518   : > { %v457_v23 = vpop.f32.mrb[6].mxu0 }
 0x519   : > { %v859_v24 = vpop.f32.mrb[7].mxu0 }
 0x51e   : > { %v564_v25 = vpop.f32.mrb[8].mxu0 }
 0x51f   : > { %685 = vrot.lane.b32.xlu1 %v564_v25, %s965_s30  ;;  %v870_v0 = vpop.f32.mrb[9].mxu0 }
 0x520   : > { %v567_v26 = vpop.f32.mrb[10].mxu0 }
 0x521   : > { %v871_v27 = vpop.f32.mrb[11].mxu0 }
 0x54a   : > { %v674_v28 = vpop.f32.mrb[12].mxu0 }
 0x54b   : > { %689 = vrot.lane.b32.xlu0 %v674_v28, %s966_s4  ;;  %v882_v29 = vpop.f32.mrb[13].mxu0 }
 0x54c   : > { %v677_v30 = vpop.f32.mrb[14].mxu0 }
 0x54d   : > { %v883_v32 = vpop.f32.mrb[15].mxu0 }
 0x589   : > { %v682_v33 = vpop.permute.xlu0 %681 }
 0x58a   : > { %v692_v35 = vsel %vm235_vm1, %v1058_v31, %v682_v33 }
 0x591   : > { %v686_v34 = vpop.permute.xlu1 %685 }
 0x592   : > { %v694_v36 = vsel %vm693_vm3, %v692_v35, %v686_v34 }
 0x5bd   : > { %v690_v37 = vpop.permute.xlu0 %689 }
 0x5be   : > { %v696_v38 = vsel %vm695_vm4, %v694_v36, %v690_v37 }
 0x5bf   : > { %v697_v39 = vpack.c.bf16 %v696_v38, %v696_v38 }
 0x5c1   : > { %699 = vst.msk [vmem:[%s230_s7] sm:$0xf] %vm698_vm5, %v697_v39 }
 0x5c2 PF: > { %s13_s14 = sadd.s32 1, %s957_s14   ;;  %s1102_s12 = smov %s953_s13 }
 0x5c3   : > { %p10_p5 = scmp.ge.s32.totalorder %s13_s14, 4   ;;  %s1103_s13 = smov %s1105_s15 }
 0x5c5   :  { %12 = sbr.rel (!%p10_p5) target bundleno = 2 (0x2), region = 68 }

// kernel: _lambda_.56
= control target key start
LH: loop header
LB: loop body
LE: loop exit
PB: predicated region body
PF: predicated region fallthrough
CT: control target
= control target key end

     0   :  { %s636_s21 = smov 0   ;;  %s638_s22 = smov 0   ;;  %s692_s0 = inlined_call_operand.vmem [shape: bf16[16,32], index: 0, kind: input, shape index: {}]   ;;  %s693_s1 = inlined_call_operand.vmem [shape: bf16[32,128], index: 1, kind: input, shape index: {}]   ;;  %s694_s2 = inlined_call_operand.vmem [shape: f32[1,128], index: 2, kind: input, shape index: {}]   ;;  %s695_s3 = inlined_call_operand.vmem [shape: bf16[16,128], index: 3, kind: input, shape index: {}]   ;;  %s696_s4 = inlined_call_operand.vmem [shape: f32[1,128], index: 4, kind: input, shape index: {}]   ;;  %s697_s5 = inlined_call_operand.vmem [shape: f32[1,128], index: 5, kind: input, shape index: {}]   ;;  %s698_s6 = inlined_call_operand.vmem [shape: bf16[16,128], index: 6, kind: output, shape index: {}]  }
   0x1   :  { %s640_s23 = smov 0  }
   0x2 LB: > { %s28_s24 = sadd.s32 1, %s593_s22  ;;  %p522_p0 = scmp.ge.s32.totalorder %s597_s23, 1  ;;  %s597_s23 = sphi %s640_s23, %s16_s23   ;;  %s593_s22 = sphi %s638_s22, %s700_s22   ;;  %s589_s21 = sphi %s636_s21, %s699_s21  }
   0x3   : > { %p30_p1 = scmp.ge.s32.totalorder %s28_s24, 2  ;;  %p248_p2 = scmp.lt.s32.totalorder %s597_s23, 3 }
   0x5   : > { %s702_s24 = smov (%p30_p1, %s28_s24), 0  ;;  %p249_p3 = pnand %p522_p0, %p248_p2 }
   0x6   : > { %v571_v0 = vld [vmem:[%s693_s1] sm:$0xff] (!%p249_p3)   ;;  %v599_v1 = vmov (!%p249_p3), 0.0   ;;  %v572_v2 = vld [vmem:[%s693_s1 + $0x8] sm:$0xff] (!%p249_p3)   ;;  %vm600_vm0 = vmmov (!%p249_p3), 0   ;;  %p288_p4 = scmp.lt.s32.totalorder (!%p249_p3), %s589_s21, 1  ;;  %vm333_vm1 = vcmask (!%p249_p3), 261120  }
   0x7   : > { %252 = sbr.rel (%p249_p3) target bundleno = 406 (0x196), region = 44  ;;  %537 = vmatprep.subr.bf16.mxu0 (!%p249_p3), %v599_v1  ;;  %541 = vmatprep.mubr.msk.bf16.mxu0 (!%p249_p3), %vm600_vm0, %v599_v1  ;;  %v529_v5 = vld [vmem:[%s694_s2] ss:$0 sm:$0xff] (!%p249_p3) }
   0x8   : > { %538 = vmatpush3.bf16.msra.mxu0 (!%p249_p3), %v571_v0  ;;  %v530_v23 = vld [vmem:[%s696_s4] ss:$0 sm:$0xff] (!%p249_p3) }
   0x9   : > { %539 = vmatprep.subr.bf16.mxu0 (!%p249_p3), %v599_v1  ;;  %v531_v25 = vld [vmem:[%s697_s5] ss:$0 sm:$0xff] (!%p249_p3) }
   0xc   : > { %540 = vmatpush3.bf16.msra.mxu0 (!%p249_p3), %v572_v2 }
   0xe   : > { %s704_s21 = smov (!%p288_p4, %s589_s21), 1 }
   0xf   : > { %s660_s29 = sshll.u32 %s704_s21, 2 }
  0x10   : > { %s294_s8 = scalar_lea.vmem %s692_s0, %s660_s29  ;;  %s304_s11 = scalar_lea.vmem %s695_s3, %s660_s29 }
  0x11   : > { %v316_v3 = vld [vmem:[%s294_s8] sm:$0xf]  ;;  %s308_s20 = scalar_lea.vmem %s698_s6, %s660_s29 }
  0x12   : > { %542 = vmatmul.mubr.msk.bf16.vlgmr.msra.gmra.mrb[0].mxu0 %vm333_vm1, %v316_v3  ;;  %v391_v4 = vld [vmem:[%s304_s11] sm:$0xf] }
  0x13   : > { %v392_v6 = vunpack.c.l.bf16 %v391_v4 }
  0xe5   : > { %v371_v7 = vpop.f32.mrb[0].mxu0 }
  0xe6   : > { %v390_v8 = vadd.f32 %v529_v5, %v371_v7  ;;  %v543_v9 = vpop.f32.mrb[1].mxu0 }
  0xe7   : > { %v374_v10 = vpop.f32.mrb[2].mxu0 }
  0xe8   : > { %v393_v11 = vadd.f32 %v392_v6, %v390_v8  ;;  %v544_v12 = vpop.f32.mrb[3].mxu0 }
  0xea   : > { %396 = vadd.xlane.f32.xlu0 %v393_v11  ;;  %v398_v13 = vmul.f32 %v393_v11, %v393_v11 }
  0xee   : > { %399 = vadd.xlane.f32.xlu0 %v398_v13 }
 0x177   : > { %v397_v14 = vpop.xlane.xlu0 %396 }
 0x178   : > { %v401_v15 = vmul.f32 0.03125, %v397_v14 }
 0x17a   : > { %v403_v17 = vmul.f32 %v401_v15, %v401_v15  ;;  %v405_v21 = vsub.f32 %v393_v11, %v401_v15 }
 0x17b   : > { %v400_v16 = vpop.xlane.xlu0 %399 }
 0x17c   : > { %v402_v18 = vmul.f32 0.03125, %v400_v16 }
 0x17e   : > { %v404_v19 = vsub.f32 %v402_v18, %v403_v17 }
 0x180   : > { %v406_v20 = vadd.f32 1e-05, %v404_v19 }
 0x182   : > { %573 = vrsqrt.f32 %v406_v20 }
 0x18c   : > { %v574_v22 = vpop.eup %573 }
 0x18d   : > { %v408_v24 = vmul.f32 %v574_v22, %v405_v21 }
 0x18f   : > { %v415_v26 = vmul.f32 %v530_v23, %v408_v24 }
 0x191   : > { %v422_v27 = vadd.f32 %v531_v25, %v415_v26 }
 0x193   : > { %v423_v28 = vpack.c.bf16 %v422_v27, %v422_v27 }
 0x195   : > { %424 = vst [vmem:[%s308_s20] sm:$0xf] %v423_v28 }
 0x196 PF: > { %s16_s23 = sadd.s32 1, %s597_s23   ;;  %s699_s21 = smov %s593_s22 }
 0x197   : > { %p13_p5 = scmp.ge.s32.totalorder %s16_s23, 4   ;;  %s700_s22 = smov %s702_s24 }
 0x199   :  { %15 = sbr.rel (!%p13_p5) target bundleno = 2 (0x2), region = 88 }

// kernel: _lambda_.62
= control target key start
LH: loop header
LB: loop body
LE: loop exit
PB: predicated region body
PF: predicated region fallthrough
CT: control target
= control target key end

     0   :  { %s544_s12 = smov 0   ;;  %s546_s13 = smov 0   ;;  %s586_s0 = inlined_call_operand.vmem [shape: bf16[16,32], index: 0, kind: input, shape index: {}]   ;;  %s587_s1 = inlined_call_operand.vmem [shape: bf16[32,128], index: 1, kind: input, shape index: {}]   ;;  %s588_s2 = inlined_call_operand.vmem [shape: f32[1,128], index: 2, kind: input, shape index: {}]   ;;  %s589_s3 = inlined_call_operand.vmem [shape: bf16[16,128], index: 3, kind: output, shape index: {}]  }
   0x1   :  { %s548_s14 = smov 0  }
   0x2 LB: > { %s32_s15 = sadd.s32 1, %s516_s13  ;;  %p450_p0 = scmp.ge.s32.totalorder %s520_s14, 1  ;;  %s520_s14 = sphi %s548_s14, %s13_s14   ;;  %s516_s13 = sphi %s546_s13, %s591_s13   ;;  %s512_s12 = sphi %s544_s12, %s590_s12  }
   0x3   : > { %p34_p1 = scmp.ge.s32.totalorder %s32_s15, 2  ;;  %p186_p2 = scmp.lt.s32.totalorder %s520_s14, 3 }
   0x5   : > { %s593_s15 = smov (%p34_p1, %s32_s15), 0  ;;  %p187_p3 = pnand %p450_p0, %p186_p2 }
   0x6   : > { %v496_v0 = vld [vmem:[%s587_s1] sm:$0xff] (!%p187_p3)   ;;  %v522_v1 = vmov (!%p187_p3), 0.0   ;;  %v497_v2 = vld [vmem:[%s587_s1 + $0x8] sm:$0xff] (!%p187_p3)   ;;  %vm523_vm0 = vmmov (!%p187_p3), 0   ;;  %p225_p4 = scmp.lt.s32.totalorder (!%p187_p3), %s512_s12, 1  ;;  %vm275_vm1 = vcmask (!%p187_p3), 261120  }
   0x7   : > { %190 = sbr.rel (%p187_p3) target bundleno = 237 (0xed), region = 32  ;;  %462 = vmatprep.subr.bf16.mxu0 (!%p187_p3), %v522_v1  ;;  %466 = vmatprep.mubr.msk.bf16.mxu0 (!%p187_p3), %vm523_vm0, %v522_v1  ;;  %v456_v4 = vld [vmem:[%s588_s2] ss:$0 sm:$0xff] (!%p187_p3) }
   0x8   : > { %463 = vmatpush3.bf16.msra.mxu0 (!%p187_p3), %v496_v0 }
   0x9   : > { %464 = vmatprep.subr.bf16.mxu0 (!%p187_p3), %v522_v1 }
   0xc   : > { %465 = vmatpush3.bf16.msra.mxu0 (!%p187_p3), %v497_v2 }
   0xe   : > { %s595_s12 = smov (!%p225_p4, %s512_s12), 1 }
   0xf   : > { %s451_s20 = sshll.u32 %s595_s12, 2 }
  0x10   : > { %s231_s23 = scalar_lea.vmem %s586_s0, %s451_s20  ;;  %s250_s28 = scalar_lea.vmem %s589_s3, %s451_s20 }
  0x11   : > { %v258_v3 = vld [vmem:[%s231_s23] sm:$0xf] }
  0x12   : > { %467 = vmatmul.mubr.msk.bf16.vlgmr.msra.gmra.mrb[0].mxu0 %vm275_vm1, %v258_v3 }
  0xe5   : > { %v313_v5 = vpop.f32.mrb[0].mxu0 }
  0xe6   : > { %v332_v6 = vadd.f32 %v456_v4, %v313_v5  ;;  %v468_v7 = vpop.f32.mrb[1].mxu0 }
  0xe7   : > { %v316_v8 = vpop.f32.mrb[2].mxu0 }
  0xe8   : > { %v333_v9 = vmax.f32 %v332_v6, 0.0  ;;  %v469_v10 = vpop.f32.mrb[3].mxu0 }
  0xea   : > { %v334_v11 = vpack.c.bf16 %v333_v9, %v333_v9 }
  0xec   : > { %335 = vst [vmem:[%s250_s28] sm:$0xf] %v334_v11 }
  0xed PF: > { %s13_s14 = sadd.s32 1, %s520_s14   ;;  %s590_s12 = smov %s516_s13 }
  0xee   : > { %p10_p5 = scmp.ge.s32.totalorder %s13_s14, 4   ;;  %s591_s13 = smov %s593_s15 }
  0xf0   :  { %12 = sbr.rel (!%p10_p5) target bundleno = 2 (0x2), region = 76 }

// kernel: _lambda_.60
= control target key start
LH: loop header
LB: loop body
LE: loop exit
PB: predicated region body
PF: predicated region fallthrough
CT: control target
= control target key end

     0   :  { %s994_s12 = smov 0   ;;  %s996_s13 = smov 0   ;;  %s1109_s0 = inlined_call_operand.vmem [shape: bf16[2,8,32], index: 0, kind: input, shape index: {}]   ;;  %s1110_s1 = inlined_call_operand.vmem [shape: bf16[2,16,32], index: 1, kind: input, shape index: {}]   ;;  %s1111_s2 = inlined_call_operand.vmem [shape: bf16[2,16,32], index: 2, kind: input, shape index: {}]   ;;  %s1112_s3 = inlined_call_operand.vmem [shape: bf16[2,8,32], index: 3, kind: output, shape index: {}]  }
   0x1   :  { %s998_s14 = smov 0  }
   0x2 LB: > { %s25_s15 = sadd.s32 1, %s960_s13  ;;  %p805_p0 = scmp.ge.s32.totalorder %s964_s14, 1  ;;  %s964_s14 = sphi %s998_s14, %s13_s14   ;;  %s960_s13 = sphi %s996_s13, %s1114_s13   ;;  %s956_s12 = sphi %s994_s12, %s1113_s12  }
   0x3   : > { %p27_p1 = scmp.ge.s32.totalorder %s25_s15, 2  ;;  %p175_p2 = scmp.lt.s32.totalorder %s964_s14, 3 }
   0x5   : > { %s1116_s15 = smov (%p27_p1, %s25_s15), 0  ;;  %p176_p3 = pnand %p805_p0, %p175_p2 }
   0x6   : > { %p213_p4 = scmp.lt.s32.totalorder (!%p176_p3), %s956_s12, 1  ;;  %v966_v0 = vmov (!%p176_p3), 0.0   ;;  %vm967_vm0 = vmmov (!%p176_p3), 0   ;;  %vm248_vm1 = vcmask (!%p176_p3), 64512   ;;  %vm295_vm2 = vcmask (!%p176_p3), 130048   ;;  %s968_s24 = smov (!%p176_p3), 120  }
   0x7   : > { %179 = sbr.rel (%p176_p3) target bundleno = 1474 (0x5c2), region = 32  ;;  %843 = vmatprep.subr.bf16.mxu0 (!%p176_p3), %v966_v0  ;;  %845 = vmatprep.mubr.msk.bf16.mxu0 (!%p176_p3), %vm967_vm0, %v966_v0  ;;  %s969_s25 = smov (!%p176_p3), 112   ;;  %vm698_vm3 = vcmask (!%p176_p3), 195584   ;;  %vm701_vm4 = vcmask (!%p176_p3), 257024  }
   0x8   : > { %849 = vmatprep.subr.bf16.mxu1 (!%p176_p3), %v966_v0  ;;  %851 = vmatprep.mubr.msk.bf16.mxu1 (!%p176_p3), %vm967_vm0, %v966_v0  ;;  %s970_s26 = smov (!%p176_p3), 104   ;;  %s971_s30 = smov (!%p176_p3), 8  }
   0x9   : > { %s972_s4 = smov (!%p176_p3), 16   ;;  %s973_s5 = smov (!%p176_p3), 24  }
   0xe   : > { %s1118_s12 = smov (!%p213_p4, %s956_s12), 1 }
   0xf   : > { %s825_s16 = sshll.u32 %s1118_s12, 3  ;;  %s806_s20 = sshll.u32 %s1118_s12, 2 }
  0x10   : > { %s224_s19 = scalar_lea.vmem %s1110_s1, %s825_s16  ;;  %s219_s23 = scalar_lea.vmem %s1109_s0, %s806_s20 }
  0x11   : > { %v923_v1 = vld [vmem:[%s224_s19] sm:$0xff]   ;;  %s229_s29 = scalar_lea.vmem %s1111_s2, %s825_s16  ;;  %s236_s8 = scalar_lea.vmem %s1112_s3, %s806_s20 }
  0x12   : > { %v253_v2 = vsel %vm248_vm1, %v923_v1, 0  ;;  %v238_v3 = vld [vmem:[%s219_s23] sm:$0xf]  ;;  %362 = vrot.lane.b32.xlu1 %v923_v1, %s968_s24 }
  0x13   : > { %844 = vmatpush3.bf16.xpose.msra.mxu0 %v253_v2  ;;  %v816_v9 = vcombine.low %v238_v3, %v238_v3  ;;  %v1049_v15 = vld [vmem:[%s229_s29] sm:$0xff]  }
  0x14   : > { %861 = vmatprep.subr.bf16.mxu0 %v966_v0  ;;  %850 = vmatpush3.bf16.msra.mxu1 %v1049_v15 }
  0x15   : > { %855 = vmatprep.subr.bf16.mxu1 %v966_v0 }
  0x16   : > { %360 = vrot.lane.b32.xlu1 %v816_v9, %s968_s24 }
  0x1a   : > { %846 = vmatmul.mubr.msk.bf16.vlgmr.msra.gmra.mrb[0].mxu0 %vm248_vm1, %v238_v3  ;;  %468 = vrot.lane.b32.xlu1 %v816_v9, %s969_s25 }
  0x1b   : > { %863 = vmatprep.mubr.msk.bf16.mxu0 %vm967_vm0, %v966_v0 }
  0x1e   : > { %578 = vrot.lane.b32.xlu1 %v923_v1, %s970_s26 }
  0x22   : > { %576 = vrot.lane.b32.xlu1 %v816_v9, %s970_s26 }
  0x84   : > { %v363_v18 = vpop.permute.xlu1 %362 }
  0x85   : > { %v368_v20 = vsel %vm248_vm1, %v363_v18, 0 }
  0x88   : > { %v361_v22 = vpop.permute.xlu1 %360 }
  0x8c   : > { %v469_v24 = vpop.permute.xlu1 %468 }
  0x90   : > { %v579_v26 = vpop.permute.xlu1 %578 }
  0x91   : > { %v584_v27 = vsel %vm248_vm1, %v579_v26, 0 }
  0x94   : > { %v577_v28 = vpop.permute.xlu1 %576 }
  0xed   : > { %v289_v4 = vpop.f32.mrb[0].mxu0 }
  0xee   : > { %v847_v5 = vpop.f32.mrb[1].mxu0  ;;  %v296_v6 = vsel %vm295_vm2, %v289_v4, -inf }
  0xef   : > { %297 = vmax.xlane.f32.xlu0 %v296_v6  ;;  %v292_v7 = vpop.f32.mrb[2].mxu0 }
  0xf0   : > { %v848_v8 = vpop.f32.mrb[3].mxu0 }
 0x17c   : > { %v298_v10 = vpop.xlane.xlu0 %297 }
 0x17d   : > { %v299_v11 = vsub.f32 %v289_v4, %v298_v10 }
 0x17f   : > { %v300_v12 = vmul.f32 1.442695, %v299_v11 }
 0x181   : > { %926 = vpow2.f32 %v300_v12 }
 0x18b   : > { %v927_v13 = vpop.eup %926 }
 0x18c   : > { %v302_v14 = vsel %vm295_vm2, %v927_v13, 0.0 }
 0x18d   : > { %303 = vadd.xlane.f32.xlu0 %v302_v14 }
 0x1a3   : > { %470 = vrot.lane.b32.xlu0 %v923_v1, %s969_s25 }
 0x21a   : > { %v304_v16 = vpop.xlane.xlu0 %303 }
 0x21b   : > { %928 = vrcp.f32 %v304_v16 }
 0x21e   : > { %v471_v23 = vpop.permute.xlu0 %470 }
 0x21f   : > { %v476_v25 = vsel %vm248_vm1, %v471_v23, 0 }
 0x225   : > { %v929_v17 = vpop.eup %928 }
 0x226   : > { %v306_v19 = vmul.f32 %v929_v17, %v927_v13 }
 0x228   : > { %v307_v21 = vpack.c.bf16 %v306_v19, %v306_v19 }
 0x22a   : > { %852 = vmatmul.mubr.msk.bf16.vlgmr.msra.gmra.mrb[0].mxu1 %vm295_vm2, %v307_v21 }
 0x22b   : > { %856 = vmatpush3.bf16.xpose.msra.mxu1 %v368_v20  ;;  %857 = vmatprep.mubr.msk.bf16.mxu1 %vm967_vm0, %v966_v0 }
 0x22c   : > { %867 = vmatprep.subr.bf16.mxu1 %v966_v0 }
 0x232   : > { %858 = vmatmul.mubr.msk.bf16.vlgmr.msra.gmra.mrb[4].mxu1 %vm248_vm1, %v361_v22 }
 0x233   : > { %868 = vmatpush3.bf16.xpose.msra.mxu1 %v476_v25  ;;  %869 = vmatprep.mubr.msk.bf16.mxu1 %vm967_vm0, %v966_v0 }
 0x234   : > { %879 = vmatprep.subr.bf16.mxu1 %v966_v0 }
 0x23a   : > { %870 = vmatmul.mubr.msk.bf16.vlgmr.msra.gmra.mrb[8].mxu1 %vm248_vm1, %v469_v24 }
 0x23b   : > { %880 = vmatpush3.bf16.xpose.msra.mxu1 %v584_v27  ;;  %881 = vmatprep.mubr.msk.bf16.mxu1 %vm967_vm0, %v966_v0 }
 0x242   : > { %882 = vmatmul.mubr.msk.bf16.vlgmr.msra.gmra.mrb[12].mxu1 %vm248_vm1, %v577_v28 }
 0x2fd   : > { %v1069_v29 = vpop.f32.mrb[0].mxu1 }
 0x2fe   : > { %v853_v30 = vpop.f32.mrb[1].mxu1 }
 0x2ff   : > { %v354_v31 = vpop.f32.mrb[2].mxu1 }
 0x300   : > { %v854_v32 = vpop.f32.mrb[3].mxu1 }
 0x305   : > { %v404_v33 = vpop.f32.mrb[4].mxu1 }
 0x306   : > { %v859_v34 = vpop.f32.mrb[5].mxu1  ;;  %v410_v35 = vsel %vm295_vm2, %v404_v33, -inf }
 0x307   : > { %411 = vmax.xlane.f32.xlu1 %v410_v35  ;;  %v407_v36 = vpop.f32.mrb[6].mxu1 }
 0x308   : > { %v860_v37 = vpop.f32.mrb[7].mxu1 }
 0x30d   : > { %v512_v38 = vpop.f32.mrb[8].mxu1 }
 0x30e   : > { %v518_v39 = vsel %vm295_vm2, %v512_v38, -inf  ;;  %v871_v40 = vpop.f32.mrb[9].mxu1 }
 0x30f   : > { %519 = vmax.xlane.f32.xlu0 %v518_v39  ;;  %v515_v41 = vpop.f32.mrb[10].mxu1 }
 0x310   : > { %v872_v42 = vpop.f32.mrb[11].mxu1 }
 0x315   : > { %v620_v43 = vpop.f32.mrb[12].mxu1 }
 0x316   : > { %v626_v44 = vsel %vm295_vm2, %v620_v43, -inf  ;;  %v883_v45 = vpop.f32.mrb[13].mxu1 }
 0x317   : > { %627 = vmax.xlane.f32.xlu1 %v626_v44  ;;  %v623_v46 = vpop.f32.mrb[14].mxu1 }
 0x318   : > { %v884_v47 = vpop.f32.mrb[15].mxu1 }
 0x394   : > { %v412_v48 = vpop.xlane.xlu1 %411 }
 0x395   : > { %v413_v49 = vsub.f32 %v404_v33, %v412_v48 }
 0x397   : > { %v414_v50 = vmul.f32 1.442695, %v413_v49 }
 0x399   : > { %930 = vpow2.f32 %v414_v50 }
 0x39c   : > { %v520_v51 = vpop.xlane.xlu0 %519 }
 0x39d   : > { %v521_v52 = vsub.f32 %v512_v38, %v520_v51 }
 0x39f   : > { %v522_v53 = vmul.f32 1.442695, %v521_v52 }
 0x3a1   : > { %932 = vpow2.f32 %v522_v53 }
 0x3a3   : > { %v931_v54 = vpop.eup %930 }
 0x3a4   : > { %v416_v55 = vsel %vm295_vm2, %v931_v54, 0.0  ;;  %v628_v58 = vpop.xlane.xlu1 %627 }
 0x3a5   : > { %417 = vadd.xlane.f32.xlu1 %v416_v55  ;;  %v629_v59 = vsub.f32 %v620_v43, %v628_v58 }
 0x3a7   : > { %v630_v60 = vmul.f32 1.442695, %v629_v59 }
 0x3a9   : > { %934 = vpow2.f32 %v630_v60 }
 0x3ab   : > { %v933_v56 = vpop.eup %932 }
 0x3ac   : > { %v524_v57 = vsel %vm295_vm2, %v933_v56, 0.0 }
 0x3ad   : > { %525 = vadd.xlane.f32.xlu0 %v524_v57 }
 0x3b3   : > { %v935_v61 = vpop.eup %934 }
 0x3b4   : > { %v632_v62 = vsel %vm295_vm2, %v935_v61, 0.0 }
 0x3b6   : > { %530 = vrot.lane.b32.xlu1 %v1049_v15, %s969_s25 }
 0x3c3   : > { %422 = vrot.lane.b32.xlu0 %v1049_v15, %s968_s24 }
 0x3da   : > { %633 = vadd.xlane.f32.xlu1 %v632_v62 }
 0x3eb   : > { %638 = vrot.lane.b32.xlu1 %v1049_v15, %s970_s26 }
 0x432   : > { %v418_v63 = vpop.xlane.xlu1 %417 }
 0x433   : > { %936 = vrcp.f32 %v418_v63 }
 0x436   : > { %v531_v6 = vpop.permute.xlu1 %530 }
 0x43a   : > { %v526_v1 = vpop.xlane.xlu0 %525 }
 0x43b   : > { %938 = vrcp.f32 %v526_v1 }
 0x43d   : > { %v937_v2 = vpop.eup %936 }
 0x43e   : > { %v420_v3 = vmul.f32 %v937_v2, %v931_v54  ;;  %v423_v4 = vpop.permute.xlu0 %422 }
 0x43f   : > { %862 = vmatpush3.bf16.msra.mxu0 %v423_v4 }
 0x440   : > { %v421_v5 = vpack.c.bf16 %v420_v3, %v420_v3  ;;  %873 = vmatprep.subr.bf16.mxu0 %v966_v0 }
 0x442   : > { %864 = vmatmul.mubr.msk.bf16.vlgmr.msra.gmra.mrb[4].mxu0 %vm295_vm2, %v421_v5 }
 0x443   : > { %874 = vmatpush3.bf16.msra.mxu0 %v531_v6  ;;  %875 = vmatprep.mubr.msk.bf16.mxu0 %vm967_vm0, %v966_v0 }
 0x444   : > { %885 = vmatprep.subr.bf16.mxu0 %v966_v0 }
 0x445   : > { %v939_v7 = vpop.eup %938 }
 0x446   : > { %v528_v8 = vmul.f32 %v939_v7, %v933_v56 }
 0x448   : > { %v529_v9 = vpack.c.bf16 %v528_v8, %v528_v8 }
 0x44a   : > { %876 = vmatmul.mubr.msk.bf16.vlgmr.msra.gmra.mrb[8].mxu0 %vm295_vm2, %v529_v9 }
 0x44b   : > { %887 = vmatprep.mubr.msk.bf16.mxu0 %vm967_vm0, %v966_v0 }
 0x467   : > { %v634_v10 = vpop.xlane.xlu1 %633 }
 0x468   : > { %940 = vrcp.f32 %v634_v10 }
 0x46b   : > { %v639_v11 = vpop.permute.xlu1 %638 }
 0x46c   : > { %886 = vmatpush3.bf16.msra.mxu0 %v639_v11 }
 0x472   : > { %v941_v12 = vpop.eup %940 }
 0x473   : > { %v636_v13 = vmul.f32 %v941_v12, %v935_v61 }
 0x475   : > { %v637_v14 = vpack.c.bf16 %v636_v13, %v636_v13 }
 0x477   : > { %888 = vmatmul.mubr.msk.bf16.vlgmr.msra.gmra.mrb[12].mxu0 %vm295_vm2, %v637_v14 }
 0x515   : > { %v462_v15 = vpop.f32.mrb[4].mxu0 }
 0x516   : > { %685 = vrot.lane.b32.xlu0 %v462_v15, %s971_s30  ;;  %v865_v16 = vpop.f32.mrb[5].mxu0 }
 0x517   : > { %v465_v17 = vpop.f32.mrb[6].mxu0 }
 0x518   : > { %v866_v18 = vpop.f32.mrb[7].mxu0 }
 0x51d   : > { %v570_v19 = vpop.f32.mrb[8].mxu0 }
 0x51e   : > { %689 = vrot.lane.b32.xlu1 %v570_v19, %s972_s4  ;;  %v877_v0 = vpop.f32.mrb[9].mxu0 }
 0x51f   : > { %v573_v20 = vpop.f32.mrb[10].mxu0 }
 0x520   : > { %v878_v21 = vpop.f32.mrb[11].mxu0 }
 0x54a   : > { %v678_v22 = vpop.f32.mrb[12].mxu0 }
 0x54b   : > { %693 = vrot.lane.b32.xlu0 %v678_v22, %s973_s5  ;;  %v889_v23 = vpop.f32.mrb[13].mxu0 }
 0x54c   : > { %v681_v24 = vpop.f32.mrb[14].mxu0 }
 0x54d   : > { %v890_v25 = vpop.f32.mrb[15].mxu0 }
 0x588   : > { %v686_v26 = vpop.permute.xlu0 %685 }
 0x589   : > { %v696_v28 = vsel %vm248_vm1, %v1069_v29, %v686_v26 }
 0x590   : > { %v690_v27 = vpop.permute.xlu1 %689 }
 0x591   : > { %v697_v30 = vsel %vm295_vm2, %v696_v28, %v690_v27 }
 0x5bd   : > { %v694_v31 = vpop.permute.xlu0 %693 }
 0x5be   : > { %v699_v32 = vsel %vm698_vm3, %v697_v30, %v694_v31 }
 0x5bf   : > { %v700_v33 = vpack.c.bf16 %v699_v32, %v699_v32 }
 0x5c1   : > { %702 = vst.msk [vmem:[%s236_s8] sm:$0xf] %vm701_vm4, %v700_v33 }
 0x5c2 PF: > { %s13_s14 = sadd.s32 1, %s964_s14   ;;  %s1113_s12 = smov %s960_s13 }
 0x5c3   : > { %p10_p5 = scmp.ge.s32.totalorder %s13_s14, 4   ;;  %s1114_s13 = smov %s1116_s15 }
 0x5c5   :  { %12 = sbr.rel (!%p10_p5) target bundleno = 2 (0x2), region = 68 }

// kernel: _lambda_.74
= control target key start
LH: loop header
LB: loop body
LE: loop exit
PB: predicated region body
PF: predicated region fallthrough
CT: control target
= control target key end

     0   :  { %s1089_s0 = inlined_call_operand.vmem [shape: bf16[16,64], index: 0, kind: input, shape index: {}]   ;;  %s1090_s1 = inlined_call_operand.vmem [shape: bf16[64,128], index: 1, kind: input, shape index: {}]   ;;  %s1091_s2 = inlined_call_operand.vmem [shape: f32[1,128], index: 2, kind: input, shape index: {}]   ;;  %s1092_s3 = inlined_call_operand.vmem [shape: bf16[16,128], index: 3, kind: input, shape index: {}]   ;;  %s1093_s4 = inlined_call_operand.vmem [shape: f32[1,128], index: 4, kind: input, shape index: {}]   ;;  %s1094_s5 = inlined_call_operand.vmem [shape: f32[1,128], index: 5, kind: input, shape index: {}]   ;;  %s1095_s6 = inlined_call_operand.vmem [shape: f32[1,128], index: 6, kind: input, shape index: {}]   ;;  %s1096_s7 = inlined_call_operand.vmem [shape: f32[1,128], index: 7, kind: input, shape index: {}]   ;;  %s1097_s8 = inlined_call_operand.hbm [shape: bf16[16,128], index: 8, kind: output, shape index: {0}]   ;;  %s1098_s9 = inlined_call_operand.vmem [shape: bf16[16,128], index: 9, kind: output, shape index: {1}]  }
   0x1   :  { %1099 = sst [smem:[#allocation6_spill]] %s1089_s0 }
   0x2   :  { %1100 = sst [smem:[#allocation7_spill]] %s1090_s1 }
   0x3   :  { %15 = vsyncpa [#allocation4], 0 }
   0x4   :  { %17 = vsyncpa [#allocation4 + $0x1], 0  ;;  %s945_s30 = smov 0   ;;  %s947_s10 = smov 0  }
   0x5   :  { %s949_s11 = smov 0   ;;  %s951_s12 = smov 0  }
   0x6   :  { %s953_s13 = smov 0   ;;  %s955_s14 = smov 0  }
   0x7 LB: > { %s706_s15 = sadd.s32 4294967295, %s890_s14   ;;  %s707_s16 = sadd.s32 4294967294, %s890_s14   ;;  %s890_s14 = sphi %s955_s14, %s23_s14   ;;  %s886_s13 = sphi %s953_s13, %s1109_s13   ;;  %s882_s12 = sphi %s951_s12, %s1108_s12   ;;  %s878_s11 = sphi %s949_s11, %s1107_s11   ;;  %s874_s10 = sphi %s947_s10, %s1106_s10   ;;  %s870_s30 = sphi %s945_s30, %s1105_s30  }
   0x8   : > { %s35_s17 = sadd.s32 1, %s886_s13  ;;  %s227_s18 = sadd.s32 1, %s878_s11 }
   0x9   : > { %p37_p0 = scmp.ge.s32.totalorder %s35_s17, 2  ;;  %p237_p1 = scmp.ne.s32.totalorder %s878_s11, %s874_s10 }
   0xa   : > { %p238_p2 = scmp.eq.s32.totalorder %s706_s15, 1  ;;  %p243_p3 = scmp.ne.s32.totalorder %s874_s10, %s870_s30 }
   0xb   : > { %s1111_s17 = smov (%p37_p0, %s35_s17), 0  ;;  %p244_p5 = scmp.eq.s32.totalorder %s707_s16, 1 }
   0xc   : > { %p985_p4 = por %p238_p2, %p237_p1  ;;  %s224_s20 = ssub.s32 %s886_s13, %s1111_s17 }
   0xd   : > { %p711_p6 = scmp.ge.s32.totalorder %s890_s14, 1  ;;  %p225_p7 = scmp.eq.s32.totalorder %s224_s20, 0 }
   0xe   : > { %p992_p8 = por %p244_p5, %p243_p3  ;;  %p329_p9 = scmp.lt.s32.totalorder %s890_s14, 3 }
   0xf   : > { %s998_s22 = scalar_select %p225_p7, %s878_s11, %s227_s18  }
  0x10   : > { %p330_p10 = pnand %p711_p6, %p329_p9 }
  0x11   : > { %s1103_s1 = sld [smem:[#allocation7_spill]] (!%p330_p10)  ;;  %v892_v1 = vmov (!%p330_p10), 0.0   ;;  %vm893_vm0 = vmmov (!%p330_p10), 0   ;;  %p380_p11 = scmp.lt.s32.totalorder (!%p330_p10), %s882_s12, 1  ;;  %vm441_vm1 = vcmask (!%p330_p10), 523264  }
  0x12   : > { %333 = sbr.rel (%p330_p10) target bundleno = 596 (0x254), region = 52  ;;  %735 = vmatprep.subr.bf16.mxu0 (!%p330_p10), %v892_v1  ;;  %743 = vmatprep.mubr.msk.bf16.mxu0 (!%p330_p10), %vm893_vm0, %v892_v1  ;;  %s1104_s0 = sld [smem:[#allocation6_spill]] (!%p330_p10)  ;;  %v721_v7 = vld [vmem:[%s1091_s2] ss:$0 sm:$0xff] (!%p330_p10) }
  0x13   : > { %v722_v25 = vld [vmem:[%s1093_s4] ss:$0 sm:$0xff] (!%p330_p10)  ;;  %s371_s20 = sand.u32 (!%p330_p10), 1, %s874_s10  }
  0x14   : > { %v723_v27 = vld [vmem:[%s1094_s5] ss:$0 sm:$0xff] (!%p330_p10)  ;;  %s712_s25 = sshll.u32 (!%p330_p10), %s371_s20, 2  ;;  %s565_s23 = scalar_lea.sflag (!%p330_p10), [#allocation4], %s371_s20 }
  0x15   : > { %s373_s26 = scalar_lea.vmem (!%p330_p10), [#allocation3], %s712_s25 }
  0x16   : > { %s582_s28 = sshll.u32 (!%p330_p10), %s373_s26, 4  ;;  %s583_s28 = int_to_ptr.vmem [resolvable:$true] %s582_s28 }
  0x17   : > { %v804_v0 = vld [vmem:[%s1103_s1] sm:$0xff] (!%p330_p10)   ;;  %v805_v2 = vld [vmem:[%s1103_s1 + $0x8] sm:$0xff] (!%p330_p10)   ;;  %v806_v3 = vld [vmem:[%s1103_s1 + $0x10] sm:$0xff] (!%p330_p10)  }
  0x18   : > { %736 = vmatpush3.bf16.msra.mxu0 (!%p330_p10), %v804_v0  ;;  %v807_v4 = vld [vmem:[%s1103_s1 + $0x18] sm:$0xff] (!%p330_p10)  }
  0x19   : > { %737 = vmatprep.subr.bf16.mxu0 %v892_v1  ;;  %s381_s27 = scalar_select %p380_p11, %s882_s12, 1 }
  0x1b   : > { %s1011_s15 = sshll.u32 %s381_s27, 2 }
  0x1c   : > { %738 = vmatpush3.bf16.msra.mxu0 %v805_v2  ;;  %s386_s24 = scalar_lea.vmem %s1104_s0, %s1011_s15  ;;  %s396_s27 = scalar_lea.vmem %s1092_s3, %s1011_s15 }
  0x1d   : > { %739 = vmatprep.subr.bf16.mxu0 %v892_v1  ;;  %v408_v5 = vld [vmem:[%s386_s24] sm:$0xf]  ;;  %s812_s24 = scalar_lea.vmem %s583_s28, 64  ;;  %s894_s0 = smov [#allocation3]  }
  0x1e   : > { %v499_v6 = vld [vmem:[%s396_s27] sm:$0xf]  ;;  %s727_s27 = sshll.u32 %s882_s12, 6  ;;  %p813_p12 = scmp.ne.s32.totalorder %s583_s28, %s812_s24 }
  0x1f   : > { %v500_v8 = vunpack.c.l.bf16 %v499_v6  ;;  %s1038_s18 = scalar_lea.hbm %s1097_s8, %s727_s27  ;;  %s816_s1 = sshll.u32 %s894_s0, 4  ;;  %s817_s1 = int_to_ptr.vmem [resolvable:$false] %s816_s1 }
  0x20   : > { %740 = vmatpush3.bf16.msra.mxu0 %v806_v3  ;;  %p814_p13 = pnand %p813_p12, %p985_p4  ;;  %s818_s25 = scalar_lea.vmem %s817_s1, 128 }
  0x21   : > { %741 = vmatprep.subr.bf16.mxu0 %v892_v1  ;;  %p819_p1 = scmp.lt.s32.totalorder %s583_s28, %s817_s1  ;;  %p820_p2 = scmp.lt.s32.totalorder %s818_s25, %s812_s24 }
  0x22   : > { %p815_p0 = pneg %p814_p13 }
  0x23   : > { %p821_p3 = por %p820_p2, %p819_p1 }
  0x24   : > { %742 = vmatpush3.bf16.msra.mxu0 %v807_v4 }
  0x25   : > { %p822_p5 = pnand %p821_p3, %p815_p0 }
  0x27   : > { %744 = vmatmul.mubr.msk.bf16.vlgmr.msra.gmra.mrb[0].mxu0 %vm441_vm1, %v408_v5 }
  0xfa   : > { %v479_v9 = vpop.f32.mrb[0].mxu0 }
  0xfb   : > { %v498_v10 = vadd.f32 %v721_v7, %v479_v9  ;;  %v745_v11 = vpop.f32.mrb[1].mxu0 }
  0xfc   : > { %v482_v12 = vpop.f32.mrb[2].mxu0 }
  0xfd   : > { %v501_v13 = vadd.f32 %v500_v8, %v498_v10  ;;  %v746_v14 = vpop.f32.mrb[3].mxu0 }
  0xff   : > { %504 = vadd.xlane.f32.xlu0 %v501_v13  ;;  %v506_v15 = vmul.f32 %v501_v13, %v501_v13 }
 0x103   : > { %507 = vadd.xlane.f32.xlu0 %v506_v15 }
 0x18c   : > { %v505_v16 = vpop.xlane.xlu0 %504 }
 0x18d   : > { %v509_v17 = vmul.f32 0.03125, %v505_v16 }
 0x18f   : > { %v511_v19 = vmul.f32 %v509_v17, %v509_v17  ;;  %v513_v23 = vsub.f32 %v501_v13, %v509_v17 }
 0x190   : > { %v508_v18 = vpop.xlane.xlu0 %507 }
 0x191   : > { %v510_v20 = vmul.f32 0.03125, %v508_v18 }
 0x193   : > { %v512_v21 = vsub.f32 %v510_v20, %v511_v19 }
 0x195   : > { %v514_v22 = vadd.f32 1e-05, %v512_v21 }
 0x197   : > { %808 = vrsqrt.f32 %v514_v22 }
 0x1a1   : > { %v809_v24 = vpop.eup %808 }
 0x1a2   : > { %v516_v26 = vmul.f32 %v809_v24, %v513_v23 }
 0x1a4   : > { %v523_v28 = vmul.f32 %v722_v25, %v516_v26 }
 0x1a6   : > { %v530_v29 = vadd.f32 %v723_v27, %v523_v28 }
 0x1a8   : > { %535 = vadd.xlane.f32.xlu1 %v530_v29  ;;  %v531_v30 = vpack.c.bf16 %v530_v29, %v530_v29  ;;  %v537_v31 = vmul.f32 %v530_v29, %v530_v29 }
 0x1aa   : > { %532 = vst [vmem:[%s373_s26] sm:$0xf] %v531_v30 }
 0x1ac   : > { %538 = vadd.xlane.f32.xlu1 %v537_v31 }
 0x1ad   : > { %825 = shalt.err (!%p822_p5)
}
 0x1ae   : > { %s826_s12 = scalar_lea.hbm %s1038_s18, 64  ;;  %s830_s0 = scalar_lea.hbm %s1097_s8, 128 }
 0x1af   : > { %p827_p6 = scmp.ne.s32.totalorder %s1038_s18, %s826_s12  ;;  %p831_p10 = scmp.lt.u32.totalorder %s1038_s18, %s1097_s8 }
 0x1b0   : > { %p832_p11 = scmp.lt.u32.totalorder %s830_s0, %s826_s12  ;;  %p834_p13 = scmp.lt.u32.totalorder %s826_s12, %s1038_s18 }
 0x1b1   : > { %p828_p7 = pnand %p827_p6, %p985_p4 }
 0x1b2   : > { %p833_p12 = por %p832_p11, %p831_p10 }
 0x1b3   : > { %p829_p9 = pneg %p828_p7 }
 0x1b4   : > { %p835_p0 = por %p834_p13, %p833_p12 }
 0x1b6   : > { %p836_p1 = pnand %p835_p0, %p829_p9 }
 0x1b8   : > { %839 = shalt.err (!%p836_p1)
}
 0x1b9   : > { %747 = dma.vmem_to_hbm [thread:$0]  (%p985_p4), %s583_s28, 64, %s1038_s18, %s565_s23   ;;  %v724_v41 = vld [vmem:[%s1095_s6] ss:$0 sm:$0xff] }
 0x1ba   : > { %v725_v43 = vld [vmem:[%s1096_s7] ss:$0 sm:$0xff]  ;;  %s400_s23 = scalar_lea.vmem %s1098_s9, %s1011_s15 }
 0x235   : > { %v536_v32 = vpop.xlane.xlu1 %535 }
 0x236   : > { %v540_v33 = vmul.f32 0.03125, %v536_v32 }
 0x238   : > { %v542_v35 = vmul.f32 %v540_v33, %v540_v33  ;;  %v544_v39 = vsub.f32 %v530_v29, %v540_v33 }
 0x239   : > { %v539_v34 = vpop.xlane.xlu1 %538 }
 0x23a   : > { %v541_v36 = vmul.f32 0.03125, %v539_v34 }
 0x23c   : > { %v543_v37 = vsub.f32 %v541_v36, %v542_v35 }
 0x23e   : > { %v545_v38 = vadd.f32 1e-05, %v543_v37 }
 0x240   : > { %810 = vrsqrt.f32 %v545_v38 }
 0x24a   : > { %v811_v40 = vpop.eup %810 }
 0x24b   : > { %v547_v42 = vmul.f32 %v811_v40, %v544_v39 }
 0x24d   : > { %v554_v44 = vmul.f32 %v724_v41, %v547_v42 }
 0x24f   : > { %v561_v45 = vadd.f32 %v725_v43, %v554_v44 }
 0x251   : > { %v562_v46 = vpack.c.bf16 %v561_v45, %v561_v45 }
 0x253   : > { %563 = vst [vmem:[%s400_s23] sm:$0xf] %v562_v46 }
 0x254 PF: > { %p753_p4 = scmp.ge.s32.totalorder %s890_s14, 2  ;;  %s597_s25 = sand.u32 1, %s870_s30  }
 0x255   : > { %s598_s12 = scalar_lea.sflag [#allocation4], %s597_s25 }
 0x256   : > { %p750_p2 = pnand %p753_p4, %p992_p8 }
 0x258   : > { %865 = dma.done.wait (!%p750_p2), %s598_s12, 64  }
 0x259   : > { %867 = vsyncadd (!%p750_p2), %s598_s12, 4294967232  ;;  %s23_s14 = sadd.s32 1, %s890_s14   ;;  %s1105_s30 = smov %s874_s10 }
 0x25a   : > { %p20_p3 = scmp.ge.s32.totalorder %s23_s14, 4   ;;  %s1106_s10 = smov %s878_s11 }
 0x25b   : > { %s1107_s11 = smov %s998_s22  ;;  %s1108_s12 = smov %s886_s13 }
 0x25c   : > { %s1109_s13 = smov %s1111_s17  ;;  %22 = sbr.rel (!%p20_p3) target bundleno = 7 (0x7), region = 113 }
 0x263   :  { %610 = vsyncpa [#allocation4], 1 }
 0x264   :  { %612 = vsyncpa [#allocation4 + $0x1], 1 }

// kernel: _lambda_.63
= control target key start
LH: loop header
LB: loop body
LE: loop exit
PB: predicated region body
PF: predicated region fallthrough
CT: control target
= control target key end

     0   :  { %s836_s30 = smov 0   ;;  %s838_s10 = smov 0   ;;  %s908_s0 = inlined_call_operand.vmem [shape: bf16[16,64], index: 0, kind: input, shape index: {}]   ;;  %s909_s1 = inlined_call_operand.vmem [shape: bf16[64,128], index: 1, kind: input, shape index: {}]   ;;  %s910_s2 = inlined_call_operand.vmem [shape: f32[1,128], index: 2, kind: input, shape index: {}]   ;;  %s911_s3 = inlined_call_operand.vmem [shape: bf16[16,128], index: 3, kind: input, shape index: {}]   ;;  %s912_s4 = inlined_call_operand.vmem [shape: f32[1,128], index: 4, kind: input, shape index: {}]   ;;  %s913_s5 = inlined_call_operand.vmem [shape: f32[1,128], index: 5, kind: input, shape index: {}]   ;;  %s914_s6 = inlined_call_operand.vmem [shape: f32[1,128], index: 6, kind: input, shape index: {}]   ;;  %s915_s7 = inlined_call_operand.vmem [shape: f32[1,128], index: 7, kind: input, shape index: {}]   ;;  %s916_s8 = inlined_call_operand.vmem [shape: bf16[16,128], index: 8, kind: output, shape index: {0}]   ;;  %s917_s9 = inlined_call_operand.vmem [shape: bf16[16,128], index: 9, kind: output, shape index: {1}]  }
   0x1   :  { %s840_s11 = smov 0  }
   0x2 LB: > { %s32_s12 = sadd.s32 1, %s778_s10  ;;  %p692_p0 = scmp.ge.s32.totalorder %s782_s11, 1  ;;  %s782_s11 = sphi %s840_s11, %s20_s11   ;;  %s778_s10 = sphi %s838_s10, %s919_s10   ;;  %s774_s30 = sphi %s836_s30, %s918_s30  }
   0x3   : > { %p34_p1 = scmp.ge.s32.totalorder %s32_s12, 2  ;;  %p326_p2 = scmp.lt.s32.totalorder %s782_s11, 3 }
   0x5   : > { %s921_s12 = smov (%p34_p1, %s32_s12), 0  ;;  %p327_p3 = pnand %p692_p0, %p326_p2 }
   0x6   : > { %v752_v0 = vld [vmem:[%s909_s1] sm:$0xff] (!%p327_p3)   ;;  %v784_v1 = vmov (!%p327_p3), 0.0   ;;  %v753_v2 = vld [vmem:[%s909_s1 + $0x8] sm:$0xff] (!%p327_p3)   ;;  %vm785_vm0 = vmmov (!%p327_p3), 0   ;;  %p376_p4 = scmp.lt.s32.totalorder (!%p327_p3), %s774_s30, 1  ;;  %v754_v3 = vld [vmem:[%s909_s1 + $0x10] sm:$0xff] (!%p327_p3)  }
   0x7   : > { %330 = sbr.rel (%p327_p3) target bundleno = 580 (0x244), region = 52  ;;  %714 = vmatprep.subr.bf16.mxu0 (!%p327_p3), %v784_v1  ;;  %722 = vmatprep.mubr.msk.bf16.mxu0 (!%p327_p3), %vm785_vm0, %v784_v1  ;;  %v755_v4 = vld [vmem:[%s909_s1 + $0x18] sm:$0xff] (!%p327_p3)   ;;  %vm441_vm1 = vcmask (!%p327_p3), 523264   ;;  %v702_v7 = vld [vmem:[%s910_s2] ss:$0 sm:$0xff] (!%p327_p3) }
   0x8   : > { %715 = vmatpush3.bf16.msra.mxu0 (!%p327_p3), %v752_v0  ;;  %v703_v25 = vld [vmem:[%s912_s4] ss:$0 sm:$0xff] (!%p327_p3) }
   0x9   : > { %716 = vmatprep.subr.bf16.mxu0 (!%p327_p3), %v784_v1  ;;  %v704_v27 = vld [vmem:[%s913_s5] ss:$0 sm:$0xff] (!%p327_p3) }
   0xa   : > { %v705_v41 = vld [vmem:[%s914_s6] ss:$0 sm:$0xff] (!%p327_p3) }
   0xb   : > { %v706_v43 = vld [vmem:[%s915_s7] ss:$0 sm:$0xff] (!%p327_p3) }
   0xc   : > { %717 = vmatpush3.bf16.msra.mxu0 (!%p327_p3), %v753_v2 }
   0xd   : > { %718 = vmatprep.subr.bf16.mxu0 (!%p327_p3), %v784_v1 }
   0xe   : > { %s923_s30 = smov (!%p376_p4, %s774_s30), 1 }
   0xf   : > { %s863_s19 = sshll.u32 %s923_s30, 2 }
  0x10   : > { %719 = vmatpush3.bf16.msra.mxu0 %v754_v3  ;;  %s382_s24 = scalar_lea.vmem %s908_s0, %s863_s19  ;;  %s392_s27 = scalar_lea.vmem %s911_s3, %s863_s19 }
  0x11   : > { %720 = vmatprep.subr.bf16.mxu0 %v784_v1  ;;  %v408_v5 = vld [vmem:[%s382_s24] sm:$0xf]  ;;  %s396_s18 = scalar_lea.vmem %s916_s8, %s863_s19  ;;  %s400_s26 = scalar_lea.vmem %s917_s9, %s863_s19 }
  0x12   : > { %v499_v6 = vld [vmem:[%s392_s27] sm:$0xf] }
  0x13   : > { %v500_v8 = vunpack.c.l.bf16 %v499_v6 }
  0x14   : > { %721 = vmatpush3.bf16.msra.mxu0 %v755_v4 }
  0x17   : > { %723 = vmatmul.mubr.msk.bf16.vlgmr.msra.gmra.mrb[0].mxu0 %vm441_vm1, %v408_v5 }
  0xea   : > { %v479_v9 = vpop.f32.mrb[0].mxu0 }
  0xeb   : > { %v498_v10 = vadd.f32 %v702_v7, %v479_v9  ;;  %v724_v11 = vpop.f32.mrb[1].mxu0 }
  0xec   : > { %v482_v12 = vpop.f32.mrb[2].mxu0 }
  0xed   : > { %v501_v13 = vadd.f32 %v500_v8, %v498_v10  ;;  %v725_v14 = vpop.f32.mrb[3].mxu0 }
  0xef   : > { %504 = vadd.xlane.f32.xlu0 %v501_v13  ;;  %v506_v15 = vmul.f32 %v501_v13, %v501_v13 }
  0xf3   : > { %507 = vadd.xlane.f32.xlu0 %v506_v15 }
 0x17c   : > { %v505_v16 = vpop.xlane.xlu0 %504 }
 0x17d   : > { %v509_v17 = vmul.f32 0.03125, %v505_v16 }
 0x17f   : > { %v511_v19 = vmul.f32 %v509_v17, %v509_v17  ;;  %v513_v23 = vsub.f32 %v501_v13, %v509_v17 }
 0x180   : > { %v508_v18 = vpop.xlane.xlu0 %507 }
 0x181   : > { %v510_v20 = vmul.f32 0.03125, %v508_v18 }
 0x183   : > { %v512_v21 = vsub.f32 %v510_v20, %v511_v19 }
 0x185   : > { %v514_v22 = vadd.f32 1e-05, %v512_v21 }
 0x187   : > { %756 = vrsqrt.f32 %v514_v22 }
 0x191   : > { %v757_v24 = vpop.eup %756 }
 0x192   : > { %v516_v26 = vmul.f32 %v757_v24, %v513_v23 }
 0x194   : > { %v523_v28 = vmul.f32 %v703_v25, %v516_v26 }
 0x196   : > { %v530_v29 = vadd.f32 %v704_v27, %v523_v28 }
 0x198   : > { %535 = vadd.xlane.f32.xlu1 %v530_v29  ;;  %v531_v30 = vpack.c.bf16 %v530_v29, %v530_v29  ;;  %v537_v31 = vmul.f32 %v530_v29, %v530_v29 }
 0x19a   : > { %532 = vst [vmem:[%s396_s18] sm:$0xf] %v531_v30 }
 0x19c   : > { %538 = vadd.xlane.f32.xlu1 %v537_v31 }
 0x225   : > { %v536_v32 = vpop.xlane.xlu1 %535 }
 0x226   : > { %v540_v33 = vmul.f32 0.03125, %v536_v32 }
 0x228   : > { %v542_v35 = vmul.f32 %v540_v33, %v540_v33  ;;  %v544_v39 = vsub.f32 %v530_v29, %v540_v33 }
 0x229   : > { %v539_v34 = vpop.xlane.xlu1 %538 }
 0x22a   : > { %v541_v36 = vmul.f32 0.03125, %v539_v34 }
 0x22c   : > { %v543_v37 = vsub.f32 %v541_v36, %v542_v35 }
 0x22e   : > { %v545_v38 = vadd.f32 1e-05, %v543_v37 }
 0x230   : > { %758 = vrsqrt.f32 %v545_v38 }
 0x23a   : > { %v759_v40 = vpop.eup %758 }
 0x23b   : > { %v547_v42 = vmul.f32 %v759_v40, %v544_v39 }
 0x23d   : > { %v554_v44 = vmul.f32 %v705_v41, %v547_v42 }
 0x23f   : > { %v561_v45 = vadd.f32 %v706_v43, %v554_v44 }
 0x241   : > { %v562_v46 = vpack.c.bf16 %v561_v45, %v561_v45 }
 0x243   : > { %563 = vst [vmem:[%s400_s26] sm:$0xf] %v562_v46 }
 0x244 PF: > { %s20_s11 = sadd.s32 1, %s782_s11   ;;  %s918_s30 = smov %s778_s10 }
 0x245   : > { %p17_p5 = scmp.ge.s32.totalorder %s20_s11, 4   ;;  %s919_s10 = smov %s921_s12 }
 0x247   :  { %19 = sbr.rel (!%p17_p5) target bundleno = 2 (0x2), region = 108 }

// kernel: _lambda_.75
= control target key start
LH: loop header
LB: loop body
LE: loop exit
PB: predicated region body
PF: predicated region fallthrough
CT: control target
= control target key end

     0   :  { %s571_s12 = smov 0   ;;  %s573_s13 = smov 0   ;;  %s613_s0 = inlined_call_operand.vmem [shape: bf16[32,32], index: 0, kind: input, shape index: {}]   ;;  %s614_s1 = inlined_call_operand.vmem [shape: bf16[32,128], index: 1, kind: input, shape index: {}]   ;;  %s615_s2 = inlined_call_operand.vmem [shape: f32[1,128], index: 2, kind: input, shape index: {}]   ;;  %s616_s3 = inlined_call_operand.vmem [shape: f32[32,128], index: 3, kind: output, shape index: {}]  }
   0x1   :  { %s575_s14 = smov 0  }
   0x2 LB: > { %s32_s15 = sadd.s32 1, %s543_s13  ;;  %p473_p0 = scmp.ge.s32.totalorder %s547_s14, 1  ;;  %s547_s14 = sphi %s575_s14, %s13_s14   ;;  %s543_s13 = sphi %s573_s13, %s618_s13   ;;  %s539_s12 = sphi %s571_s12, %s617_s12  }
   0x3   : > { %p34_p1 = scmp.ge.s32.totalorder %s32_s15, 2  ;;  %p188_p2 = scmp.lt.s32.totalorder %s547_s14, 3 }
   0x5   : > { %s620_s15 = smov (%p34_p1, %s32_s15), 0  ;;  %p189_p3 = pnand %p473_p0, %p188_p2 }
   0x6   : > { %v522_v0 = vld [vmem:[%s614_s1] sm:$0xff] (!%p189_p3)   ;;  %v549_v1 = vmov (!%p189_p3), 0.0   ;;  %v523_v2 = vld [vmem:[%s614_s1 + $0x8] sm:$0xff] (!%p189_p3)   ;;  %vm550_vm0 = vmmov (!%p189_p3), 0   ;;  %s474_s20 = sshll.u32 (!%p189_p3), %s539_s12, 1  ;;  %vm291_vm1 = vcmask (!%p189_p3), 261120  }
   0x7   : > { %192 = sbr.rel (%p189_p3) target bundleno = 235 (0xeb), region = 32  ;;  %488 = vmatprep.subr.bf16.mxu0 (!%p189_p3), %v549_v1  ;;  %492 = vmatprep.mubr.msk.bf16.mxu0 (!%p189_p3), %vm550_vm0, %v549_v1  ;;  %p230_p4 = scmp.lt.s32.totalorder (!%p189_p3), %s474_s20, 3  ;;  %v482_v4 = vld [vmem:[%s615_s2] ss:$0 sm:$0xff] (!%p189_p3) }
   0x8   : > { %489 = vmatpush3.bf16.msra.mxu0 (!%p189_p3), %v522_v0 }
   0x9   : > { %490 = vmatprep.subr.bf16.mxu0 (!%p189_p3), %v549_v1 }
   0xc   : > { %491 = vmatpush3.bf16.msra.mxu0 (!%p189_p3), %v523_v2 }
   0xe   : > { %s622_s20 = smov (!%p230_p4, %s474_s20), 3 }
   0xf   : > { %s475_s21 = sshll.u32 %s622_s20, 2  ;;  %s477_s25 = sshll.u32 %s622_s20, 3 }
  0x10   : > { %s236_s24 = scalar_lea.vmem %s613_s0, %s475_s21  ;;  %s257_s30 = scalar_lea.vmem %s616_s3, %s477_s25 }
  0x11   : > { %v524_v3 = vld [vmem:[%s236_s24] sm:$0xff]  }
  0x12   : > { %493 = vmatmul.mubr.msk.bf16.vlgmr.msra.gmra.mrb[0].mxu0 %vm291_vm1, %v524_v3 }
  0xe5   : > { %v329_v5 = vpop.f32.mrb[0].mxu0 }
  0xe6   : > { %v352_v6 = vadd.f32 %v482_v4, %v329_v5  ;;  %v494_v7 = vpop.f32.mrb[1].mxu0 }
  0xe7   : > { %v332_v8 = vpop.f32.mrb[2].mxu0 }
  0xe8   : > { %354 = vst [vmem:[%s257_s30] sm:$0xff] %v352_v6  ;;  %v353_v9 = vadd.f32 %v482_v4, %v332_v8  ;;  %v495_v10 = vpop.f32.mrb[3].mxu0 }
  0xea   : > { %355 = vst [vmem:[%s257_s30 + $0x8] sm:$0xff] %v353_v9 }
  0xeb PF: > { %s13_s14 = sadd.s32 1, %s547_s14   ;;  %s617_s12 = smov %s543_s13 }
  0xec   : > { %p10_p5 = scmp.ge.s32.totalorder %s13_s14, 4   ;;  %s618_s13 = smov %s620_s15 }
  0xee   :  { %12 = sbr.rel (!%p10_p5) target bundleno = 2 (0x2), region = 76 }

// kernel: _lambda_.77
= control target key start
LH: loop header
LB: loop body
LE: loop exit
PB: predicated region body
PF: predicated region fallthrough
CT: control target
= control target key end

     0   :  { %s593_s12 = smov 0   ;;  %s595_s13 = smov 0   ;;  %s635_s0 = inlined_call_operand.vmem [shape: bf16[32,32], index: 0, kind: input, shape index: {}]   ;;  %s636_s1 = inlined_call_operand.vmem [shape: bf16[32,128], index: 1, kind: input, shape index: {}]   ;;  %s637_s2 = inlined_call_operand.vmem [shape: f32[1,128], index: 2, kind: input, shape index: {}]   ;;  %s638_s3 = inlined_call_operand.vmem [shape: f32[32,128], index: 3, kind: output, shape index: {}]  }
   0x1   :  { %s597_s14 = smov 0  }
   0x2 LB: > { %s32_s15 = sadd.s32 1, %s565_s13  ;;  %p485_p0 = scmp.ge.s32.totalorder %s569_s14, 1  ;;  %s569_s14 = sphi %s597_s14, %s13_s14   ;;  %s565_s13 = sphi %s595_s13, %s640_s13   ;;  %s561_s12 = sphi %s593_s12, %s639_s12  }
   0x3   : > { %p34_p1 = scmp.ge.s32.totalorder %s32_s15, 2  ;;  %p188_p2 = scmp.lt.s32.totalorder %s569_s14, 3 }
   0x5   : > { %s642_s15 = smov (%p34_p1, %s32_s15), 0  ;;  %p189_p3 = pnand %p485_p0, %p188_p2 }
   0x6   : > { %v536_v0 = vld [vmem:[%s636_s1] sm:$0xff] (!%p189_p3)   ;;  %v571_v1 = vmov (!%p189_p3), 0.0   ;;  %v537_v2 = vld [vmem:[%s636_s1 + $0x8] sm:$0xff] (!%p189_p3)   ;;  %vm572_vm0 = vmmov (!%p189_p3), 0   ;;  %s486_s20 = sshll.u32 (!%p189_p3), %s561_s12, 1  ;;  %vm291_vm1 = vcmask (!%p189_p3), 261120  }
   0x7   : > { %192 = sbr.rel (%p189_p3) target bundleno = 261 (0x105), region = 32  ;;  %502 = vmatprep.subr.bf16.mxu0 (!%p189_p3), %v571_v1  ;;  %506 = vmatprep.mubr.msk.bf16.mxu0 (!%p189_p3), %vm572_vm0, %v571_v1  ;;  %p230_p4 = scmp.lt.s32.totalorder (!%p189_p3), %s486_s20, 3  ;;  %v494_v4 = vld [vmem:[%s637_s2] ss:$0 sm:$0xff] (!%p189_p3) }
   0x8   : > { %503 = vmatpush3.bf16.msra.mxu0 (!%p189_p3), %v536_v0 }
   0x9   : > { %504 = vmatprep.subr.bf16.mxu0 (!%p189_p3), %v571_v1 }
   0xc   : > { %505 = vmatpush3.bf16.msra.mxu0 (!%p189_p3), %v537_v2 }
   0xe   : > { %s644_s20 = smov (!%p230_p4, %s486_s20), 3 }
   0xf   : > { %s487_s21 = sshll.u32 %s644_s20, 2  ;;  %s489_s27 = sshll.u32 %s644_s20, 3 }
  0x10   : > { %s236_s24 = scalar_lea.vmem %s635_s0, %s487_s21  ;;  %s257_s30 = scalar_lea.vmem %s638_s3, %s489_s27 }
  0x11   : > { %v538_v3 = vld [vmem:[%s236_s24] sm:$0xff]  }
  0x12   : > { %507 = vmatmul.mubr.msk.bf16.vlgmr.msra.gmra.mrb[0].mxu0 %vm291_vm1, %v538_v3 }
  0xe5   : > { %v329_v5 = vpop.f32.mrb[0].mxu0 }
  0xe6   : > { %v352_v6 = vadd.f32 %v494_v4, %v329_v5  ;;  %v508_v7 = vpop.f32.mrb[1].mxu0 }
  0xe7   : > { %v332_v8 = vpop.f32.mrb[2].mxu0 }
  0xe8   : > { %v495_v9 = vmul.f32 -1.442695, %v352_v6  ;;  %v353_v10 = vadd.f32 %v494_v4, %v332_v8  ;;  %v509_v11 = vpop.f32.mrb[3].mxu0 }
  0xea   : > { %539 = vpow2.f32 %v495_v9  ;;  %v496_v12 = vmul.f32 -1.442695, %v353_v10 }
  0xec   : > { %541 = vpow2.f32 %v496_v12 }
  0xf4   : > { %v540_v13 = vpop.eup %539 }
  0xf5   : > { %v360_v14 = vadd.f32 1.0, %v540_v13 }
  0xf6   : > { %v542_v15 = vpop.eup %541 }
  0xf7   : > { %543 = vrcp.f32 %v360_v14  ;;  %v361_v16 = vadd.f32 1.0, %v542_v15 }
  0xf9   : > { %545 = vrcp.f32 %v361_v16 }
 0x101   : > { %v544_v17 = vpop.eup %543 }
 0x102   : > { %366 = vst [vmem:[%s257_s30] sm:$0xff] %v544_v17 }
 0x103   : > { %v546_v18 = vpop.eup %545 }
 0x104   : > { %367 = vst [vmem:[%s257_s30 + $0x8] sm:$0xff] %v546_v18 }
 0x105 PF: > { %s13_s14 = sadd.s32 1, %s569_s14   ;;  %s639_s12 = smov %s565_s13 }
 0x106   : > { %p10_p5 = scmp.ge.s32.totalorder %s13_s14, 4   ;;  %s640_s13 = smov %s642_s15 }
 0x108   :  { %12 = sbr.rel (!%p10_p5) target bundleno = 2 (0x2), region = 76 }

</bundles_post_ra>
